<compile_context>
chip_gen: v6e
topology: v6e:2x2x1
jax: 0.10.0
libtpu: 0.0.40
codegen_flags: <defaults>
</compile_context>

<pallas_src>
import functools
import math

import jax
import jax.numpy as jnp
from jax.experimental import pallas as pl
from jax.experimental.pallas import tpu as pltpu

EPS = 1e-4                    # eps of EDM2 normalize()
MP_SILU_SCALE = 1.0 / 0.596   # mp_silu(x) = silu(x) / 0.596
LANE = 128


def _round_up(x, m):
    return ((x + m - 1) // m) * m


# ---------------------------------------------------------------------------
# Kernel
# ---------------------------------------------------------------------------
def block1d_kernel(x_ref, c_ref, w0_ref, w1_ref, wskip_ref, out_ref, *,
                   Bb, H, W, kh, kw, cin_true, res_balance, clip_act,
                   im2col0, im2col1):
    ph, pw = kh // 2, kw // 2
    mxu_dtype = w0_ref.dtype
    M = Bb * H * W

    x = x_ref[...].astype(jnp.float32)                   # (Bb, H, W, Cin_p)
    cin_p = x.shape[-1]

    # EDM2 normalize over channels.  Padded channels are exact zeros, so divide
    # the sum-of-squares by the TRUE channel count (not the padded one).
    rms = jnp.sqrt(jnp.sum(x * x, axis=-1, keepdims=True) * (1.0 / cin_true))
    xn = x / (rms + EPS)

    # mp_silu in f32 on interior pixels only, then cast ONCE to the MXU dtype
    # before any pad/concat so all conv temporaries are half width.
    a16 = (xn * jax.nn.sigmoid(xn) * MP_SILU_SCALE).astype(mxu_dtype)

    def reflect_pad(u):
        # torch ReflectionPad2d((pw, pw, 0, ph)): left/right pw cols, bottom ph rows.
        if pw:
            left = [u[:, :, j:j + 1, :] for j in range(pw, 0, -1)]
            right = [u[:, :, W - 1 - j:W - j, :] for j in range(1, pw + 1)]
            u = jnp.concatenate(left + [u] + right, axis=2)
        if ph:
            bottom = [u[:, H - 1 - p:H - p, :, :] for p in range(1, ph + 1)]
            u = jnp.concatenate([u] + bottom, axis=1)
        return u

    def conv(u, w_ref, use_im2col):
        # u: (Bb, H, W, Ci) in mxu_dtype; w_ref: (kh*kw*Ci, Co), tap order (dh, dw, ci).
        ci = u.shape[-1]
        u_pad = reflect_pad(u)
        if use_im2col:
            # Narrow channels: one big-contraction MXU matmul.
            taps = [u_pad[:, dh:dh + H, dw:dw + W, :]
                    for dh in range(kh) for dw in range(kw)]
            slab = jnp.concatenate(taps, axis=-1).reshape(M, kh * kw * ci)
            return jnp.dot(slab, w_ref[...], preferred_element_type=jnp.float32)
        # Wide channels: ci already fills the MXU contraction depth, so skip the
        # 22x slab (saves its VMEM footprint and store-slot traffic) and
        # accumulate per tap into one f32 accumulator.
        acc = jnp.zeros((M, w_ref.shape[-1]), jnp.float32)
        i = 0
        for dh in range(kh):
            for dw in range(kw):
                lhs = u_pad[:, dh:dh + H, dw:dw + W, :].reshape(M, ci)
                acc = acc + jnp.dot(lhs, w_ref[pl.ds(i * ci, ci), :],
                                    preferred_element_type=jnp.float32)
                i += 1
        return acc

    # conv_res0
    y = conv(a16, w0_ref, im2col0)                        # (M, Cmid_p) f32
    cmid_p = y.shape[-1]

    # embedding modulation (c precomputed in wrapper) + mp_silu (f32 elementwise),
    # single cast back to the MXU dtype before the second pad/conv.
    c = c_ref[...].astype(jnp.float32)                     # (Bb, 1, Cmid_p)
    y = y.reshape(Bb, H * W, cmid_p) * c
    y = y * jax.nn.sigmoid(y) * MP_SILU_SCALE
    y16 = y.reshape(Bb, H, W, cmid_p).astype(mxu_dtype)

    # conv_res1
    y1 = conv(y16, w1_ref, im2col1)                        # (M, Cout_p) f32
    cout_p = y1.shape[-1]

    # conv_skip (1x1) on the normalized input
    skip = jnp.dot(xn.reshape(M, cin_p).astype(mxu_dtype), wskip_ref[...],
                   preferred_element_type=jnp.float32)     # (M, Cout_p)

    # mp_sum + clip; single lane-dense full-tile store (Cout_p is a multiple of 128).
    t = res_balance
    scale = 1.0 / math.sqrt((1.0 - t) ** 2 + t * t)
    o = (skip * (1.0 - t) + y1 * t) * scale
    o = jnp.clip(o, -clip_act, clip_act)
    out_ref[...] = o.reshape(Bb, H, W, cout_p).astype(out_ref.dtype)


# ---------------------------------------------------------------------------
# Wrapper / glue
# ---------------------------------------------------------------------------
def _vmem_capacity_bytes():
    try:
        cap = int(getattr(pltpu.get_tpu_info(), "vmem_capacity_bytes", 0))
        if cap > 0:
            return cap
    except Exception:
        pass
    return 64 << 20   # v7x-safe fallback (smallest VMEM of v5e/v6e/v7x)


def _per_batch_ws_bytes(H, W, kh, kw, cin_p, cmid_p, cout_p, bpe, im2col0, im2col1):
    """Rough per-batch-element VMEM working set for one grid step."""
    ph, pw = kh // 2, kw // 2
    hp, wp = H + ph, W + 2 * pw
    hw = H * W
    b = 2 * hw * cin_p * 4                 # double-buffered x input tile (f32)
    b += hw * cin_p * (4 + bpe)            # xn (f32) + a16
    b += hp * wp * cin_p * bpe             # padded activation for conv0
    if im2col0:
        b += hw * kh * kw * cin_p * bpe    # im2col slab 0
    b += hw * cmid_p * (8 + bpe)           # conv0 acc + modulated/silu f32 + bf16 copy
    b += hp * wp * cmid_p * bpe            # padded activation for conv1
    if im2col1:
        b += hw * kh * kw * cmid_p * bpe   # im2col slab 1
    b += 2 * hw * cout_p * 4               # y1 + skip (f32)
    b += 2 * hw * cout_p * 4               # double-buffered output tile
    return b


def _choose_batch_block(B, H, W, per_b_bytes, budget_bytes):
    cap = max(1, budget_bytes // max(per_b_bytes, 1))
    divisors = [d for d in range(1, B + 1) if B % d == 0]

    def best(pred):
        ok = [d for d in divisors if d <= cap and pred(d)]
        return max(ok) if ok else None

    # Prefer >= 4 grid steps (>= 2 per v7x TensorCore) while keeping M >= 256.
    bb = best(lambda d: B // d >= 4 and d * H * W >= 256)
    if bb is None:
        bb = best(lambda d: B // d >= 4)
    if bb is None:
        bb = best(lambda d: B // d >= 2)
    if bb is None:
        bb = best(lambda d: True)
    return bb if bb is not None else 1


def block1d_pallas(x, emb, w0, wemb, w1, wskip, *, kernel=(2, 11),
                   res_balance=0.3, clip_act=256.0, batch_block=None,
                   mxu_dtype=jnp.bfloat16, im2col_threshold=256):
    """x: (B,H,W,Cin) NHWC f32; emb: (B,E); w0/w1: HWIO; wemb: (E,Cmid); wskip: (Cin,Cout)."""
    B, H, W, Cin = x.shape
    kh, kw = kernel
    ph, pw = kh // 2, kw // 2
    Cmid = w0.shape[-1]
    Cout = w1.shape[-1]
    assert w0.shape == (kh, kw, Cin, Cmid) and w1.shape == (kh, kw, Cmid, Cout)
    # ReflectionPad2d needs enough rows/cols to reflect (torch would also reject).
    assert H >= ph + 1 and W >= pw + 1, "spatial dims too small for reflection pad"

    # Lane-align channels.  Zero K rows / N columns do not change the matmuls;
    # padded Cout columns are sliced off below (lane-dense store for Cout<128).
    cin_p = _round_up(Cin, LANE)
    cmid_p = _round_up(Cmid, LANE)
    cout_p = _round_up(Cout, LANE)

    # im2col slab only pays off while the contraction depth is narrow; once the
    # channel count fills the MXU K (256 on v6e/v7x, 128 on v5e) use per-tap.
    im2col0 = cin_p < im2col_threshold
    im2col1 = cmid_p < im2col_threshold

    bpe = jnp.dtype(mxu_dtype).itemsize
    vmem_phys = _vmem_capacity_bytes()
    per_b = _per_batch_ws_bytes(H, W, kh, kw, cin_p, cmid_p, cout_p, bpe,
                                im2col0, im2col1)
    w_bytes = (kh * kw * cin_p * cmid_p + kh * kw * cmid_p * cout_p
               + cin_p * cout_p) * bpe

    if batch_block is None:
        budget = max(per_b, int(0.45 * vmem_phys) - 2 * w_bytes)
        batch_block = _choose_batch_block(B, H, W, per_b, budget)
    assert B % batch_block == 0
    Bb = batch_block

    per_step = per_b * Bb + 2 * w_bytes
    vmem_limit = int(min(0.9 * vmem_phys, max(32 << 20, 2 * per_step)))

    # Channel zero-pad of x, modulation and weights (wrapper-side, cheap).
    x_p = x if cin_p == Cin else jnp.pad(x, ((0, 0), (0, 0), (0, 0), (0, cin_p - Cin)))

    # Embedding modulation hoisted out of the kernel: c = emb @ W_emb + 1.
    c = emb.reshape(B, -1).astype(jnp.float32) @ wemb.astype(jnp.float32) + 1.0
    c = jnp.pad(c, ((0, 0), (0, cmid_p - Cmid)), constant_values=1.0)
    c = c.reshape(B, 1, cmid_p)

    w0_p = jnp.pad(w0.astype(jnp.float32),
                   ((0, 0), (0, 0), (0, cin_p - Cin), (0, cmid_p - Cmid)))
    w1_p = jnp.pad(w1.astype(jnp.float32),
                   ((0, 0), (0, 0), (0, cmid_p - Cmid), (0, cout_p - Cout)))
    wskip_p = jnp.pad(wskip.astype(jnp.float32),
                      ((0, cin_p - Cin), (0, cout_p - Cout)))
    # im2col weight layout: tap order (dh, dw, ci) — must match the kernel.
    w0_2d = w0_p.reshape(kh * kw * cin_p, cmid_p).astype(mxu_dtype)
    w1_2d = w1_p.reshape(kh * kw * cmid_p, cout_p).astype(mxu_dtype)
    wskip_2d = wskip_p.astype(mxu_dtype)

    body = functools.partial(
        block1d_kernel, Bb=Bb, H=H, W=W, kh=kh, kw=kw, cin_true=float(Cin),
        res_balance=res_balance, clip_act=clip_act,
        im2col0=im2col0, im2col1=im2col1)

    flops = int(2 * B * H * W * (kh * kw * cin_p * cmid_p
                                 + kh * kw * cmid_p * cout_p + cin_p * cout_p))
    transcendentals = int(B * H * W * (cin_p + cmid_p))
    bytes_accessed = int(x_p.size * 4 + c.size * 4 + B * H * W * cout_p * 4
                         + (w0_2d.size + w1_2d.size + wskip_2d.size) * bpe)

    # TODO(synk): for large H add a second 'parallel' grid axis over H row-blocks
    # (overlapping ph-row halo) to decouple per-step VMEM from the full image, and
    # only raise pipeline_mode=pl.Buffered(3) on x after xprof shows exposed DMA.
    out = pl.pallas_call(
        body,
        out_shape=jax.ShapeDtypeStruct((B, H, W, cout_p), x.dtype),
        grid_spec=pltpu.PrefetchScalarGridSpec(
            num_scalar_prefetch=0,
            grid=(B // Bb,),
            in_specs=[
                pl.BlockSpec((Bb, H, W, cin_p), lambda b: (b, 0, 0, 0)),
                pl.BlockSpec((Bb, 1, cmid_p), lambda b: (b, 0, 0)),
                pl.BlockSpec((kh * kw * cin_p, cmid_p), lambda b: (0, 0)),
                pl.BlockSpec((kh * kw * cmid_p, cout_p), lambda b: (0, 0)),
                pl.BlockSpec((cin_p, cout_p), lambda b: (0, 0)),
            ],
            out_specs=pl.BlockSpec((Bb, H, W, cout_p), lambda b: (b, 0, 0, 0)),
        ),
        compiler_params=pltpu.CompilerParams(
            dimension_semantics=("parallel",),
            vmem_limit_bytes=vmem_limit),
        cost_estimate=pl.CostEstimate(flops=flops,
                                      transcendentals=transcendentals,
                                      bytes_accessed=bytes_accessed),
    )(x_p, c, w0_2d, w1_2d, wskip_2d)

    return out[..., :Cout] if cout_p != Cout else out


def init_block1d_params(key, in_ch, out_ch, emb_ch, mlp_multiplier=1, kernel=(2, 11)):
    """Deterministic parameters with the shapes Block1D.__init__ creates."""
    kh, kw = kernel
    mid = out_ch * mlp_multiplier
    k0, k1, k2, k3 = jax.random.split(key, 4)
    return {
        "w_res0": jax.random.normal(k0, (mid, in_ch, kh, kw), jnp.float32),
        "w_res1": jax.random.normal(k1, (out_ch, mid, kh, kw), jnp.float32),
        "w_skip": jax.random.normal(k2, (out_ch, in_ch, 1, 1), jnp.float32),
        "w_emb":  jax.random.normal(k3, (mid, emb_ch, 1, 1), jnp.float32),
        # torch init is zeros([]); use a nonzero deterministic value so the
        # embedding-modulation path is actually exercised.
        "emb_gain": jnp.float32(0.5),
    }


def _mp_weight(w, gain=1.0):
    """MPConv1D forward weight prep: normalize(w) (training-mode) then gain/sqrt(fan_in)."""
    w = w.astype(jnp.float32)
    fan_in = int(w[0].size)
    norm = jnp.sqrt(jnp.sum(w * w, axis=tuple(range(1, w.ndim)), keepdims=True))
    w = w / (EPS + norm / math.sqrt(fan_in))
    return w * (gain / math.sqrt(fan_in))


def prep_weights(params):
    # TODO(synk): mlp_groups > 1 (grouped conv), non-Identity resample, and the
    # identity-skip case (in_channels == out_channels) are not wired up here.
    w0 = jnp.transpose(_mp_weight(params["w_res0"]), (2, 3, 1, 0))             # (kh,kw,Cin,Cmid)
    w1 = jnp.transpose(_mp_weight(params["w_res1"]), (2, 3, 1, 0))             # (kh,kw,Cmid,Cout)
    wskip = _mp_weight(params["w_skip"])[:, :, 0, 0].T                         # (Cin,Cout)
    wemb = _mp_weight(params["w_emb"], gain=params["emb_gain"])[:, :, 0, 0].T  # (E,Cmid)
    return w0, wemb, w1, wskip


# ---------------------------------------------------------------------------
# Pure-JAX reference (same bf16-at-the-MXU casts, f32 elementwise) for validation
# ---------------------------------------------------------------------------
def ref_block1d(x, emb, w0, wemb, w1, wskip, *, kernel=(2, 11),
                res_balance=0.3, clip_act=256.0, mxu_dtype=jnp.bfloat16):
    kh, kw = kernel
    rms = jnp.sqrt(jnp.mean(x * x, axis=-1, keepdims=True))
    xn = x / (rms + EPS)
    a = jax.nn.silu(xn) * MP_SILU_SCALE
    pad = ((0, 0), (0, kh // 2), (kw // 2, kw // 2), (0, 0))

    def conv(u, w):
        return jax.lax.conv_general_dilated(
            jnp.pad(u, pad, mode="reflect").astype(mxu_dtype), w.astype(mxu_dtype),
            (1, 1), "VALID", dimension_numbers=("NHWC", "HWIO", "NHWC"),
            preferred_element_type=jnp.float32)

    y = conv(a, w0)
    c = emb @ wemb + 1.0
    y = y * c[:, None, None, :]
    y = jax.nn.silu(y) * MP_SILU_SCALE
    y = conv(y, w1)
    xs = jnp.einsum("bhwc,cd->bhwd", xn.astype(mxu_dtype), wskip.astype(mxu_dtype),
                    preferred_element_type=jnp.float32)
    t = res_balance
    out = (xs * (1.0 - t) + y * t) / math.sqrt((1.0 - t) ** 2 + t * t)
    return jnp.clip(out, -clip_act, clip_act)


if __name__ == "__main__":
    B, Cin, Cout, E = 2, 8, 16, 12
    H, W = 2, 16
    kernel = (2, 11)

    key = jax.random.PRNGKey(0)
    kx, ke, kp = jax.random.split(key, 3)
    # PyTorch-side shapes: x is NCHW, emb is (B, E, 1, 1) (fed to a 1x1 conv).
    x_nchw = jax.random.normal(kx, (B, Cin, H, W), jnp.float32)
    emb_nchw = jax.random.normal(ke, (B, E, 1, 1), jnp.float32)

    params = init_block1d_params(kp, Cin, Cout, E, kernel=kernel)
    w0, wemb, w1, wskip = prep_weights(params)

    # glue: NCHW -> NHWC; emb -> (B, E)
    x = jnp.transpose(x_nchw, (0, 2, 3, 1))            # (B, H, W, Cin)
    emb = emb_nchw[:, :, 0, 0]                         # (B, E)

    ref = ref_block1d(x, emb, w0, wemb, w1, wskip, kernel=kernel)

    # Path 1: im2col single-matmul convs (narrow-channel default).
    out = block1d_pallas(x, emb, w0, wemb, w1, wskip, kernel=kernel)
    out = jax.block_until_ready(out)
    assert out.shape == (B, H, W, Cout)
    assert jnp.allclose(out, ref, rtol=1e-2, atol=1e-2), \
        "im2col path max abs err = %g" % float(jnp.max(jnp.abs(out - ref)))

    # Path 2: per-tap accumulation convs (wide-channel production configuration).
    out2 = block1d_pallas(x, emb, w0, wemb, w1, wskip, kernel=kernel,
                          im2col_threshold=0)
    out2 = jax.block_until_ready(out2)
    assert jnp.allclose(out2, ref, rtol=1e-2, atol=1e-2), \
        "per-tap path max abs err = %g" % float(jnp.max(jnp.abs(out2 - ref)))

    print("KERNEL_OK")
</pallas_src>

<mosaic_0001>
module attributes {stable_mosaic.version = 11 : i64} {
  func.func @block1d_kernel(%arg0: i32, %arg1: memref<1x2x16x128xf32, #tpu.memory_space<vmem>>, %arg2: memref<1x1x128xf32, #tpu.memory_space<vmem>>, %arg3: memref<2816x128xbf16, #tpu.memory_space<vmem>>, %arg4: memref<2816x128xbf16, #tpu.memory_space<vmem>>, %arg5: memref<128x128xbf16, #tpu.memory_space<vmem>>, %arg6: memref<1x2x16x128xf32, #tpu.memory_space<vmem>>) attributes {dimension_semantics = [#tpu.dimension_semantics<parallel>], iteration_bounds = array<i64: 2>, scalar_prefetch = 0 : i64, scratch_operands = 0 : i64, tpu.core_type = #tpu.core_type<tc>, window_params = [{transform_indices = @transform_0, window_bounds = array<i64: 1, 2, 16, 128>}, {transform_indices = @transform_1, window_bounds = array<i64: 1, 1, 128>}, {pipeline_mode = #tpu.pipeline_mode<synchronous>, transform_indices = @transform_2, window_bounds = array<i64: 2816, 128>}, {pipeline_mode = #tpu.pipeline_mode<synchronous>, transform_indices = @transform_3, window_bounds = array<i64: 2816, 128>}, {pipeline_mode = #tpu.pipeline_mode<synchronous>, transform_indices = @transform_4, window_bounds = array<i64: 128, 128>}, {transform_indices = @transform_5, window_bounds = array<i64: 1, 2, 16, 128>}]} {
    %c0 = arith.constant 0 : index
    %c0_0 = arith.constant 0 : index
    %c0_1 = arith.constant 0 : index
    %c0_2 = arith.constant 0 : index
    %0 = vector.load %arg1[%c0, %c0_0, %c0_1, %c0_2] : memref<1x2x16x128xf32, #tpu.memory_space<vmem>>, vector<1x2x16x128xf32>
    %1 = arith.mulf %0, %0 : vector<1x2x16x128xf32>
    %cst = arith.constant dense<0.000000e+00> : vector<1x2x16xf32>
    %2 = vector.multi_reduction <add>, %1, %cst [3] : vector<1x2x16x128xf32> to vector<1x2x16xf32>
    %3 = vector.shape_cast %2 : vector<1x2x16xf32> to vector<1x2x16x1xf32>
    %cst_3 = arith.constant 1.250000e-01 : f32
    %4 = vector.broadcast %cst_3 : f32 to vector<1x2x16x1xf32>
    %5 = arith.mulf %3, %4 : vector<1x2x16x1xf32>
    %6 = math.sqrt %5 : vector<1x2x16x1xf32>
    %cst_4 = arith.constant 9.99999974E-5 : f32
    %7 = vector.broadcast %cst_4 : f32 to vector<1x2x16x1xf32>
    %8 = arith.addf %6, %7 : vector<1x2x16x1xf32>
    %9 = vector.broadcast %8 : vector<1x2x16x1xf32> to vector<1x2x16x128xf32>
    %10 = arith.divf %0, %9 : vector<1x2x16x128xf32>
    %11 = arith.negf %10 : vector<1x2x16x128xf32>
    %12 = math.exp %11 : vector<1x2x16x128xf32>
    %cst_5 = arith.constant 1.000000e+00 : f32
    %13 = vector.broadcast %cst_5 : f32 to vector<1x2x16x128xf32>
    %14 = arith.addf %13, %12 : vector<1x2x16x128xf32>
    %15 = arith.divf %13, %14 : vector<1x2x16x128xf32>
    %16 = arith.mulf %10, %15 : vector<1x2x16x128xf32>
    %cst_6 = arith.constant 1.67785239 : f32
    %17 = vector.broadcast %cst_6 : f32 to vector<1x2x16x128xf32>
    %18 = arith.mulf %16, %17 : vector<1x2x16x128xf32>
    %19 = arith.truncf %18 : vector<1x2x16x128xf32> to vector<1x2x16x128xbf16>
    %20 = vector.extract_strided_slice %19 {offsets = [0, 0, 5, 0], sizes = [1, 2, 1, 128], strides = [1, 1, 1, 1]} : vector<1x2x16x128xbf16> to vector<1x2x1x128xbf16>
    %21 = vector.extract_strided_slice %19 {offsets = [0, 0, 4, 0], sizes = [1, 2, 1, 128], strides = [1, 1, 1, 1]} : vector<1x2x16x128xbf16> to vector<1x2x1x128xbf16>
    %22 = vector.extract_strided_slice %19 {offsets = [0, 0, 3, 0], sizes = [1, 2, 1, 128], strides = [1, 1, 1, 1]} : vector<1x2x16x128xbf16> to vector<1x2x1x128xbf16>
    %23 = vector.extract_strided_slice %19 {offsets = [0, 0, 2, 0], sizes = [1, 2, 1, 128], strides = [1, 1, 1, 1]} : vector<1x2x16x128xbf16> to vector<1x2x1x128xbf16>
    %24 = vector.extract_strided_slice %19 {offsets = [0, 0, 1, 0], sizes = [1, 2, 1, 128], strides = [1, 1, 1, 1]} : vector<1x2x16x128xbf16> to vector<1x2x1x128xbf16>
    %25 = vector.extract_strided_slice %19 {offsets = [0, 0, 14, 0], sizes = [1, 2, 1, 128], strides = [1, 1, 1, 1]} : vector<1x2x16x128xbf16> to vector<1x2x1x128xbf16>
    %26 = vector.extract_strided_slice %19 {offsets = [0, 0, 13, 0], sizes = [1, 2, 1, 128], strides = [1, 1, 1, 1]} : vector<1x2x16x128xbf16> to vector<1x2x1x128xbf16>
    %27 = vector.extract_strided_slice %19 {offsets = [0, 0, 12, 0], sizes = [1, 2, 1, 128], strides = [1, 1, 1, 1]} : vector<1x2x16x128xbf16> to vector<1x2x1x128xbf16>
    %28 = vector.extract_strided_slice %19 {offsets = [0, 0, 11, 0], sizes = [1, 2, 1, 128], strides = [1, 1, 1, 1]} : vector<1x2x16x128xbf16> to vector<1x2x1x128xbf16>
    %29 = vector.extract_strided_slice %19 {offsets = [0, 0, 10, 0], sizes = [1, 2, 1, 128], strides = [1, 1, 1, 1]} : vector<1x2x16x128xbf16> to vector<1x2x1x128xbf16>
    %30 = tpu.concatenate %20, %21, %22, %23, %24, %19, %25, %26, %27, %28, %29 in 2 : vector<1x2x1x128xbf16>, vector<1x2x1x128xbf16>, vector<1x2x1x128xbf16>, vector<1x2x1x128xbf16>, vector<1x2x1x128xbf16>, vector<1x2x16x128xbf16>, vector<1x2x1x128xbf16>, vector<1x2x1x128xbf16>, vector<1x2x1x128xbf16>, vector<1x2x1x128xbf16>, vector<1x2x1x128xbf16> -> vector<1x2x26x128xbf16>
    %31 = vector.extract_strided_slice %30 {offsets = [0, 0, 0, 0], sizes = [1, 1, 26, 128], strides = [1, 1, 1, 1]} : vector<1x2x26x128xbf16> to vector<1x1x26x128xbf16>
    %32 = tpu.concatenate %30, %31 in 1 : vector<1x2x26x128xbf16>, vector<1x1x26x128xbf16> -> vector<1x3x26x128xbf16>
    %33 = vector.extract_strided_slice %32 {offsets = [0, 0, 0, 0], sizes = [1, 2, 16, 128], strides = [1, 1, 1, 1]} : vector<1x3x26x128xbf16> to vector<1x2x16x128xbf16>
    %34 = vector.extract_strided_slice %32 {offsets = [0, 0, 1, 0], sizes = [1, 2, 16, 128], strides = [1, 1, 1, 1]} : vector<1x3x26x128xbf16> to vector<1x2x16x128xbf16>
    %35 = vector.extract_strided_slice %32 {offsets = [0, 0, 2, 0], sizes = [1, 2, 16, 128], strides = [1, 1, 1, 1]} : vector<1x3x26x128xbf16> to vector<1x2x16x128xbf16>
    %36 = vector.extract_strided_slice %32 {offsets = [0, 0, 3, 0], sizes = [1, 2, 16, 128], strides = [1, 1, 1, 1]} : vector<1x3x26x128xbf16> to vector<1x2x16x128xbf16>
    %37 = vector.extract_strided_slice %32 {offsets = [0, 0, 4, 0], sizes = [1, 2, 16, 128], strides = [1, 1, 1, 1]} : vector<1x3x26x128xbf16> to vector<1x2x16x128xbf16>
    %38 = vector.extract_strided_slice %32 {offsets = [0, 0, 5, 0], sizes = [1, 2, 16, 128], strides = [1, 1, 1, 1]} : vector<1x3x26x128xbf16> to vector<1x2x16x128xbf16>
    %39 = vector.extract_strided_slice %32 {offsets = [0, 0, 6, 0], sizes = [1, 2, 16, 128], strides = [1, 1, 1, 1]} : vector<1x3x26x128xbf16> to vector<1x2x16x128xbf16>
    %40 = vector.extract_strided_slice %32 {offsets = [0, 0, 7, 0], sizes = [1, 2, 16, 128], strides = [1, 1, 1, 1]} : vector<1x3x26x128xbf16> to vector<1x2x16x128xbf16>
    %41 = vector.extract_strided_slice %32 {offsets = [0, 0, 8, 0], sizes = [1, 2, 16, 128], strides = [1, 1, 1, 1]} : vector<1x3x26x128xbf16> to vector<1x2x16x128xbf16>
    %42 = vector.extract_strided_slice %32 {offsets = [0, 0, 9, 0], sizes = [1, 2, 16, 128], strides = [1, 1, 1, 1]} : vector<1x3x26x128xbf16> to vector<1x2x16x128xbf16>
    %43 = vector.extract_strided_slice %32 {offsets = [0, 0, 10, 0], sizes = [1, 2, 16, 128], strides = [1, 1, 1, 1]} : vector<1x3x26x128xbf16> to vector<1x2x16x128xbf16>
    %44 = vector.extract_strided_slice %32 {offsets = [0, 1, 0, 0], sizes = [1, 2, 16, 128], strides = [1, 1, 1, 1]} : vector<1x3x26x128xbf16> to vector<1x2x16x128xbf16>
    %45 = vector.extract_strided_slice %32 {offsets = [0, 1, 1, 0], sizes = [1, 2, 16, 128], strides = [1, 1, 1, 1]} : vector<1x3x26x128xbf16> to vector<1x2x16x128xbf16>
    %46 = vector.extract_strided_slice %32 {offsets = [0, 1, 2, 0], sizes = [1, 2, 16, 128], strides = [1, 1, 1, 1]} : vector<1x3x26x128xbf16> to vector<1x2x16x128xbf16>
    %47 = vector.extract_strided_slice %32 {offsets = [0, 1, 3, 0], sizes = [1, 2, 16, 128], strides = [1, 1, 1, 1]} : vector<1x3x26x128xbf16> to vector<1x2x16x128xbf16>
    %48 = vector.extract_strided_slice %32 {offsets = [0, 1, 4, 0], sizes = [1, 2, 16, 128], strides = [1, 1, 1, 1]} : vector<1x3x26x128xbf16> to vector<1x2x16x128xbf16>
    %49 = vector.extract_strided_slice %32 {offsets = [0, 1, 5, 0], sizes = [1, 2, 16, 128], strides = [1, 1, 1, 1]} : vector<1x3x26x128xbf16> to vector<1x2x16x128xbf16>
    %50 = vector.extract_strided_slice %32 {offsets = [0, 1, 6, 0], sizes = [1, 2, 16, 128], strides = [1, 1, 1, 1]} : vector<1x3x26x128xbf16> to vector<1x2x16x128xbf16>
    %51 = vector.extract_strided_slice %32 {offsets = [0, 1, 7, 0], sizes = [1, 2, 16, 128], strides = [1, 1, 1, 1]} : vector<1x3x26x128xbf16> to vector<1x2x16x128xbf16>
    %52 = vector.extract_strided_slice %32 {offsets = [0, 1, 8, 0], sizes = [1, 2, 16, 128], strides = [1, 1, 1, 1]} : vector<1x3x26x128xbf16> to vector<1x2x16x128xbf16>
    %53 = vector.extract_strided_slice %32 {offsets = [0, 1, 9, 0], sizes = [1, 2, 16, 128], strides = [1, 1, 1, 1]} : vector<1x3x26x128xbf16> to vector<1x2x16x128xbf16>
    %54 = vector.extract_strided_slice %32 {offsets = [0, 1, 10, 0], sizes = [1, 2, 16, 128], strides = [1, 1, 1, 1]} : vector<1x3x26x128xbf16> to vector<1x2x16x128xbf16>
    %55 = tpu.concatenate %33, %34, %35, %36, %37, %38, %39, %40, %41, %42, %43, %44, %45, %46, %47, %48 in 3 : vector<1x2x16x128xbf16>, vector<1x2x16x128xbf16>, vector<1x2x16x128xbf16>, vector<1x2x16x128xbf16>, vector<1x2x16x128xbf16>, vector<1x2x16x128xbf16>, vector<1x2x16x128xbf16>, vector<1x2x16x128xbf16>, vector<1x2x16x128xbf16>, vector<1x2x16x128xbf16>, vector<1x2x16x128xbf16>, vector<1x2x16x128xbf16>, vector<1x2x16x128xbf16>, vector<1x2x16x128xbf16>, vector<1x2x16x128xbf16>, vector<1x2x16x128xbf16> -> vector<1x2x16x2048xbf16>
    %56 = tpu.concatenate %49, %50, %51, %52, %53, %54 in 3 : vector<1x2x16x128xbf16>, vector<1x2x16x128xbf16>, vector<1x2x16x128xbf16>, vector<1x2x16x128xbf16>, vector<1x2x16x128xbf16>, vector<1x2x16x128xbf16> -> vector<1x2x16x768xbf16>
    %57 = tpu.concatenate %55, %56 in 3 : vector<1x2x16x2048xbf16>, vector<1x2x16x768xbf16> -> vector<1x2x16x2816xbf16>
    %58 = vector.shape_cast %57 : vector<1x2x16x2816xbf16> to vector<32x2816xbf16>
    %c0_7 = arith.constant 0 : index
    %c0_8 = arith.constant 0 : index
    %59 = vector.load %arg3[%c0_7, %c0_8] : memref<2816x128xbf16, #tpu.memory_space<vmem>>, vector<2816x128xbf16>
    %cst_9 = arith.constant dense<0.000000e+00> : vector<32x128xf32>
    %60 = tpu.matmul %58, %59, %cst_9 {dimension_numbers = #tpu.dot_dimension_numbers<[1], [0], [0], [1], [0, 0, 1, 1], [], []>} : vector<32x2816xbf16>, vector<2816x128xbf16>, vector<32x128xf32> -> vector<32x128xf32>
    %c0_10 = arith.constant 0 : index
    %c0_11 = arith.constant 0 : index
    %c0_12 = arith.constant 0 : index
    %61 = vector.load %arg2[%c0_10, %c0_11, %c0_12] : memref<1x1x128xf32, #tpu.memory_space<vmem>>, vector<1x1x128xf32>
    %62 = vector.shape_cast %60 : vector<32x128xf32> to vector<1x32x128xf32>
    %63 = vector.broadcast %61 : vector<1x1x128xf32> to vector<1x32x128xf32>
    %64 = arith.mulf %62, %63 : vector<1x32x128xf32>
    %65 = arith.negf %64 : vector<1x32x128xf32>
    %66 = math.exp %65 : vector<1x32x128xf32>
    %cst_13 = arith.constant 1.000000e+00 : f32
    %67 = vector.broadcast %cst_13 : f32 to vector<1x32x128xf32>
    %68 = arith.addf %67, %66 : vector<1x32x128xf32>
    %69 = arith.divf %67, %68 : vector<1x32x128xf32>
    %70 = arith.mulf %64, %69 : vector<1x32x128xf32>
    %cst_14 = arith.constant 1.67785239 : f32
    %71 = vector.broadcast %cst_14 : f32 to vector<1x32x128xf32>
    %72 = arith.mulf %70, %71 : vector<1x32x128xf32>
    %73 = vector.shape_cast %72 : vector<1x32x128xf32> to vector<1x2x16x128xf32>
    %74 = arith.truncf %73 : vector<1x2x16x128xf32> to vector<1x2x16x128xbf16>
    %75 = vector.extract_strided_slice %74 {offsets = [0, 0, 5, 0], sizes = [1, 2, 1, 128], strides = [1, 1, 1, 1]} : vector<1x2x16x128xbf16> to vector<1x2x1x128xbf16>
    %76 = vector.extract_strided_slice %74 {offsets = [0, 0, 4, 0], sizes = [1, 2, 1, 128], strides = [1, 1, 1, 1]} : vector<1x2x16x128xbf16> to vector<1x2x1x128xbf16>
    %77 = vector.extract_strided_slice %74 {offsets = [0, 0, 3, 0], sizes = [1, 2, 1, 128], strides = [1, 1, 1, 1]} : vector<1x2x16x128xbf16> to vector<1x2x1x128xbf16>
    %78 = vector.extract_strided_slice %74 {offsets = [0, 0, 2, 0], sizes = [1, 2, 1, 128], strides = [1, 1, 1, 1]} : vector<1x2x16x128xbf16> to vector<1x2x1x128xbf16>
    %79 = vector.extract_strided_slice %74 {offsets = [0, 0, 1, 0], sizes = [1, 2, 1, 128], strides = [1, 1, 1, 1]} : vector<1x2x16x128xbf16> to vector<1x2x1x128xbf16>
    %80 = vector.extract_strided_slice %74 {offsets = [0, 0, 14, 0], sizes = [1, 2, 1, 128], strides = [1, 1, 1, 1]} : vector<1x2x16x128xbf16> to vector<1x2x1x128xbf16>
    %81 = vector.extract_strided_slice %74 {offsets = [0, 0, 13, 0], sizes = [1, 2, 1, 128], strides = [1, 1, 1, 1]} : vector<1x2x16x128xbf16> to vector<1x2x1x128xbf16>
    %82 = vector.extract_strided_slice %74 {offsets = [0, 0, 12, 0], sizes = [1, 2, 1, 128], strides = [1, 1, 1, 1]} : vector<1x2x16x128xbf16> to vector<1x2x1x128xbf16>
    %83 = vector.extract_strided_slice %74 {offsets = [0, 0, 11, 0], sizes = [1, 2, 1, 128], strides = [1, 1, 1, 1]} : vector<1x2x16x128xbf16> to vector<1x2x1x128xbf16>
    %84 = vector.extract_strided_slice %74 {offsets = [0, 0, 10, 0], sizes = [1, 2, 1, 128], strides = [1, 1, 1, 1]} : vector<1x2x16x128xbf16> to vector<1x2x1x128xbf16>
    %85 = tpu.concatenate %75, %76, %77, %78, %79, %74, %80, %81, %82, %83, %84 in 2 : vector<1x2x1x128xbf16>, vector<1x2x1x128xbf16>, vector<1x2x1x128xbf16>, vector<1x2x1x128xbf16>, vector<1x2x1x128xbf16>, vector<1x2x16x128xbf16>, vector<1x2x1x128xbf16>, vector<1x2x1x128xbf16>, vector<1x2x1x128xbf16>, vector<1x2x1x128xbf16>, vector<1x2x1x128xbf16> -> vector<1x2x26x128xbf16>
    %86 = vector.extract_strided_slice %85 {offsets = [0, 0, 0, 0], sizes = [1, 1, 26, 128], strides = [1, 1, 1, 1]} : vector<1x2x26x128xbf16> to vector<1x1x26x128xbf16>
    %87 = tpu.concatenate %85, %86 in 1 : vector<1x2x26x128xbf16>, vector<1x1x26x128xbf16> -> vector<1x3x26x128xbf16>
    %88 = vector.extract_strided_slice %87 {offsets = [0, 0, 0, 0], sizes = [1, 2, 16, 128], strides = [1, 1, 1, 1]} : vector<1x3x26x128xbf16> to vector<1x2x16x128xbf16>
    %89 = vector.extract_strided_slice %87 {offsets = [0, 0, 1, 0], sizes = [1, 2, 16, 128], strides = [1, 1, 1, 1]} : vector<1x3x26x128xbf16> to vector<1x2x16x128xbf16>
    %90 = vector.extract_strided_slice %87 {offsets = [0, 0, 2, 0], sizes = [1, 2, 16, 128], strides = [1, 1, 1, 1]} : vector<1x3x26x128xbf16> to vector<1x2x16x128xbf16>
    %91 = vector.extract_strided_slice %87 {offsets = [0, 0, 3, 0], sizes = [1, 2, 16, 128], strides = [1, 1, 1, 1]} : vector<1x3x26x128xbf16> to vector<1x2x16x128xbf16>
    %92 = vector.extract_strided_slice %87 {offsets = [0, 0, 4, 0], sizes = [1, 2, 16, 128], strides = [1, 1, 1, 1]} : vector<1x3x26x128xbf16> to vector<1x2x16x128xbf16>
    %93 = vector.extract_strided_slice %87 {offsets = [0, 0, 5, 0], sizes = [1, 2, 16, 128], strides = [1, 1, 1, 1]} : vector<1x3x26x128xbf16> to vector<1x2x16x128xbf16>
    %94 = vector.extract_strided_slice %87 {offsets = [0, 0, 6, 0], sizes = [1, 2, 16, 128], strides = [1, 1, 1, 1]} : vector<1x3x26x128xbf16> to vector<1x2x16x128xbf16>
    %95 = vector.extract_strided_slice %87 {offsets = [0, 0, 7, 0], sizes = [1, 2, 16, 128], strides = [1, 1, 1, 1]} : vector<1x3x26x128xbf16> to vector<1x2x16x128xbf16>
    %96 = vector.extract_strided_slice %87 {offsets = [0, 0, 8, 0], sizes = [1, 2, 16, 128], strides = [1, 1, 1, 1]} : vector<1x3x26x128xbf16> to vector<1x2x16x128xbf16>
    %97 = vector.extract_strided_slice %87 {offsets = [0, 0, 9, 0], sizes = [1, 2, 16, 128], strides = [1, 1, 1, 1]} : vector<1x3x26x128xbf16> to vector<1x2x16x128xbf16>
    %98 = vector.extract_strided_slice %87 {offsets = [0, 0, 10, 0], sizes = [1, 2, 16, 128], strides = [1, 1, 1, 1]} : vector<1x3x26x128xbf16> to vector<1x2x16x128xbf16>
    %99 = vector.extract_strided_slice %87 {offsets = [0, 1, 0, 0], sizes = [1, 2, 16, 128], strides = [1, 1, 1, 1]} : vector<1x3x26x128xbf16> to vector<1x2x16x128xbf16>
    %100 = vector.extract_strided_slice %87 {offsets = [0, 1, 1, 0], sizes = [1, 2, 16, 128], strides = [1, 1, 1, 1]} : vector<1x3x26x128xbf16> to vector<1x2x16x128xbf16>
    %101 = vector.extract_strided_slice %87 {offsets = [0, 1, 2, 0], sizes = [1, 2, 16, 128], strides = [1, 1, 1, 1]} : vector<1x3x26x128xbf16> to vector<1x2x16x128xbf16>
    %102 = vector.extract_strided_slice %87 {offsets = [0, 1, 3, 0], sizes = [1, 2, 16, 128], strides = [1, 1, 1, 1]} : vector<1x3x26x128xbf16> to vector<1x2x16x128xbf16>
    %103 = vector.extract_strided_slice %87 {offsets = [0, 1, 4, 0], sizes = [1, 2, 16, 128], strides = [1, 1, 1, 1]} : vector<1x3x26x128xbf16> to vector<1x2x16x128xbf16>
    %104 = vector.extract_strided_slice %87 {offsets = [0, 1, 5, 0], sizes = [1, 2, 16, 128], strides = [1, 1, 1, 1]} : vector<1x3x26x128xbf16> to vector<1x2x16x128xbf16>
    %105 = vector.extract_strided_slice %87 {offsets = [0, 1, 6, 0], sizes = [1, 2, 16, 128], strides = [1, 1, 1, 1]} : vector<1x3x26x128xbf16> to vector<1x2x16x128xbf16>
    %106 = vector.extract_strided_slice %87 {offsets = [0, 1, 7, 0], sizes = [1, 2, 16, 128], strides = [1, 1, 1, 1]} : vector<1x3x26x128xbf16> to vector<1x2x16x128xbf16>
    %107 = vector.extract_strided_slice %87 {offsets = [0, 1, 8, 0], sizes = [1, 2, 16, 128], strides = [1, 1, 1, 1]} : vector<1x3x26x128xbf16> to vector<1x2x16x128xbf16>
    %108 = vector.extract_strided_slice %87 {offsets = [0, 1, 9, 0], sizes = [1, 2, 16, 128], strides = [1, 1, 1, 1]} : vector<1x3x26x128xbf16> to vector<1x2x16x128xbf16>
    %109 = vector.extract_strided_slice %87 {offsets = [0, 1, 10, 0], sizes = [1, 2, 16, 128], strides = [1, 1, 1, 1]} : vector<1x3x26x128xbf16> to vector<1x2x16x128xbf16>
    %110 = tpu.concatenate %88, %89, %90, %91, %92, %93, %94, %95, %96, %97, %98, %99, %100, %101, %102, %103 in 3 : vector<1x2x16x128xbf16>, vector<1x2x16x128xbf16>, vector<1x2x16x128xbf16>, vector<1x2x16x128xbf16>, vector<1x2x16x128xbf16>, vector<1x2x16x128xbf16>, vector<1x2x16x128xbf16>, vector<1x2x16x128xbf16>, vector<1x2x16x128xbf16>, vector<1x2x16x128xbf16>, vector<1x2x16x128xbf16>, vector<1x2x16x128xbf16>, vector<1x2x16x128xbf16>, vector<1x2x16x128xbf16>, vector<1x2x16x128xbf16>, vector<1x2x16x128xbf16> -> vector<1x2x16x2048xbf16>
    %111 = tpu.concatenate %104, %105, %106, %107, %108, %109 in 3 : vector<1x2x16x128xbf16>, vector<1x2x16x128xbf16>, vector<1x2x16x128xbf16>, vector<1x2x16x128xbf16>, vector<1x2x16x128xbf16>, vector<1x2x16x128xbf16> -> vector<1x2x16x768xbf16>
    %112 = tpu.concatenate %110, %111 in 3 : vector<1x2x16x2048xbf16>, vector<1x2x16x768xbf16> -> vector<1x2x16x2816xbf16>
    %113 = vector.shape_cast %112 : vector<1x2x16x2816xbf16> to vector<32x2816xbf16>
    %c0_15 = arith.constant 0 : index
    %c0_16 = arith.constant 0 : index
    %114 = vector.load %arg4[%c0_15, %c0_16] : memref<2816x128xbf16, #tpu.memory_space<vmem>>, vector<2816x128xbf16>
    %cst_17 = arith.constant dense<0.000000e+00> : vector<32x128xf32>
    %115 = tpu.matmul %113, %114, %cst_17 {dimension_numbers = #tpu.dot_dimension_numbers<[1], [0], [0], [1], [0, 0, 1, 1], [], []>} : vector<32x2816xbf16>, vector<2816x128xbf16>, vector<32x128xf32> -> vector<32x128xf32>
    %116 = vector.shape_cast %10 : vector<1x2x16x128xf32> to vector<32x128xf32>
    %117 = arith.truncf %116 : vector<32x128xf32> to vector<32x128xbf16>
    %c0_18 = arith.constant 0 : index
    %c0_19 = arith.constant 0 : index
    %118 = vector.load %arg5[%c0_18, %c0_19] : memref<128x128xbf16, #tpu.memory_space<vmem>>, vector<128x128xbf16>
    %cst_20 = arith.constant dense<0.000000e+00> : vector<32x128xf32>
    %119 = tpu.matmul %117, %118, %cst_20 {dimension_numbers = #tpu.dot_dimension_numbers<[1], [0], [0], [1], [0, 0, 1, 1], [], []>} : vector<32x128xbf16>, vector<128x128xbf16>, vector<32x128xf32> -> vector<32x128xf32>
    %cst_21 = arith.constant 0.699999988 : f32
    %120 = vector.broadcast %cst_21 : f32 to vector<32x128xf32>
    %121 = arith.mulf %119, %120 : vector<32x128xf32>
    %cst_22 = arith.constant 3.000000e-01 : f32
    %122 = vector.broadcast %cst_22 : f32 to vector<32x128xf32>
    %123 = arith.mulf %115, %122 : vector<32x128xf32>
    %124 = arith.addf %121, %123 : vector<32x128xf32>
    %cst_23 = arith.constant 1.31306434 : f32
    %125 = vector.broadcast %cst_23 : f32 to vector<32x128xf32>
    %126 = arith.mulf %124, %125 : vector<32x128xf32>
    %cst_24 = arith.constant -2.560000e+02 : f32
    %cst_25 = arith.constant 2.560000e+02 : f32
    %127 = vector.broadcast %cst_24 : f32 to vector<32x128xf32>
    %128 = arith.maximumf %127, %126 : vector<32x128xf32>
    %129 = vector.broadcast %cst_25 : f32 to vector<32x128xf32>
    %130 = arith.minimumf %129, %128 : vector<32x128xf32>
    %131 = vector.shape_cast %130 : vector<32x128xf32> to vector<1x2x16x128xf32>
    %c0_26 = arith.constant 0 : index
    %c0_27 = arith.constant 0 : index
    %c0_28 = arith.constant 0 : index
    %c0_29 = arith.constant 0 : index
    %132 = vector.load %arg6[%c0_26, %c0_27, %c0_28, %c0_29] : memref<1x2x16x128xf32, #tpu.memory_space<vmem>>, vector<1x2x16x128xf32>
    tpu.vector_store %arg6[%c0_26, %c0_27, %c0_28, %c0_29], %131 {strides = array<i32>} : memref<1x2x16x128xf32, #tpu.memory_space<vmem>>, vector<1x2x16x128xf32>,
    return
  }
  func.func @transform_0(%arg0: i32) -> (i32, i32, i32, i32) {
    %c0_i32 = arith.constant 0 : i32
    %c0_i32_0 = arith.constant 0 : i32
    %c0_i32_1 = arith.constant 0 : i32
    %c0_i32_2 = arith.constant 0 : i32
    return %arg0, %c0_i32, %c0_i32_0, %c0_i32_1 : i32, i32, i32, i32
  }
  func.func @transform_1(%arg0: i32) -> (i32, i32, i32) {
    %c0_i32 = arith.constant 0 : i32
    %c0_i32_0 = arith.constant 0 : i32
    %c0_i32_1 = arith.constant 0 : i32
    return %arg0, %c0_i32, %c0_i32_0 : i32, i32, i32
  }
  func.func @transform_2(%arg0: i32) -> (i32, i32) {
    %c0_i32 = arith.constant 0 : i32
    %c0_i32_0 = arith.constant 0 : i32
    %c0_i32_1 = arith.constant 0 : i32
    return %c0_i32, %c0_i32_0 : i32, i32
  }
  func.func @transform_3(%arg0: i32) -> (i32, i32) {
    %c0_i32 = arith.constant 0 : i32
    %c0_i32_0 = arith.constant 0 : i32
    %c0_i32_1 = arith.constant 0 : i32
    return %c0_i32, %c0_i32_0 : i32, i32
  }
  func.func @transform_4(%arg0: i32) -> (i32, i32) {
    %c0_i32 = arith.constant 0 : i32
    %c0_i32_0 = arith.constant 0 : i32
    %c0_i32_1 = arith.constant 0 : i32
    return %c0_i32, %c0_i32_0 : i32, i32
  }
  func.func @transform_5(%arg0: i32) -> (i32, i32, i32, i32) {
    %c0_i32 = arith.constant 0 : i32
    %c0_i32_0 = arith.constant 0 : i32
    %c0_i32_1 = arith.constant 0 : i32
    %c0_i32_2 = arith.constant 0 : i32
    return %arg0, %c0_i32, %c0_i32_0, %c0_i32_1 : i32, i32, i32, i32
  }
}

</mosaic_0001>

<bundles_post_ra>
// kernel: tpu_custom_call.1
= control target key start
LH: loop header
LB: loop body
LE: loop exit
PB: predicated region body
PF: predicated region fallthrough
CT: control target
= control target key end

     0   :  { %s8499_s0 = inlined_call_operand.hbm [shape: f32[2,2,16,128], index: 0, kind: input, shape index: {}]   ;;  %s8500_s1 = inlined_call_operand.hbm [shape: f32[2,1,128], index: 1, kind: input, shape index: {}]   ;;  %s8501_s2 = inlined_call_operand.hbm [shape: bf16[2816,128], index: 2, kind: input, shape index: {}]   ;;  %s8502_s3 = inlined_call_operand.hbm [shape: bf16[2816,128], index: 3, kind: input, shape index: {}]   ;;  %s8503_s4 = inlined_call_operand.hbm [shape: bf16[128,128], index: 4, kind: input, shape index: {}]   ;;  %s8504_s5 = inlined_call_operand.hbm [shape: f32[2,2,16,128], index: 5, kind: output, shape index: {}]  }
   0x1   :  { %8524 = sst [smem:[#allocation36_spill]] %s8499_s0 }
   0x2   :  { %8525 = sst [smem:[#allocation37_spill]] %s8501_s2 }
   0x3   :  { %10 = vsyncpa [#allocation3], 0 }
   0x4   :  { %12 = vsyncpa [#allocation3 + $0x1], 0 }
   0x5   :  { %13 = vsyncpa [#allocation6], 0 }
   0x6   :  { %15 = vsyncpa [#allocation6 + $0x1], 0 }
   0x7   :  { %16 = vsyncpa [#allocation9], 0 }
   0x8   :  { %17 = vsyncpa [#allocation4], 0 }
   0x9   :  { %19 = vsyncpa [#allocation4 + $0x1], 0  ;;  %s7272_s18 = smov 0   ;;  %s7274_s19 = smov 0  }
   0xa   :  { %s7276_s20 = smov 0   ;;  %s7278_s21 = smov 0  }
   0xb LB: > { %s7293_s22 = sadd.s32 4294967295, %s7228_s21   ;;  %s5476_s23 = sadd.s32 4294967294, %s7228_s21   ;;  %s7228_s21 = sphi %s7278_s21, %s8629_s21   ;;  %s7224_s20 = sphi %s7276_s20, %s8628_s20   ;;  %s7220_s19 = sphi %s7274_s19, %s8627_s19   ;;  %s7216_s18 = sphi %s7272_s18, %s8626_s18  }
   0xc   : > { %p45_p0 = scmp.ne.s32.totalorder %s7220_s19, %s7216_s18  ;;  %p8505_p1 = scmp.eq.s32.totalorder %s7293_s22, 0 }
   0xd   : > { %p164_p3 = scmp.eq.s32.totalorder %s5476_s23, 1  ;;  %p5477_p5 = scmp.ge.s32.totalorder %s7228_s21, 1 }
   0xe   : > { %p7302_p4 = por %p8505_p1, %p45_p0  ;;  %p171_p7 = scmp.lt.s32.totalorder %s7228_s21, 3 }
   0xf   : > { %p7307_p6 = por %p164_p3, %p45_p0  ;;  %s7230_s27 = smov [#allocation7]  }
  0x10   : > { %s8526_s24 = scalar_select %p7302_p4, 1, 0 }
  0x11   : > { %s8527_s25 = scalar_select %p7307_p6, 1, 0 }
  0x12   : > { %p7312_p8 = pnand %p5477_p5, %p171_p7  ;;  %s183_s28 = sshll.u32 %s7230_s27, 4  ;;  %s184_s28 = int_to_ptr.vmem [resolvable:$true] %s183_s28 }
  0x13   : > { %s7231_s30 = smov [#allocation8]   ;;  %s7232_s7 = smov [#allocation10]  }
  0x14   : > { %s8528_s26 = scalar_select %p7312_p8, 1, 0 }
  0x15   : > { %p6536_p9 = pneg %p7312_p8  ;;  %s196_s6 = sshll.u32 %s7231_s30, 4  ;;  %s197_s6 = int_to_ptr.vmem [resolvable:$true] %s196_s6 }
  0x16   : > { %s209_s8 = sshll.u32 %s7232_s7, 4  ;;  %s7029_s9 = scalar_lea.vmem %s184_s28, 22528  ;;  %s210_s8 = int_to_ptr.vmem [resolvable:$true] %s209_s8 }
  0x17   : > { %p7321_p11 = pnand %p6536_p9, %p8505_p1  ;;  %p7030_p13 = scmp.ne.s32.totalorder %s184_s28, %s7029_s9 }
  0x18   : > { %p7037_p5 = scmp.lt.s32.totalorder %s184_s28, %s184_s28  ;;  %p7038_p7 = scmp.lt.s32.totalorder %s7029_s9, %s7029_s9 }
  0x19   : > { %p7020_p12 = pneg %p7321_p11 }
  0x1a   : > { %p7039_p9 = por %p7038_p7, %p7037_p5 }
  0x1b   : > { %p7032_p0 = pnand %p7030_p13, %p7020_p12 }
  0x1d   : > { %p7033_p3 = pneg %p7032_p0 }
  0x1f   : > { %p7040_p10 = pnand %p7039_p9, %p7033_p3 }
  0x21   : > { %7043 = shalt.err (!%p7040_p10)
}
  0x22   : > { %s7233_s10 = smov 64   ;;  %s7234_s11 = smov 4  }
  0x23   : > { %s8530_s2 = sld [smem:[#allocation37_spill]]  ;;  %s7055_s14 = scalar_lea.vmem %s197_s6, 22528 }
  0x24   : > { %p7056_p1 = scmp.ne.s32.totalorder %s197_s6, %s7055_s14  ;;  %p7063_p2 = scmp.lt.s32.totalorder %s197_s6, %s197_s6 }
  0x25   : > { %p7064_p6 = scmp.lt.s32.totalorder %s7055_s14, %s7055_s14 }
  0x26   : > { %p7058_p13 = pnand %p7056_p1, %p7020_p12 }
  0x27   : > { %p7065_p5 = por %p7064_p6, %p7063_p2 }
  0x28   : > { %p7059_p0 = pneg %p7058_p13 }
  0x29   : > { %6539 = dma.hbm_to_vmem [thread:$0]  (!%p7321_p11), %s8530_s2, 22528, %s184_s28, [#allocation6], %s7233_s10, %s7233_s10, %s7234_s11  }
  0x2a   : > { %p7066_p3 = pnand %p7065_p5, %p7059_p0 }
  0x2c   : > { %7069 = shalt.err (!%p7066_p3)
}
  0x2d   : > { %6542 = dma.hbm_to_vmem [thread:$0]  (!%p7321_p11), %s8502_s3, 22528, %s197_s6, [#allocation9], %s7233_s10, %s7233_s10, %s7234_s11  }
  0x2e   : > { %s7081_s17 = scalar_lea.vmem %s210_s8, 1024  ;;  %p7089_p9 = scmp.lt.s32.totalorder %s210_s8, %s210_s8 }
  0x2f   : > { %p7082_p10 = scmp.ne.s32.totalorder %s210_s8, %s7081_s17  ;;  %p7090_p13 = scmp.lt.s32.totalorder %s7081_s17, %s7081_s17 }
  0x31   : > { %p7084_p7 = pnand %p7082_p10, %p7020_p12  ;;  %p7091_p4 = por %p7090_p13, %p7089_p9 }
  0x33   : > { %p7085_p1 = pneg %p7084_p7 }
  0x35   : > { %p7092_p2 = pnand %p7091_p4, %p7085_p1 }
  0x37   : > { %7095 = shalt.err (!%p7092_p2)
}
  0x38   : > { %6545 = dma.hbm_to_vmem [thread:$0]  (!%p7321_p11), %s8503_s4, 1024, %s210_s8, [#allocation9], %s7233_s10, %s7233_s10, %s7234_s11  }
  0x39   : > { %s7352_s28 = sadd.s32 1, %s7228_s21   ;;  %s32_s29 = sadd.s32 1, %s7224_s20 }
  0x3a   : > { %s29_s30 = ssub.s32 %s7228_s21, %s7352_s28  ;;  %p39_p6 = scmp.ne.s32.totalorder %s7224_s20, %s7220_s19 }
  0x3b   : > { %p30_p4 = scmp.eq.s32.totalorder %s29_s30, 0  ;;  %p40_p12 = scmp.eq.s32.totalorder %s7228_s21, 0 }
  0x3c   : > { %p6560_p0 = scmp.lt.s32.totalorder %s7228_s21, 2  ;;  %p8531_p3 = scmp.eq.s32.totalorder %s7293_s22, 1 }
  0x3d   : > { %s7362_s6 = scalar_select %p30_p4, %s7224_s20, %s32_s29  }
  0x3e   : > { %p41_p5 = por %p40_p12, %p39_p6  ;;  %p7366_p10 = por %p8531_p3, %p39_p6 }
  0x3f   : > { %s7371_s9 = sand.u32 1, %s7224_s20   ;;  %s5870_s8 = sshll.u32 %s7228_s21, 9 }
  0x40   : > { %s8532_s7 = scalar_select %p7366_p10, 1, 0 }
  0x41   : > { %s5482_s10 = sshll.u32 %s7371_s9, 5  ;;  %s8533_s0 = sld [smem:[#allocation36_spill]] }
  0x42   : > { %s227_s14 = scalar_lea.vmem [#allocation2], %s5482_s10  ;;  %p7380_p11 = pnand %p6560_p0, %p41_p5 }
  0x43   : > { %s234_s15 = sshll.u32 %s227_s14, 4  ;;  %s224_s17 = scalar_lea.sflag [#allocation3], %s7371_s9  ;;  %s7384_s15 = int_to_ptr.vmem [resolvable:$true] %s234_s15 }
  0x44   : > { %p7098_p1 = pneg %p7380_p11 }
  0x47   : > { %s7378_s13 = scalar_lea.hbm %s8533_s0, %s5870_s8  ;;  %s7101_s29 = scalar_lea.hbm %s8533_s0, 1024 }
  0x48   : > { %s7096_s23 = scalar_lea.hbm %s7378_s13, 512  ;;  %p7102_p2 = scmp.lt.s32.totalorder %s7378_s13, %s8533_s0 }
  0x49   : > { %p7097_p7 = scmp.ne.s32.totalorder %s7378_s13, %s7096_s23  ;;  %p7103_p4 = scmp.lt.s32.totalorder %s7101_s29, %s7096_s23 }
  0x4b   : > { %p7099_p9 = pnand %p7098_p1, %p7097_p7  ;;  %p7104_p6 = por %p7103_p4, %p7102_p2 }
  0x4d   : > { %p7100_p13 = pneg %p7099_p9 }
  0x4f   : > { %p7105_p12 = pnand %p7104_p6, %p7100_p13 }
  0x51   : > { %7108 = shalt.err (!%p7105_p12)
}
  0x52   : > { %s7109_s11 = scalar_lea.vmem %s7384_s15, 512  ;;  %s7235_s12 = smov [#allocation2]  }
  0x53   : > { %p7110_p0 = scmp.ne.s32.totalorder %s7384_s15, %s7109_s11  ;;  %s7114_s14 = sshll.u32 %s7235_s12, 4  ;;  %s7115_s14 = int_to_ptr.vmem [resolvable:$false] %s7114_s14 }
  0x54   : > { %s7116_s27 = scalar_lea.vmem %s7115_s14, 1024  ;;  %p7117_p7 = scmp.lt.s32.totalorder %s7384_s15, %s7115_s14 }
  0x55   : > { %p7112_p5 = pnand %p7110_p0, %p7098_p1  ;;  %p7118_p9 = scmp.lt.s32.totalorder %s7116_s27, %s7109_s11 }
  0x57   : > { %p7113_p3 = pneg %p7112_p5  ;;  %p7119_p10 = por %p7118_p9, %p7117_p7 }
  0x59   : > { %p7120_p2 = pnand %p7119_p10, %p7113_p3 }
  0x5b   : > { %7123 = shalt.err (!%p7120_p2)
}
  0x5c   : > { %s7236_s23 = smov 128   ;;  %s7237_s30 = smov 8  }
  0x5d   : > { %6549 = dma.hbm_to_vmem [thread:$0]  (!%p7380_p11), %s7378_s13, 512, %s7384_s15, %s224_s17, %s7236_s23, %s7236_s23, %s7237_s30  }
  0x5e   : > { %s244_s29 = sand.u32 1, %s7228_s21   ;;  %s5485_s8 = sshll.u32 %s7228_s21, 4 }
  0x5f   : > { %s7418_s12 = scalar_lea.hbm %s8500_s1, %s5485_s8  ;;  %s247_s14 = scalar_lea.vmem [#allocation5], %s7371_s9 }
  0x60   : > { %s254_s27 = sshll.u32 %s247_s14, 4  ;;  %s245_s0 = scalar_lea.sflag [#allocation6], %s244_s29  ;;  %s255_s27 = int_to_ptr.vmem [resolvable:$true] %s254_s27 }
  0x61   : > { %s7124_s2 = scalar_lea.hbm %s7418_s12, 16  ;;  %s7129_s17 = scalar_lea.hbm %s8500_s1, 32 }
  0x62   : > { %p7125_p10 = scmp.ne.s32.totalorder %s7418_s12, %s7124_s2  ;;  %p7130_p6 = scmp.lt.s32.totalorder %s7418_s12, %s8500_s1 }
  0x63   : > { %p7131_p12 = scmp.lt.s32.totalorder %s7129_s17, %s7124_s2 }
  0x64   : > { %p7127_p13 = pnand %p7125_p10, %p7098_p1 }
  0x65   : > { %p7132_p0 = por %p7131_p12, %p7130_p6 }
  0x66   : > { %p7128_p4 = pneg %p7127_p13 }
  0x68   : > { %p7133_p5 = pnand %p7132_p0, %p7128_p4 }
  0x6a   : > { %7136 = shalt.err (!%p7133_p5)
}
  0x6b   : > { %s7137_s9 = scalar_lea.vmem %s255_s27, 16  ;;  %s7238_s29 = smov [#allocation5]  }
  0x6c   : > { %p7138_p3 = scmp.ne.s32.totalorder %s255_s27, %s7137_s9  ;;  %s7142_s8 = sshll.u32 %s7238_s29, 4  ;;  %s7143_s8 = int_to_ptr.vmem [resolvable:$false] %s7142_s8 }
  0x6d   : > { %s7144_s10 = scalar_lea.vmem %s7143_s8, 32  ;;  %p7145_p2 = scmp.lt.s32.totalorder %s255_s27, %s7143_s8 }
  0x6e   : > { %p7140_p7 = pnand %p7138_p3, %p7098_p1  ;;  %p7146_p10 = scmp.lt.s32.totalorder %s7144_s10, %s7137_s9 }
  0x70   : > { %p7141_p9 = pneg %p7140_p7  ;;  %p7147_p13 = por %p7146_p10, %p7145_p2 }
  0x72   : > { %p7148_p8 = pnand %p7147_p13, %p7141_p9 }
  0x74   : > { %7151 = shalt.err (!%p7148_p8)
}
  0x75   : > { %6552 = dma.hbm_to_vmem [thread:$0]  (!%p7380_p11), %s7418_s12, 16, %s255_s27, %s245_s0  }
  0x76   : > { %p8535_p4 = scmp.ne.s32.totalorder %s8528_s26, 0 }
  0x78   : > { %263 = sbr.rel (%p8535_p4) target bundleno = 1195 (0x4ab), region = 40 }
  0x7d   : > { %s7442_s2 = sand.u32 1, %s7220_s19   ;;  %p8536_p8 = scmp.ne.s32.totalorder %s8526_s24, 0 }
  0x7e   : > { %s5487_s11 = sshll.u32 %s7442_s2, 5  ;;  %s266_s14 = scalar_lea.sflag [#allocation3], %s7442_s2 }
  0x7f   : > { %s7448_s13 = scalar_lea.vmem [#allocation2], %s5487_s11 }
  0x80   : > { %7195 = dma.done.wait (%p8536_p8), %s266_s14, 512  }
  0x81   : > { %7197 = vsyncadd (%p8536_p8), %s266_s14, 4294966784  ;;  %s274_s0 = sand.u32 1, %s7293_s22   ;;  %s277_s16 = scalar_lea.vmem [#allocation5], %s7442_s2 }
  0x82   : > { %s275_s26 = scalar_lea.sflag [#allocation6], %s274_s0 }
  0x83   : > { %7199 = dma.done.wait (%p8536_p8), %s275_s26, 16  }
  0x84   : > { %7201 = vsyncadd (%p8536_p8), %s275_s26, 4294967280  ;;  %p8537_p11 = scmp.eq.s32.totalorder %s7293_s22, 0 }
  0x86   : > { %7203 = dma.done.wait (%p8537_p11), [#allocation6], 22528   ;;  %p8538_p1 = pmov %p8537_p11 }
  0x88   : > { %7205 = vsyncadd (%p8538_p1), [#allocation6], 4294944768  ;;  %p8539_p6 = pmov %p8538_p1 }
  0x89   : > { %p8540_p12 = pmov %p8538_p1 }
  0x8a   : > { %7207 = dma.done.wait (%p8539_p6), [#allocation9], 23552  }
  0x8b   : > { %7209 = vsyncadd (%p8540_p12), [#allocation9], 4294943744  ;;  %v323_v0 = vld [vmem:[%s7448_s13 + $0x10] sm:$0xff]  ;;  %v321_v1 = vld [vmem:[%s7448_s13] sm:$0xff]  ;;  %vm462_vm8 = vsmask.f32 256 }
  0x8c   : > { %v324_v2 = vld [vmem:[%s7448_s13 + $0x18] sm:$0xff]  ;;  %v327_v3 = vmul.f32 %v323_v0, %v323_v0  ;;  %v325_v4 = vmul.f32 %v321_v1, %v321_v1  ;;  %v322_v5 = vld [vmem:[%s7448_s13 + $0x8] sm:$0xff]  ;;  %vm461_vm9 = vcmask 1040384   ;;  %vm475_vm10 = vcmask 1041408   ;;  %s319_s24 = scalar_lea.vmem [#allocation11], %s5487_s11  ;;  %s5871_s27 = sshll.u32 %s7293_s22, 9 }
  0x8d   : > { %v328_v6 = vmul.f32 %v324_v2, %v324_v2  ;;  %v326_v7 = vmul.f32 %v322_v5, %v322_v5  ;;  %v6606_v8 = vld [vmem:[#allocation7 + $0x78] sm:$0xff]   ;;  %v6610_v12 = vld [vmem:[#allocation7 + $0x70] sm:$0xff]   ;;  %v6614_v16 = vld [vmem:[#allocation7 + $0x68] sm:$0xff]   ;;  %vm476_vm11 = vsmask.f32 1280  ;;  %vm489_vm13 = vcmask 1042432   ;;  %s8456_s23 = scalar_lea.hbm %s8504_s5, %s5871_s27 }
  0x8e   : > { %333 = vadd.xlane.f32.xlu1 %v327_v3  ;;  %329 = vadd.xlane.f32.xlu0 %v325_v4  ;;  %v6607_v9 = vld [vmem:[#allocation7 + $0x38] sm:$0xff]   ;;  %v6611_v13 = vld [vmem:[#allocation7 + $0x30] sm:$0xff]   ;;  %v6615_v17 = vld [vmem:[#allocation7 + $0x28] sm:$0xff]   ;;  %vm490_vm12 = vsmask.f32 2304  ;;  %vm505_vm14 = vcmask 1043456  }
  0x8f   : > { %5872 = vmatprep.subr.bf16.mxu0 %v6606_v8  ;;  %v6608_v10 = vld [vmem:[#allocation7 + $0xf8] sm:$0xff]   ;;  %v6612_v14 = vld [vmem:[#allocation7 + $0xf0] sm:$0xff]   ;;  %v6616_v18 = vld [vmem:[#allocation7 + $0xe8] sm:$0xff]   ;;  %vm506_vm15 = vsmask.f32 3328  ;;  %s5355_s12 = sshll.u32 %s319_s24, 4  ;;  %s8451_s12 = int_to_ptr.vmem [resolvable:$true] %s5355_s12 }
  0x90   : > { %5873 = vmatpush3.bf16.msra.mxu0 %v6607_v9  ;;  %v6609_v11 = vld [vmem:[#allocation7 + $0xb8] sm:$0xff]   ;;  %5900 = vmatprep.subr.bf16.mxu1 %v6608_v10  ;;  %v6613_v15 = vld [vmem:[#allocation7 + $0xb0] sm:$0xff]   ;;  %v6617_v19 = vld [vmem:[#allocation7 + $0xa8] sm:$0xff]   ;;  %s5342_s30 = scalar_lea.sflag [#allocation4], %s7442_s2  ;;  %s7152_s9 = scalar_lea.vmem %s8451_s12, 512 }
  0x91   : > { %5901 = vmatpush3.bf16.msra.mxu1 %v6609_v11  ;;  %5874 = vmatprep.subr.bf16.mxu0 %v6610_v12  ;;  %v6618_v20 = vld [vmem:[#allocation7 + $0x60] sm:$0xff]   ;;  %v6622_v24 = vld [vmem:[#allocation7 + $0x58] sm:$0xff]   ;;  %v6626_v28 = vld [vmem:[#allocation7 + $0x50] sm:$0xff]   ;;  %p7153_p0 = scmp.ne.s32.totalorder %s8451_s12, %s7152_s9  ;;  %p8623_p5 = scmp.ne.s32.totalorder %s8532_s7, 0 }
  0x92   : > { %335 = vadd.xlane.f32.xlu1 %v328_v6  ;;  %331 = vadd.xlane.f32.xlu0 %v326_v7  ;;  %v6619_v21 = vld [vmem:[#allocation7 + $0x20] sm:$0xff]   ;;  %v6623_v25 = vld [vmem:[#allocation7 + $0x18] sm:$0xff]   ;;  %v6627_v29 = vld [vmem:[#allocation7 + $0x10] sm:$0xff]   ;;  %s7239_s22 = smov [#allocation11]  }
  0x93   : > { %5902 = vmatprep.subr.bf16.mxu1 %v6612_v14  ;;  %v6620_v22 = vld [vmem:[#allocation7 + $0xe0] sm:$0xff]   ;;  %v6624_v26 = vld [vmem:[#allocation7 + $0xd8] sm:$0xff]   ;;  %v6628_v30 = vld [vmem:[#allocation7 + $0xd0] sm:$0xff]   ;;  %p7154_p3 = pnand %p7153_p0, %p8623_p5  ;;  %s7156_s29 = sshll.u32 %s7239_s22, 4  ;;  %s7157_s29 = int_to_ptr.vmem [resolvable:$false] %s7156_s29 }
  0x94   : > { %5875 = vmatpush3.bf16.msra.mxu0 %v6611_v13  ;;  %v6621_v23 = vld [vmem:[#allocation7 + $0xa0] sm:$0xff]   ;;  %v6625_v27 = vld [vmem:[#allocation7 + $0x98] sm:$0xff]   ;;  %v6630_v31 = vld [vmem:[#allocation7 + $0x48] sm:$0xff]   ;;  %s7158_s8 = scalar_lea.vmem %s7157_s29, 1024  ;;  %p7159_p9 = scmp.lt.s32.totalorder %s8451_s12, %s7157_s29 }
  0x95   : > { %5903 = vmatpush3.bf16.msra.mxu1 %v6613_v15  ;;  %5876 = vmatprep.subr.bf16.mxu0 %v6614_v16  ;;  %v6629_v32 = vld [vmem:[#allocation7 + $0x90] sm:$0xff]   ;;  %v6632_v33 = vld [vmem:[#allocation7 + $0xc8] sm:$0xff]   ;;  %v6634_v35 = vld [vmem:[#allocation7 + $0x40] sm:$0xff]   ;;  %p7155_p7 = pneg %p7154_p3  ;;  %p7160_p2 = scmp.lt.s32.totalorder %s7158_s8, %s7152_s9 }
  0x96   : > { %5904 = vmatprep.subr.bf16.mxu1 %v6616_v18  ;;  %v6631_v34 = vld [vmem:[#allocation7 + $0x8] sm:$0xff]   ;;  %v6636_v37 = vld [vmem:[#allocation7 + $0xc0] sm:$0xff]   ;;  %v6638_v40 = vld [vmem:[#allocation7 + $0x178] sm:$0xff]  }
  0x97   : > { %v6633_v36 = vld [vmem:[#allocation7 + $0x88] sm:$0xff]   ;;  %v6635_v38 = vld [vmem:[#allocation7] sm:$0xff]   ;;  %v6640_v41 = vld [vmem:[#allocation7 + $0x1f8] sm:$0xff]   ;;  %p7161_p10 = por %p7160_p2, %p7159_p9 }
  0x98   : > { %5877 = vmatpush3.bf16.msra.mxu0 %v6615_v17  ;;  %v6637_v39 = vld [vmem:[#allocation7 + $0x80] sm:$0xff]   ;;  %v7014_v12 = vld [vmem:[%s7448_s13 + $0x10] sm:$0xff] }
  0x99   : > { %5905 = vmatpush3.bf16.msra.mxu1 %v6617_v19  ;;  %5878 = vmatprep.subr.bf16.mxu0 %v6618_v20  ;;  %v7015_v14 = vld [vmem:[%s7448_s13] sm:$0xff]  ;;  %v7016_v20 = vld [vmem:[%s7448_s13 + $0x18] sm:$0xff]  ;;  %p7162_p13 = pnand %p7161_p10, %p7155_p7 }
  0x9a   : > { %5906 = vmatprep.subr.bf16.mxu1 %v6620_v22  ;;  %v7017_v22 = vld [vmem:[%s7448_s13 + $0x8] sm:$0xff] }
  0x9c   : > { %5879 = vmatpush3.bf16.msra.mxu0 %v6619_v21 }
  0x9d   : > { %5907 = vmatpush3.bf16.msra.mxu1 %v6621_v23  ;;  %5880 = vmatprep.subr.bf16.mxu0 %v6622_v24 }
  0x9e   : > { %5908 = vmatprep.subr.bf16.mxu1 %v6624_v26 }
  0xa0   : > { %5881 = vmatpush3.bf16.msra.mxu0 %v6623_v25 }
  0xa1   : > { %5882 = vmatprep.subr.bf16.mxu0 %v6626_v28  ;;  %5909 = vmatpush3.bf16.msra.mxu1 %v6625_v27 }
  0xa2   : > { %5910 = vmatprep.subr.bf16.mxu1 %v6628_v30 }
  0xa4   : > { %5883 = vmatpush3.bf16.msra.mxu0 %v6627_v29 }
  0xa5   : > { %5884 = vmatprep.subr.bf16.mxu0 %v6630_v31  ;;  %5911 = vmatpush3.bf16.msra.mxu1 %v6629_v32 }
  0xa6   : > { %5912 = vmatprep.subr.bf16.mxu1 %v6632_v33 }
  0xa8   : > { %5885 = vmatpush3.bf16.msra.mxu0 %v6631_v34 }
  0xa9   : > { %5886 = vmatprep.subr.bf16.mxu0 %v6634_v35  ;;  %5913 = vmatpush3.bf16.msra.mxu1 %v6633_v36 }
  0xaa   : > { %5914 = vmatprep.subr.bf16.mxu1 %v6636_v37 }
  0xac   : > { %5887 = vmatpush3.bf16.msra.mxu0 %v6635_v38 }
  0xad   : > { %5915 = vmatpush3.bf16.msra.mxu1 %v6637_v39  ;;  %5928 = vmatprep.subr.bf16.mxu0 %v6638_v40 }
  0xae   : > { %5956 = vmatprep.subr.bf16.mxu1 %v6640_v41 }
 0x117   : > { %v334_v42 = vpop.xlane.xlu1 %333  ;;  %v330_v43 = vpop.xlane.xlu0 %329 }
 0x118   : > { %v339_v44 = vmul.f32 0.125, %v334_v42  ;;  %v337_v45 = vmul.f32 0.125, %v330_v43 }
 0x11a   : > { %6966 = vrsqrt.f32 %v339_v44  ;;  %vm357_vm0 = vcmp.eq.f32.partialorder %v339_v44, inf  ;;  %vm359_vm1 = vcmp.eq.f32.partialorder %v339_v44, 0.0  ;;  %v360_v51 = vand.u32 2147483648, %v339_v44 }
 0x11b   : > { %6968 = vrsqrt.f32 %v337_v45  ;;  %v336_v46 = vpop.xlane.xlu1 %335  ;;  %v332_v47 = vpop.xlane.xlu0 %331  ;;  %vm343_vm2 = vcmp.eq.f32.partialorder %v337_v45, inf  ;;  %vm345_vm3 = vcmp.eq.f32.partialorder %v337_v45, 0.0  ;;  %v346_v54 = vand.u32 2147483648, %v337_v45 }
 0x11c   : > { %v340_v48 = vmul.f32 0.125, %v336_v46  ;;  %v338_v49 = vmul.f32 0.125, %v332_v47 }
 0x11e   : > { %6970 = vrsqrt.f32 %v340_v48  ;;  %vm364_vm4 = vcmp.eq.f32.partialorder %v340_v48, inf  ;;  %vm366_vm5 = vcmp.eq.f32.partialorder %v340_v48, 0.0  ;;  %v367_v60 = vand.u32 2147483648, %v340_v48 }
 0x11f   : > { %6972 = vrsqrt.f32 %v338_v49  ;;  %vm350_vm6 = vcmp.eq.f32.partialorder %v338_v49, inf  ;;  %v353_v1 = vand.u32 2147483648, %v338_v49  ;;  %vm352_vm7 = vcmp.eq.f32.partialorder %v338_v49, 0.0 }
 0x127   : > { %v6967_v50 = vpop.eup %6966 }
 0x128   : > { %v6969_v52 = vpop.eup %6968  ;;  %v356_v53 = vmul.f32 %v6967_v50, %v339_v44 }
 0x129   : > { %v342_v55 = vmul.f32 %v6969_v52, %v337_v45 }
 0x12a   : > { %v358_v56 = vsel %vm357_vm0, %v339_v44, %v356_v53  ;;  %vm520_vm0 = vsmask.f32 4352 }
 0x12b   : > { %v6971_v57 = vpop.eup %6970  ;;  %v361_v58 = vsel %vm359_vm1, %v360_v51, %v358_v56  ;;  %v344_v59 = vsel %vm343_vm2, %v337_v45, %v342_v55  ;;  %vm7500_vm1 = vmand %vm461_vm9, %vm462_vm8  ;;  %vm519_vm2 = vcmask 1044480   ;;  %vm564_vm8 = vsmask.f32 6400 }
 0x12c   : > { %v6973_v61 = vpop.eup %6972  ;;  %v371_v62 = vadd.f32 0.0001, %v361_v58  ;;  %v347_v63 = vsel %vm345_vm3, %v346_v54, %v344_v59  ;;  %v363_v0 = vmul.f32 %v6971_v57, %v340_v48  ;;  %v8545_v54 = vmov 0  ;;  %vm7506_vm3 = vmand %vm475_vm10, %vm476_vm11 }
 0x12d   : > { %v369_v2 = vadd.f32 0.0001, %v347_v63  ;;  %v349_v3 = vmul.f32 %v6973_v61, %v338_v49  ;;  %v8546_v54 = vsel %vm7500_vm1, 4294967295, %v8545_v54  ;;  %vm8509_vm11 = vcmask 1046528  }
 0x12e   : > { %6974 = vrcp.f32 %v371_v62  ;;  %v365_v4 = vsel %vm364_vm4, %v340_v48, %v363_v0  ;;  %8547 = vst [vmem:[#allocation21_spill] sm:$0xff] %v8546_v54  ;;  %vm7514_vm4 = vmand %vm489_vm13, %vm490_vm12  ;;  %vm594_vm12 = vsmask.f32 5376  ;;  %v6800_v54 = vld [vmem:[#allocation8 + $0xd8] sm:$0xff]  }
 0x12f   : > { %6976 = vrcp.f32 %v369_v2  ;;  %v368_v5 = vsel %vm366_vm5, %v367_v60, %v365_v4  ;;  %v351_v6 = vsel %vm350_vm6, %v338_v49, %v349_v3  ;;  %v8548_v2 = vmov 0  ;;  %vm7523_vm6 = vmand %vm505_vm14, %vm506_vm15 }
 0x130   : > { %v372_v7 = vadd.f32 0.0001, %v368_v5  ;;  %v354_v8 = vsel %vm352_vm7, %v353_v1, %v351_v6  ;;  %v8549_v2 = vsel %vm7506_vm3, 4294967295, %v8548_v2  ;;  %v8551_v6 = vmov 0  ;;  %vm7532_vm7 = vmand %vm519_vm2, %vm520_vm0 }
 0x131   : > { %v370_v9 = vadd.f32 0.0001, %v354_v8  ;;  %8550 = vst [vmem:[#allocation22_spill] sm:$0xff] %v8549_v2  ;;  %v8552_v6 = vsel %vm7514_vm4, 4294967295, %v8551_v6  ;;  %vm524_vm5 = vsmask.f32 7424 }
 0x132   : > { %6978 = vrcp.f32 %v372_v7  ;;  %8553 = vst [vmem:[#allocation23_spill] sm:$0xff] %v8552_v6  ;;  %v6797_v6 = vld [vmem:[#allocation8 + $0xa0] sm:$0xff]   ;;  %v6798_v2 = vld [vmem:[#allocation8 + $0x58] sm:$0xff]  }
 0x133   : > { %6980 = vrcp.f32 %v370_v9 }
 0x13b   : > { %v6975_v10 = vpop.eup %6974 }
 0x13c   : > { %v6977_v11 = vpop.eup %6976  ;;  %v7475_v13 = vmul.f32 %v7014_v12, %v6975_v10 }
 0x13d   : > { %v7478_v15 = vmul.f32 %v7015_v14, %v6977_v11  ;;  %v8554_v14 = vmov 0 }
 0x13e   : > { %8541 = vst [vmem:[#allocation17_spill] sm:$0xff] %v7475_v13  ;;  %v5494_v16 = vmul.f32 -1.442695, %v7475_v13  ;;  %v8555_v14 = vsel %vm7523_vm6, 4294967295, %v8554_v14 }
 0x13f   : > { %8542 = vst [vmem:[#allocation18_spill] sm:$0xff] %v7478_v15  ;;  %v6979_v17 = vpop.eup %6978  ;;  %v5492_v18 = vmul.f32 -1.442695, %v7478_v15  ;;  %8556 = vst [vmem:[#allocation24_spill] sm:$0xff] %v8555_v14  ;;  %v6791_v14 = vld [vmem:[#allocation8 + $0x28] sm:$0xff]  }
 0x140   : > { %v6981_v19 = vpop.eup %6980  ;;  %6982 = vpow2.f32 %v5494_v16  ;;  %v7483_v21 = vmul.f32 %v7016_v20, %v6979_v17 }
 0x141   : > { %6984 = vpow2.f32 %v5492_v18  ;;  %v7486_v23 = vmul.f32 %v7017_v22, %v6981_v19  ;;  %v8557_v22 = vmov 0 }
 0x142   : > { %8543 = vst [vmem:[#allocation19_spill] sm:$0xff] %v7483_v21  ;;  %v5495_v24 = vmul.f32 -1.442695, %v7483_v21  ;;  %v8558_v22 = vsel %vm7532_vm7, 4294967295, %v8557_v22 }
 0x143   : > { %8544 = vst [vmem:[#allocation20_spill] sm:$0xff] %v7486_v23  ;;  %v5493_v26 = vmul.f32 -1.442695, %v7486_v23  ;;  %8559 = vst [vmem:[#allocation25_spill] sm:$0xff] %v8558_v22 }
 0x144   : > { %6986 = vpow2.f32 %v5495_v24 }
 0x145   : > { %6988 = vpow2.f32 %v5493_v26 }
 0x14d   : > { %v6983_v28 = vpop.eup %6982 }
 0x14e   : > { %v6985_v29 = vpop.eup %6984  ;;  %v395_v30 = vadd.f32 1.0, %v6983_v28 }
 0x14f   : > { %v393_v31 = vadd.f32 1.0, %v6985_v29 }
 0x150   : > { %6990 = vrcp.f32 %v395_v30 }
 0x151   : > { %v6987_v32 = vpop.eup %6986  ;;  %6992 = vrcp.f32 %v393_v31 }
 0x152   : > { %v6989_v33 = vpop.eup %6988  ;;  %v396_v34 = vadd.f32 1.0, %v6987_v32 }
 0x153   : > { %v394_v35 = vadd.f32 1.0, %v6989_v33 }
 0x154   : > { %6994 = vrcp.f32 %v396_v34 }
 0x155   : > { %6996 = vrcp.f32 %v394_v35 }
 0x15d   : > { %v6991_v36 = vpop.eup %6990 }
 0x15e   : > { %v6993_v37 = vpop.eup %6992  ;;  %v407_v38 = vmul.f32 %v6991_v36, %v7475_v13 }
 0x15f   : > { %v405_v39 = vmul.f32 %v6993_v37, %v7478_v15 }
 0x160   : > { %v411_v43 = vmul.f32 1.6778524, %v407_v38 }
 0x161   : > { %v6995_v40 = vpop.eup %6994  ;;  %v409_v44 = vmul.f32 1.6778524, %v405_v39 }
 0x162   : > { %v6997_v41 = vpop.eup %6996  ;;  %v408_v42 = vmul.f32 %v6995_v40, %v7483_v21 }
 0x163   : > { %v406_v45 = vmul.f32 %v6997_v41, %v7486_v23 }
 0x164   : > { %v412_v46 = vmul.f32 1.6778524, %v408_v42 }
 0x165   : > { %v410_v47 = vmul.f32 1.6778524, %v406_v45 }
 0x166   : > { %v414_v48 = vpack.c.bf16 %v412_v46, %v411_v43 }
 0x167   : > { %v413_v49 = vpack.c.bf16 %v410_v47, %v409_v44 }
 0x168   : > { %v420_v50 = vshrl.u32 %v414_v48, 16  ;;  %v428_v51 = vshll.u32 %v414_v48, 16 }
 0x169   : > { %v416_v52 = vshrl.u32 %v413_v49, 16  ;;  %v425_v53 = vshll.u32 %v413_v49, 16 }
 0x16a   : > { %v422_v55 = vrot.slane %v420_v50, 2  ;;  %v430_v56 = vrot.slane %v428_v51, 2  ;;  %v436_v57 = vrot.slane %v420_v50, 6  ;;  %v440_v61 = vrot.slane %v420_v50, 5 }
 0x16b   : > { %v418_v58 = vrot.slane %v416_v52, 2  ;;  %v427_v59 = vrot.slane %v425_v53, 2  ;;  %v437_v60 = vrot.slane %v416_v52, 5  ;;  %v435_v62 = vrot.slane %v416_v52, 6 }
 0x16c   : > { %v438_v63 = vrot.slane %v425_v53, 6  ;;  %v445_v0 = vrot.slane %v425_v53, 5  ;;  %v449_v1 = vrot.slane %v416_v52, 3  ;;  %v451_v3 = vrot.slane %v425_v53, 3 }
 0x16d   : > { %v455_v4 = vrot.slane %v416_v52, 1  ;;  %v464_v5 = vsel %vm7500_vm1, %v418_v58, %v427_v59  ;;  %v441_v7 = vrot.slane %v428_v51, 6  ;;  %v457_v9 = vrot.slane %v425_v53, 1 }
 0x16e   : > { %v439_v8 = vor.u32 %v438_v63, %v437_v60  ;;  %v469_v10 = vsel %vm461_vm9, %v464_v5, %v416_v52  ;;  %v446_v11 = vrot.slane %v428_v51, 5  ;;  %v450_v17 = vrot.slane %v420_v50, 3  ;;  %v6642_v5 = vld [vmem:[#allocation7 + $0x170] sm:$0xff]  }
 0x16f   : > { %v478_v12 = vsel %vm7506_vm3, %v469_v10, %v425_v53  ;;  %v442_v16 = vor.u32 %v441_v7, %v440_v61  ;;  %v452_v18 = vrot.slane %v428_v51, 3  ;;  %v456_v24 = vrot.slane %v420_v50, 1 }
 0x170   : > { %v483_v19 = vsel %vm475_vm10, %v478_v12, %v435_v62  ;;  %v494_v20 = vsel %vm7514_vm4, %v439_v8, %v445_v0  ;;  %v465_v26 = vsel %vm7500_vm1, %v422_v55, %v430_v56  ;;  %v458_v37 = vrot.slane %v428_v51, 1  ;;  %v6639_v56 = vld [vmem:[#allocation7 + $0x138] sm:$0xff]  }
 0x171   : > { %v7540_v28 = vsel %vm7514_vm4, %v483_v19, %v439_v8  ;;  %v499_v29 = vsel %vm489_vm13, %v494_v20, %v449_v1  ;;  %v473_v30 = vsel %vm461_vm9, %v465_v26, %v420_v50  ;;  %v495_v31 = vsel %vm7514_vm4, %v442_v16, %v446_v11  ;;  %v6646_v20 = vld [vmem:[#allocation7 + $0x168] sm:$0xff]   ;;  %v6645_v26 = vld [vmem:[#allocation7 + $0x1b0] sm:$0xff]  }
 0x172   : > { %v508_v32 = vsel %vm7523_vm6, %v499_v29, %v451_v3  ;;  %v7549_v33 = vshrl.u32 %v7540_v28, 16  ;;  %v7552_v34 = vshll.u32 %v7540_v28, 16  ;;  %v479_v35 = vsel %vm7506_vm3, %v473_v30, %v428_v51  ;;  %v6647_v29 = vld [vmem:[#allocation7 + $0x128] sm:$0xff]  }
 0x173   : > { %v513_v36 = vsel %vm505_vm14, %v508_v32, %v455_v4  ;;  %v487_v38 = vsel %vm475_vm10, %v479_v35, %v436_v57  ;;  %v503_v39 = vsel %vm489_vm13, %v495_v31, %v450_v17  ;;  %v556_v8 = vrot.slane %v7540_v28, 1  ;;  %v6643_v17 = vld [vmem:[#allocation7 + $0x130] sm:$0xff]   ;;  %v6648_v35 = vld [vmem:[#allocation7 + $0x1e8] sm:$0xff]  }
 0x174   : > { %v7561_v40 = vsel %vm7532_vm7, %v513_v36, %v457_v9  ;;  %v530_v41 = vrot.slane %v7552_v34, 1  ;;  %v7566_v42 = vsel %vm7514_vm4, %v487_v38, %v442_v16  ;;  %v509_v43 = vsel %vm7523_vm6, %v503_v39, %v452_v18  ;;  %v6641_v9 = vld [vmem:[#allocation7 + $0x1b8] sm:$0xff]   ;;  %v6644_v18 = vld [vmem:[#allocation7 + $0x1f0] sm:$0xff]   ;;  %v6650_v36 = vld [vmem:[#allocation7 + $0x160] sm:$0xff]  }
 0x175   : > { %v7571_v44 = vshll.u32 %v7561_v40, 16  ;;  %v7574_v45 = vshrl.u32 %v7561_v40, 16  ;;  %v517_v46 = vsel %vm505_vm14, %v509_v43, %v456_v24  ;;  %v7583_v49 = vshll.u32 %v7566_v42, 16 }
 0x176   : > { %v531_v47 = vor.u32 %v530_v41, %v7549_v33  ;;  %v7580_v48 = vsel %vm7532_vm7, %v517_v46, %v458_v37  ;;  %v565_v50 = vrot.slane %v7549_v33, 1  ;;  %v7588_v52 = vshrl.u32 %v7566_v42, 16 }
 0x177   : > { %v535_v51 = vrot.slane %v7571_v44, 1  ;;  %v7591_v53 = vshll.u32 %v7580_v48, 16  ;;  %v566_v55 = vrot.slane %v7552_v34, 2  ;;  %v542_v57 = vrot.slane %v7583_v49, 1 }
 0x178   : > { %v7596_v58 = vshrl.u32 %v7580_v48, 16  ;;  %v570_v59 = vrot.slane %v7574_v45, 1  ;;  %v571_v60 = vrot.slane %v7571_v44, 2  ;;  %v7608_v0 = vrot.slane %v7561_v40, 1 }
 0x179   : > { %v7601_v61 = vsel %vm524_vm5, %v531_v47, %v535_v51  ;;  %v7604_v62 = vor.u32 %v7574_v45, %v535_v51  ;;  %v547_v63 = vrot.slane %v7591_v53, 1  ;;  %v543_v1 = vor.u32 %v542_v57, %v7588_v52 }
 0x17a   : > { %2289 = vmatprep.mubr.bf16.mxu0 %v7601_v61  ;;  %v567_v3 = vor.u32 %v566_v55, %v565_v50  ;;  %v7612_v4 = vor.u32 %v571_v60, %v570_v59  ;;  %v574_v12 = vrot.slane %v7588_v52, 1  ;;  %v575_v16 = vrot.slane %v7583_v49, 2  ;;  %v6651_v60 = vld [vmem:[#allocation7 + $0x120] sm:$0xff]  }
 0x17b   : > { %2290 = vmatmul.mubr.bf16.vlgmr.msra.gmra.mxu0 %v7540_v28  ;;  %v7616_v7 = vor.u32 %v7596_v58, %v547_v63  ;;  %v7620_v10 = vsel %vm524_vm5, %v543_v1, %v547_v63  ;;  %v7632_v19 = vsel %vm8509_vm11, %v556_v8, %v7608_v0  ;;  %v579_v24 = vrot.slane %v7596_v58, 1  ;;  %v6652_v1 = vld [vmem:[#allocation7 + $0x1e0] sm:$0xff]   ;;  %v6654_v8 = vld [vmem:[#allocation7 + $0x158] sm:$0xff]  }
 0x17c   : > { %5929 = vmatpush3.bf16.msra.mxu0 %v6639_v56  ;;  %v7624_v11 = vsel %vm564_vm8, %v567_v3, %v7612_v4  ;;  %2297 = vmatprep.mubr.bf16.mxu0 %v7620_v10  ;;  %v576_v30 = vor.u32 %v575_v16, %v574_v12  ;;  %v580_v31 = vrot.slane %v7591_v53, 2  ;;  %v595_v32 = vrot.slane %v7549_v33, 2  ;;  %v6649_v56 = vld [vmem:[#allocation7 + $0x1a8] sm:$0xff]   ;;  %v6653_v16 = vld [vmem:[#allocation7 + $0x1a0] sm:$0xff]  }
 0x17d   : > { %2338 = vmatprep.mubr.bf16.mxu1 %v7624_v11  ;;  %5930 = vmatprep.subr.bf16.mxu0 %v6642_v5  ;;  %v596_v37 = vrot.slane %v7552_v34, 3  ;;  %v598_v38 = vrot.slane %v7574_v45, 2  ;;  %v599_v39 = vrot.slane %v7571_v44, 3  ;;  %v559_v41 = vrot.slane %v7566_v42, 1 }
 0x17e   : > { %2339 = vmatmul.mubr.bf16.vlgmr.msra.gmra.mxu1 %v7632_v19  ;;  %v7642_v43 = vor.u32 %v580_v31, %v579_v24  ;;  %v7645_v46 = vrot.slane %v7580_v48, 1  ;;  %v619_v47 = vrot.slane %v7549_v33, 3  ;;  %v620_v50 = vrot.slane %v7552_v34, 4  ;;  %v6658_v24 = vld [vmem:[#allocation7 + $0x150] sm:$0xff]   ;;  %v6662_v31 = vld [vmem:[#allocation7 + $0x148] sm:$0xff]  }
 0x17f   : > { %5957 = vmatpush3.bf16.msra.mxu1 %v6641_v9  ;;  %v597_v51 = vor.u32 %v596_v37, %v595_v32  ;;  %v7650_v55 = vor.u32 %v599_v39, %v598_v38  ;;  %v622_v57 = vrot.slane %v7574_v45, 3  ;;  %v623_v59 = vrot.slane %v7571_v44, 4  ;;  %v6663_v37 = vld [vmem:[#allocation7 + $0x108] sm:$0xff]  }
 0x180   : > { %5931 = vmatpush3.bf16.msra.mxu0 %v6643_v17  ;;  %5958 = vmatprep.subr.bf16.mxu1 %v6644_v18  ;;  %v7656_v63 = vsel %vm564_vm8, %v576_v30, %v7642_v43  ;;  %v7665_v5 = vsel %vm8509_vm11, %v559_v41, %v7645_v46  ;;  %v621_v9 = vor.u32 %v620_v50, %v619_v47  ;;  %v6655_v17 = vld [vmem:[#allocation7 + $0x118] sm:$0xff]   ;;  %v6660_v30 = vld [vmem:[#allocation7 + $0x1d0] sm:$0xff]   ;;  %v6664_v38 = vld [vmem:[#allocation7 + $0x1c8] sm:$0xff]   ;;  %vm585_vm11 = vcmask 1045504  }
 0x181   : > { %5932 = vmatprep.subr.bf16.mxu0 %v6646_v20  ;;  %2346 = vmatprep.mubr.bf16.mxu1 %v7656_v63  ;;  %v7661_v3 = vsel %vm594_vm12, %v597_v51, %v7650_v55  ;;  %v624_v12 = vor.u32 %v623_v59, %v622_v57  ;;  %v6656_v18 = vld [vmem:[#allocation7 + $0x1d8] sm:$0xff]   ;;  %v687_v32 = vshrl.u32 %v7665_v5, 16  ;;  %v6665_v39 = vld [vmem:[#allocation7 + $0x188] sm:$0xff]   ;;  %v6666_v41 = vld [vmem:[#allocation7 + $0x140] sm:$0xff]   ;;  %v605_v51 = vrot.slane %v7596_v58, 2 }
 0x182   : > { %v6667_v47 = vld [vmem:[#allocation7 + $0x100] sm:$0xff]   ;;  %v7675_v57 = vrot.slane %v7580_v48, 2  ;;  %v662_v25 = vrot.slane %v7566_v42, 5  ;;  %v626_v27 = vrot.slane %v7588_v52, 3  ;;  %v627_v13 = vrot.slane %v7583_v49, 4 }
 0x183   : > { %5959 = vmatpush3.bf16.msra.mxu1 %v6645_v26  ;;  %2298 = vmatmul.mubr.bf16.gmra.mxu0 %v7566_v42  ;;  %v625_v20 = vsel %vm520_vm0, %v621_v9, %v624_v12  ;;  %v6657_v26 = vld [vmem:[#allocation7 + $0x198] sm:$0xff]   ;;  %v6668_v50 = vld [vmem:[#allocation7 + $0x1c0] sm:$0xff]   ;;  %v7677_v59 = vrot.slane %v687_v32, 2  ;;  %v602_v12 = vrot.slane %v7588_v52, 2  ;;  %v630_v32 = vrot.slane %v7591_v53, 4 }
 0x184   : > { %5933 = vmatpush3.bf16.msra.mxu0 %v6647_v29  ;;  %5960 = vmatprep.subr.bf16.mxu1 %v6648_v35  ;;  %v6659_v29 = vld [vmem:[#allocation7 + $0x110] sm:$0xff]   ;;  %v673_v15 = vshll.u32 %v7620_v10, 16  ;;  %v644_v22 = vrot.slane %v7552_v34, 5  ;;  %v615_v34 = vrot.slane %v7580_v48, 3 }
 0x185   : > { %5934 = vmatprep.subr.bf16.mxu0 %v6650_v36  ;;  %2387 = vmatprep.mubr.bf16.mxu0 %v7661_v3  ;;  %v6661_v35 = vld [vmem:[#allocation7 + $0x190] sm:$0xff]   ;;  %v690_v36 = vshll.u32 %v7665_v5, 16 }
 0x186   : > { %2347 = vmatmul.mubr.bf16.gmra.mxu1 %v7665_v5 }
 0x187   : > { %5961 = vmatpush3.bf16.msra.mxu1 %v6649_v56  ;;  %2436 = vmatprep.mubr.bf16.mxu1 %v625_v20  ;;  %v606_v56 = vrot.slane %v7591_v53, 3  ;;  %v7681_v9 = vrot.slane %v690_v36, 3  ;;  %v586_v20 = vrot.slane %v7540_v28, 2  ;;  %v6672_v36 = vld [vmem:[#allocation7 + $0x2f8] sm:$0xff]  }
 0x188   : > { %5935 = vmatpush3.bf16.msra.mxu0 %v6651_v60  ;;  %5962 = vmatprep.subr.bf16.mxu1 %v6652_v1  ;;  %v695_v60 = vshrl.u32 %v7645_v46, 16  ;;  %v698_v1 = vshll.u32 %v7645_v46, 16  ;;  %v611_v46 = vrot.slane %v7540_v28, 3 }
 0x189   : > { %5936 = vmatprep.subr.bf16.mxu0 %v6654_v8  ;;  %v6670_v8 = vld [vmem:[#allocation7 + $0x278] sm:$0xff]  }
 0x18b   : > { %5963 = vmatpush3.bf16.msra.mxu1 %v6653_v16  ;;  %v603_v16 = vrot.slane %v7583_v49, 3 }
 0x18c   : > { %5937 = vmatpush3.bf16.msra.mxu0 %v6655_v17  ;;  %5964 = vmatprep.subr.bf16.mxu1 %v6656_v18  ;;  %v589_v17 = vrot.slane %v7566_v42, 2  ;;  %v6669_v18 = vld [vmem:[#allocation7 + $0x180] sm:$0xff]  }
 0x18d   : > { %5938 = vmatprep.subr.bf16.mxu0 %v6658_v24  ;;  %v7688_v24 = vrot.slane %v7561_v40, 2 }
 0x18f   : > { %5965 = vmatpush3.bf16.msra.mxu1 %v6657_v26  ;;  %v612_v26 = vrot.slane %v7561_v40, 3  ;;  %v7714_v21 = vsel %vm585_vm11, %v586_v20, %v7688_v24  ;;  %v670_v20 = vshrl.u32 %v7620_v10, 16 }
 0x190   : > { %5939 = vmatpush3.bf16.msra.mxu0 %v6659_v29  ;;  %5966 = vmatprep.subr.bf16.mxu1 %v6660_v30  ;;  %v7692_v29 = vor.u32 %v606_v56, %v605_v51  ;;  %v6671_v30 = vld [vmem:[#allocation7 + $0x238] sm:$0xff]   ;;  %v663_v51 = vrot.slane %v7580_v48, 5  ;;  %v604_v56 = vor.u32 %v603_v16, %v602_v12 }
 0x191   : > { %5940 = vmatprep.subr.bf16.mxu0 %v6662_v31  ;;  %v629_v31 = vrot.slane %v7596_v58, 3  ;;  %v6673_v12 = vld [vmem:[#allocation7 + $0x2b8] sm:$0xff]   ;;  %v613_v23 = vsel %vm519_vm2, %v611_v46, %v612_v26 }
 0x193   : > { %5967 = vmatpush3.bf16.msra.mxu1 %v6661_v35  ;;  %v7698_v35 = vsel %vm585_vm11, %v589_v17, %v7675_v57  ;;  %v7710_v17 = vsel %vm489_vm13, %v662_v25, %v663_v51  ;;  %v646_v25 = vrot.slane %v7574_v45, 4  ;;  %v693_v51 = vor.u32 %v7681_v9, %v7677_v59  ;;  %v6678_v45 = vld [vmem:[#allocation7 + $0x268] sm:$0xff]  }
 0x194   : > { %5941 = vmatpush3.bf16.msra.mxu0 %v6663_v37  ;;  %5968 = vmatprep.subr.bf16.mxu1 %v6664_v38  ;;  %v6674_v37 = vld [vmem:[#allocation7 + $0x270] sm:$0xff]   ;;  %v638_v38 = vrot.slane %v7566_v42, 4  ;;  %v721_v16 = vshrl.u32 %v7698_v35, 16 }
 0x195   : > { %5942 = vmatprep.subr.bf16.mxu0 %v6666_v41  ;;  %v639_v41 = vrot.slane %v7580_v48, 4 }
 0x196   : > { %v723_v46 = vrot.slane %v721_v16, 2 }
 0x197   : > { %5969 = vmatpush3.bf16.msra.mxu1 %v6665_v39  ;;  %v7707_v39 = vsel %vm505_vm14, %v638_v38, %v639_v41  ;;  %v647_v38 = vrot.slane %v7571_v44, 5  ;;  %v697_v41 = vrot.slane %v695_v60, 2  ;;  %v6677_v44 = vld [vmem:[#allocation7 + $0x2b0] sm:$0xff]   ;;  %v643_v60 = vrot.slane %v7549_v33, 4 }
 0x198   : > { %5943 = vmatpush3.bf16.msra.mxu0 %v6667_v47  ;;  %5970 = vmatprep.subr.bf16.mxu1 %v6668_v50  ;;  %v7718_v47 = vsel %vm594_vm12, %v604_v56, %v7692_v29  ;;  %v631_v50 = vor.u32 %v630_v32, %v629_v31  ;;  %v628_v31 = vor.u32 %v627_v13, %v626_v27  ;;  %v6675_v32 = vld [vmem:[#allocation7 + $0x230] sm:$0xff]   ;;  %v700_v56 = vrot.slane %v698_v1, 3  ;;  %v6679_v1 = vld [vmem:[#allocation7 + $0x228] sm:$0xff]  }
 0x199   : > { %5984 = vmatprep.subr.bf16.mxu0 %v6670_v8  ;;  %v724_v8 = vshll.u32 %v7698_v35, 16  ;;  %v729_v13 = vshrl.u32 %v7675_v57, 16  ;;  %v732_v27 = vshll.u32 %v7675_v57, 16  ;;  %v7740_v57 = vrot.slane %v670_v20, 2 }
 0x19a   : > { %v632_v59 = vsel %vm520_vm0, %v628_v31, %v631_v50  ;;  %v701_v9 = vor.u32 %v700_v56, %v697_v41  ;;  %v6682_v50 = vld [vmem:[#allocation7 + $0x260] sm:$0xff]   ;;  %v7742_v41 = vrot.slane %v673_v15, 3  ;;  %v707_v31 = vshll.u32 %v7656_v63, 16 }
 0x19b   : > { %5971 = vmatpush3.bf16.msra.mxu1 %v6669_v18  ;;  %2388 = vmatmul.mubr.bf16.vlgmr.msra.gmra.mxu0 %v7714_v21  ;;  %v6676_v18 = vld [vmem:[#allocation7 + $0x2f0] sm:$0xff]   ;;  %v726_v26 = vrot.slane %v724_v8, 3  ;;  %v731_v16 = vrot.slane %v729_v13, 2  ;;  %v734_v48 = vrot.slane %v732_v27, 3  ;;  %v635_v15 = vrot.slane %v7540_v28, 4 }
 0x19c   : > { %2395 = vmatprep.mubr.bf16.mxu0 %v7718_v47  ;;  %5985 = vmatpush3.bf16.msra.mxu0 %v6671_v30  ;;  %v648_v30 = vor.u32 %v647_v38, %v646_v25  ;;  %v7737_v33 = vsel %vm594_vm12, %v693_v51, %v701_v9  ;;  %v614_v38 = vrot.slane %v7566_v42, 3  ;;  %v6684_v51 = vld [vmem:[#allocation7 + $0x2e0] sm:$0xff]   ;;  %v636_v56 = vrot.slane %v7561_v40, 4 }
 0x19d   : > { %6012 = vmatprep.subr.bf16.mxu1 %v6672_v36  ;;  %5986 = vmatprep.subr.bf16.mxu0 %v6674_v37  ;;  %v6680_v36 = vld [vmem:[#allocation7 + $0x2e8] sm:$0xff]   ;;  %v727_v8 = vor.u32 %v726_v26, %v723_v46  ;;  %v651_v13 = vrot.slane %v7583_v49, 5  ;;  %v653_v27 = vrot.slane %v7596_v58, 4  ;;  %v654_v9 = vrot.slane %v7591_v53, 5  ;;  %v6689_v58 = vld [vmem:[#allocation7 + $0x298] sm:$0xff]   ;;  %v6691_v53 = vld [vmem:[#allocation7 + $0x210] sm:$0xff]  }
 0x19e   : > { %2437 = vmatmul.mubr.bf16.vlgmr.msra.gmra.mxu1 %v613_v23  ;;  %v645_v23 = vor.u32 %v644_v22, %v643_v60  ;;  %v6681_v37 = vld [vmem:[#allocation7 + $0x2a8] sm:$0xff]   ;;  %v6683_v22 = vld [vmem:[#allocation7 + $0x220] sm:$0xff]   ;;  %v616_v20 = vsel %vm519_vm2, %v614_v38, %v615_v34  ;;  %v6687_v60 = vld [vmem:[#allocation7 + $0x218] sm:$0xff]   ;;  %v659_v46 = vrot.slane %v7540_v28, 5  ;;  %v660_v26 = vrot.slane %v7561_v40, 5 }
 0x19f   : > { %2444 = vmatprep.mubr.bf16.mxu1 %v632_v59  ;;  %6013 = vmatpush3.bf16.msra.mxu1 %v6673_v12  ;;  %v704_v12 = vshrl.u32 %v7656_v63, 16  ;;  %v6688_v59 = vld [vmem:[#allocation7 + $0x2d8] sm:$0xff]   ;;  %v681_v49 = vshll.u32 %v7616_v7, 16  ;;  %v6694_v34 = vld [vmem:[#allocation7 + $0x248] sm:$0xff]   ;;  %v6693_v40 = vld [vmem:[#allocation7 + $0x290] sm:$0xff]  }
 0x1a0   : > { %5987 = vmatpush3.bf16.msra.mxu0 %v6675_v32  ;;  %6014 = vmatprep.subr.bf16.mxu1 %v6676_v18  ;;  %v649_v25 = vsel %vm506_vm15, %v645_v23, %v648_v30  ;;  %v6685_v32 = vld [vmem:[#allocation7 + $0x2a0] sm:$0xff]   ;;  %v6686_v18 = vld [vmem:[#allocation7 + $0x258] sm:$0xff]   ;;  %v678_v30 = vshrl.u32 %v7616_v7, 16  ;;  %v6692_v23 = vld [vmem:[#allocation7 + $0x2d0] sm:$0xff]  }
 0x1a1   : > { %5988 = vmatprep.subr.bf16.mxu0 %v6678_v45  ;;  %v735_v45 = vor.u32 %v734_v48, %v731_v16  ;;  %v6698_v16 = vld [vmem:[#allocation7 + $0x240] sm:$0xff]   ;;  %v6703_v48 = vld [vmem:[#allocation7 + $0x338] sm:$0xff]  }
 0x1a2   : > { %v6700_v38 = vld [vmem:[#allocation7 + $0x2c0] sm:$0xff]  }
 0x1a3   : > { %6015 = vmatpush3.bf16.msra.mxu1 %v6677_v44  ;;  %2396 = vmatmul.mubr.bf16.gmra.mxu0 %v7698_v35  ;;  %v650_v44 = vrot.slane %v7588_v52, 4  ;;  %v7760_v52 = vsel %vm594_vm12, %v727_v8, %v735_v45  ;;  %v6697_v8 = vld [vmem:[#allocation7 + $0x288] sm:$0xff]  }
 0x1a4   : > { %5989 = vmatpush3.bf16.msra.mxu0 %v6679_v1  ;;  %2485 = vmatprep.mubr.bf16.mxu0 %v649_v25  ;;  %v6690_v1 = vld [vmem:[#allocation7 + $0x250] sm:$0xff]   ;;  %v6699_v25 = vld [vmem:[#allocation7 + $0x200] sm:$0xff]  }
 0x1a5   : > { %6016 = vmatprep.subr.bf16.mxu1 %v6680_v36  ;;  %5990 = vmatprep.subr.bf16.mxu0 %v6682_v50  ;;  %v715_v36 = vshll.u32 %v7642_v43, 16  ;;  %v6696_v50 = vld [vmem:[#allocation7 + $0x2c8] sm:$0xff]   ;;  %v652_v45 = vor.u32 %v651_v13, %v650_v44 }
 0x1a6   : > { %2445 = vmatmul.mubr.bf16.gmra.mxu1 %v616_v20  ;;  %v655_v20 = vor.u32 %v654_v9, %v653_v27  ;;  %v661_v27 = vsel %vm489_vm13, %v659_v46, %v660_v26  ;;  %v6709_v9 = vld [vmem:[#allocation7 + $0x3b0] sm:$0xff]   ;;  %v6711_v44 = vld [vmem:[#allocation7 + $0x328] sm:$0xff]   ;;  %v6718_v46 = vld [vmem:[#allocation7 + $0x358] sm:$0xff]  }
 0x1a7   : > { %6017 = vmatpush3.bf16.msra.mxu1 %v6681_v37  ;;  %2534 = vmatprep.mubr.bf16.mxu1 %v7566_v42  ;;  %v712_v42 = vshrl.u32 %v7642_v43, 16  ;;  %v6695_v37 = vld [vmem:[#allocation7 + $0x208] sm:$0xff]   ;;  %v6717_v26 = vld [vmem:[#allocation7 + $0x3a0] sm:$0xff]  }
 0x1a8   : > { %5991 = vmatpush3.bf16.msra.mxu0 %v6683_v22  ;;  %6018 = vmatprep.subr.bf16.mxu1 %v6684_v51  ;;  %v6702_v22 = vld [vmem:[#allocation7 + $0x378] sm:$0xff]   ;;  %v6701_v51 = vld [vmem:[#allocation7 + $0x280] sm:$0xff]   ;;  %v6713_v13 = vld [vmem:[#allocation7 + $0x3a8] sm:$0xff]  }
 0x1a9   : > { %5992 = vmatprep.subr.bf16.mxu0 %v6686_v18  ;;  %v6706_v18 = vld [vmem:[#allocation7 + $0x370] sm:$0xff]   ;;  %v714_v7 = vrot.slane %v712_v42, 2  ;;  %v6745_v42 = vld [vmem:[#allocation7 + $0x4a8] sm:$0xff]  }
 0x1ab   : > { %6019 = vmatpush3.bf16.msra.mxu1 %v6685_v32  ;;  %v6704_v32 = vld [vmem:[#allocation7 + $0x3f8] sm:$0xff]  }
 0x1ac   : > { %5993 = vmatpush3.bf16.msra.mxu0 %v6687_v60  ;;  %6020 = vmatprep.subr.bf16.mxu1 %v6688_v59  ;;  %v6705_v60 = vld [vmem:[#allocation7 + $0x3b8] sm:$0xff]   ;;  %v637_v59 = vsel %vm505_vm14, %v635_v15, %v636_v56  ;;  %v6712_v15 = vld [vmem:[#allocation7 + $0x3e8] sm:$0xff]   ;;  %v6714_v56 = vld [vmem:[#allocation7 + $0x360] sm:$0xff]  }
 0x1ad   : > { %5994 = vmatprep.subr.bf16.mxu0 %v6690_v1  ;;  %v6707_v1 = vld [vmem:[#allocation7 + $0x330] sm:$0xff]  }
 0x1af   : > { %6021 = vmatpush3.bf16.msra.mxu1 %v6689_v58  ;;  %v6708_v58 = vld [vmem:[#allocation7 + $0x3f0] sm:$0xff]  }
 0x1b0   : > { %5995 = vmatpush3.bf16.msra.mxu0 %v6691_v53  ;;  %6022 = vmatprep.subr.bf16.mxu1 %v6692_v23  ;;  %v656_v53 = vsel %vm506_vm15, %v652_v45, %v655_v20  ;;  %v6710_v23 = vld [vmem:[#allocation7 + $0x368] sm:$0xff]   ;;  %v6734_v20 = vld [vmem:[#allocation7 + $0x478] sm:$0xff]  }
 0x1b1   : > { %5996 = vmatprep.subr.bf16.mxu0 %v6694_v34  ;;  %v6715_v34 = vld [vmem:[#allocation7 + $0x320] sm:$0xff]   ;;  %v6736_v45 = vld [vmem:[#allocation7 + $0x4f8] sm:$0xff]  }
 0x1b3   : > { %6023 = vmatpush3.bf16.msra.mxu1 %v6693_v40  ;;  %v6716_v40 = vld [vmem:[#allocation7 + $0x3e0] sm:$0xff]  }
 0x1b4   : > { %5997 = vmatpush3.bf16.msra.mxu0 %v6695_v37  ;;  %6024 = vmatprep.subr.bf16.mxu1 %v6696_v50  ;;  %v6720_v37 = vld [vmem:[#allocation7 + $0x3d8] sm:$0xff]   ;;  %v6722_v50 = vld [vmem:[#allocation7 + $0x350] sm:$0xff]  }
 0x1b5   : > { %5998 = vmatprep.subr.bf16.mxu0 %v6698_v16  ;;  %v6721_v16 = vld [vmem:[#allocation7 + $0x398] sm:$0xff]  }
 0x1b7   : > { %6025 = vmatpush3.bf16.msra.mxu1 %v6697_v8  ;;  %v6724_v8 = vld [vmem:[#allocation7 + $0x3d0] sm:$0xff]  }
 0x1b8   : > { %5999 = vmatpush3.bf16.msra.mxu0 %v6699_v25  ;;  %6026 = vmatprep.subr.bf16.mxu1 %v6700_v38  ;;  %v6726_v25 = vld [vmem:[#allocation7 + $0x348] sm:$0xff]  }
 0x1b9   : > { %6040 = vmatprep.subr.bf16.mxu0 %v6702_v22  ;;  %v6727_v38 = vld [vmem:[#allocation7 + $0x308] sm:$0xff]   ;;  %v6730_v22 = vld [vmem:[#allocation7 + $0x340] sm:$0xff]  }
 0x1bb   : > { %6027 = vmatpush3.bf16.msra.mxu1 %v6701_v51  ;;  %2486 = vmatmul.mubr.bf16.vlgmr.msra.gmra.mxu0 %v637_v59  ;;  %v6731_v51 = vld [vmem:[#allocation7 + $0x300] sm:$0xff]   ;;  %v6737_v59 = vld [vmem:[#allocation7 + $0x4b8] sm:$0xff]  }
 0x1bc   : > { %2493 = vmatprep.mubr.bf16.mxu0 %v656_v53  ;;  %6041 = vmatpush3.bf16.msra.mxu0 %v6703_v48  ;;  %v6732_v48 = vld [vmem:[#allocation7 + $0x3c0] sm:$0xff]   ;;  %v6739_v53 = vld [vmem:[#allocation7 + $0x430] sm:$0xff]  }
 0x1bd   : > { %6068 = vmatprep.subr.bf16.mxu1 %v6704_v32  ;;  %6042 = vmatprep.subr.bf16.mxu0 %v6706_v18  ;;  %v6733_v32 = vld [vmem:[#allocation7 + $0x380] sm:$0xff]   ;;  %v6735_v18 = vld [vmem:[#allocation7 + $0x438] sm:$0xff]  }
 0x1be   : > { %2535 = vmatmul.mubr.bf16.vlgmr.msra.gmra.mxu1 %v661_v27  ;;  %v6742_v27 = vld [vmem:[#allocation7 + $0x468] sm:$0xff]  }
 0x1bf   : > { %2542 = vmatprep.mubr.bf16.mxu1 %v7540_v28  ;;  %6069 = vmatpush3.bf16.msra.mxu1 %v6705_v60  ;;  %v6719_v28 = vld [vmem:[#allocation7 + $0x318] sm:$0xff]   ;;  %v6738_v60 = vld [vmem:[#allocation7 + $0x470] sm:$0xff]  }
 0x1c0   : > { %6043 = vmatpush3.bf16.msra.mxu0 %v6707_v1  ;;  %6070 = vmatprep.subr.bf16.mxu1 %v6708_v58  ;;  %v680_v1 = vrot.slane %v678_v30, 2  ;;  %v683_v58 = vrot.slane %v681_v49, 3  ;;  %v717_v30 = vrot.slane %v715_v36, 3  ;;  %v6741_v49 = vld [vmem:[#allocation7 + $0x4b0] sm:$0xff]   ;;  %v6747_v36 = vld [vmem:[#allocation7 + $0x420] sm:$0xff]  }
 0x1c1   : > { %6044 = vmatprep.subr.bf16.mxu0 %v6710_v23  ;;  %v6740_v23 = vld [vmem:[#allocation7 + $0x4f0] sm:$0xff]  }
 0x1c3   : > { %6071 = vmatpush3.bf16.msra.mxu1 %v6709_v9  ;;  %2494 = vmatmul.mubr.bf16.gmra.mxu0 %v7707_v39  ;;  %v6723_v39 = vld [vmem:[#allocation7 + $0x310] sm:$0xff]   ;;  %v706_v9 = vrot.slane %v704_v12, 2  ;;  %v6743_v12 = vld [vmem:[#allocation7 + $0x428] sm:$0xff]  }
 0x1c4   : > { %6045 = vmatpush3.bf16.msra.mxu0 %v6711_v44  ;;  %2583 = vmatprep.mubr.bf16.mxu0 %v7665_v5  ;;  %v6725_v5 = vld [vmem:[#allocation7 + $0x390] sm:$0xff]   ;;  %v676_v44 = vor.u32 %v7742_v41, %v7740_v57  ;;  %v6750_v57 = vld [vmem:[#allocation7 + $0x458] sm:$0xff]  }
 0x1c5   : > { %6072 = vmatprep.subr.bf16.mxu1 %v6712_v15  ;;  %6046 = vmatprep.subr.bf16.mxu0 %v6714_v56  ;;  %v684_v15 = vor.u32 %v683_v58, %v680_v1  ;;  %v6763_v1 = vld [vmem:[#allocation7 + $0x400] sm:$0xff]  }
 0x1c6   : > { %2543 = vmatmul.mubr.bf16.gmra.mxu1 %v7710_v17  ;;  %v6728_v17 = vld [vmem:[#allocation7 + $0x3c8] sm:$0xff]   ;;  %v6764_v58 = vld [vmem:[#allocation7 + $0x4c0] sm:$0xff]  }
 0x1c7   : > { %6073 = vmatpush3.bf16.msra.mxu1 %v6713_v13  ;;  %2632 = vmatprep.mubr.bf16.mxu1 %v7698_v35  ;;  %v6729_v35 = vld [vmem:[#allocation7 + $0x388] sm:$0xff]   ;;  %v718_v13 = vor.u32 %v717_v30, %v714_v7  ;;  %v685_v43 = vsel %vm594_vm12, %v676_v44, %v684_v15  ;;  %v6765_v7 = vld [vmem:[#allocation7 + $0x480] sm:$0xff]   ;;  %v746_v44 = vshrl.u32 %v7692_v29, 16  ;;  %v749_v15 = vshll.u32 %v7692_v29, 16 }
 0x1c8   : > { %6047 = vmatpush3.bf16.msra.mxu0 %v6715_v34  ;;  %6074 = vmatprep.subr.bf16.mxu1 %v6716_v40  ;;  %v6748_v34 = vld [vmem:[#allocation7 + $0x4e0] sm:$0xff]  }
 0x1c9   : > { %6048 = vmatprep.subr.bf16.mxu0 %v6718_v46  ;;  %v6749_v40 = vld [vmem:[#allocation7 + $0x4a0] sm:$0xff]   ;;  %v6751_v46 = vld [vmem:[#allocation7 + $0x418] sm:$0xff]  }
 0x1cb   : > { %6075 = vmatpush3.bf16.msra.mxu1 %v6717_v26  ;;  %v6752_v26 = vld [vmem:[#allocation7 + $0x4d8] sm:$0xff]  }
 0x1cc   : > { %6049 = vmatpush3.bf16.msra.mxu0 %v6719_v28  ;;  %6076 = vmatprep.subr.bf16.mxu1 %v6720_v37  ;;  %v6754_v28 = vld [vmem:[#allocation7 + $0x450] sm:$0xff]   ;;  %v6753_v37 = vld [vmem:[#allocation7 + $0x498] sm:$0xff]  }
 0x1cd   : > { %6050 = vmatprep.subr.bf16.mxu0 %v6722_v50  ;;  %v6755_v50 = vld [vmem:[#allocation7 + $0x410] sm:$0xff]  }
 0x1cf   : > { %6077 = vmatpush3.bf16.msra.mxu1 %v6721_v16  ;;  %v6756_v16 = vld [vmem:[#allocation7 + $0x4d0] sm:$0xff]  }
 0x1d0   : > { %6051 = vmatpush3.bf16.msra.mxu0 %v6723_v39  ;;  %6078 = vmatprep.subr.bf16.mxu1 %v6724_v8  ;;  %v6758_v39 = vld [vmem:[#allocation7 + $0x448] sm:$0xff]   ;;  %v755_v8 = vshrl.u32 %v7601_v61, 16 }
 0x1d1   : > { %6052 = vmatprep.subr.bf16.mxu0 %v6726_v25  ;;  %v758_v25 = vshll.u32 %v7601_v61, 16 }
 0x1d3   : > { %6079 = vmatpush3.bf16.msra.mxu1 %v6725_v5  ;;  %v6757_v5 = vld [vmem:[#allocation7 + $0x490] sm:$0xff]  }
 0x1d4   : > { %6053 = vmatpush3.bf16.msra.mxu0 %v6727_v38  ;;  %6080 = vmatprep.subr.bf16.mxu1 %v6728_v17  ;;  %v763_v38 = vshrl.u32 %v7604_v62, 16  ;;  %v766_v17 = vshll.u32 %v7604_v62, 16 }
 0x1d5   : > { %6054 = vmatprep.subr.bf16.mxu0 %v6730_v22  ;;  %v6759_v22 = vld [vmem:[#allocation7 + $0x408] sm:$0xff]  }
 0x1d6   : > { %v768_v62 = vrot.slane %v766_v17, 3  ;;  %v6773_v17 = vld [vmem:[#allocation7 + $0x520] sm:$0xff]  }
 0x1d7   : > { %6081 = vmatpush3.bf16.msra.mxu1 %v6729_v35  ;;  %v6760_v35 = vld [vmem:[#allocation7 + $0x4c8] sm:$0xff]  }
 0x1d8   : > { %6055 = vmatpush3.bf16.msra.mxu0 %v6731_v51  ;;  %6082 = vmatprep.subr.bf16.mxu1 %v6732_v48  ;;  %v789_v51 = vshrl.u32 %v7624_v11, 16  ;;  %v792_v48 = vshll.u32 %v7624_v11, 16 }
 0x1d9   : > { %6096 = vmatprep.subr.bf16.mxu0 %v6734_v20  ;;  %v6762_v20 = vld [vmem:[#allocation7 + $0x440] sm:$0xff]  }
 0x1db   : > { %6083 = vmatpush3.bf16.msra.mxu1 %v6733_v32  ;;  %2584 = vmatmul.mubr.bf16.vlgmr.msra.gmra.mxu0 %v7620_v10  ;;  %v709_v10 = vrot.slane %v707_v31, 3  ;;  %v6744_v31 = vld [vmem:[#allocation7 + $0x4e8] sm:$0xff]   ;;  %v797_v32 = vshrl.u32 %v7612_v4, 16 }
 0x1dc   : > { %2591 = vmatprep.mubr.bf16.mxu0 %v7632_v19  ;;  %6097 = vmatpush3.bf16.msra.mxu0 %v6735_v18  ;;  %v757_v18 = vrot.slane %v755_v8, 2 }
 0x1dd   : > { %6124 = vmatprep.subr.bf16.mxu1 %v6736_v45  ;;  %6098 = vmatprep.subr.bf16.mxu0 %v6738_v60  ;;  %v710_v56 = vor.u32 %v709_v10, %v706_v9  ;;  %v760_v45 = vrot.slane %v758_v25, 3  ;;  %v6761_v60 = vld [vmem:[#allocation7 + $0x488] sm:$0xff]   ;;  %v741_v9 = vshll.u32 %v7718_v47, 16  ;;  %v799_v10 = vrot.slane %v797_v32, 2 }
 0x1de   : > { %2633 = vmatmul.mubr.bf16.vlgmr.msra.gmra.mxu1 %v7656_v63  ;;  %v6746_v63 = vld [vmem:[#allocation7 + $0x460] sm:$0xff]   ;;  %v823_v32 = vshrl.u32 %v7661_v3, 16 }
 0x1df   : > { %2640 = vmatprep.mubr.bf16.mxu1 %v7714_v21  ;;  %6125 = vmatpush3.bf16.msra.mxu1 %v6737_v59  ;;  %v719_v41 = vsel %vm594_vm12, %v710_v56, %v718_v13  ;;  %v765_v59 = vrot.slane %v763_v38, 2  ;;  %v761_v30 = vor.u32 %v760_v45, %v757_v18  ;;  %v6768_v56 = vld [vmem:[#allocation7 + $0x570] sm:$0xff]   ;;  %v780_v13 = vshrl.u32 %v7608_v0, 16 }
 0x1e0   : > { %6099 = vmatpush3.bf16.msra.mxu0 %v6739_v53  ;;  %6126 = vmatprep.subr.bf16.mxu1 %v6740_v23  ;;  %v791_v53 = vrot.slane %v789_v51, 2  ;;  %v794_v23 = vrot.slane %v792_v48, 3  ;;  %v6776_v51 = vld [vmem:[#allocation7 + $0x550] sm:$0xff]   ;;  %v831_v18 = vshrl.u32 %v7650_v55, 16  ;;  %v834_v45 = vshll.u32 %v7650_v55, 16 }
 0x1e1   : > { %6100 = vmatprep.subr.bf16.mxu0 %v6742_v27  ;;  %v738_v27 = vshrl.u32 %v7718_v47, 16  ;;  %v6777_v48 = vld [vmem:[#allocation7 + $0x510] sm:$0xff]  }
 0x1e3   : > { %6127 = vmatpush3.bf16.msra.mxu1 %v6741_v49  ;;  %2592 = vmatmul.mubr.bf16.gmra.mxu0 %v7601_v61  ;;  %v800_v61 = vshll.u32 %v7612_v4, 16  ;;  %v769_v49 = vor.u32 %v768_v62, %v765_v59  ;;  %v6780_v59 = vld [vmem:[#allocation7 + $0x540] sm:$0xff]   ;;  %v825_v62 = vrot.slane %v823_v32, 2 }
 0x1e4   : > { %6101 = vmatpush3.bf16.msra.mxu0 %v6743_v12  ;;  %2681 = vmatprep.mubr.bf16.mxu0 %v685_v43  ;;  %v6767_v12 = vld [vmem:[#allocation7 + $0x538] sm:$0xff]   ;;  %v783_v43 = vshll.u32 %v7608_v0, 16 }
 0x1e5   : > { %6128 = vmatprep.subr.bf16.mxu1 %v6744_v31  ;;  %6102 = vmatprep.subr.bf16.mxu0 %v6746_v63  ;;  %v802_v4 = vrot.slane %v800_v61, 3  ;;  %v772_v31 = vshrl.u32 %v7632_v19, 16  ;;  %v775_v63 = vshll.u32 %v7632_v19, 16  ;;  %v770_v29 = vsel %vm594_vm12, %v761_v30, %v769_v49  ;;  %v6769_v19 = vld [vmem:[#allocation7 + $0x530] sm:$0xff]  }
 0x1e6   : > { %2641 = vmatmul.mubr.bf16.gmra.mxu1 %v7624_v11  ;;  %v6766_v11 = vld [vmem:[#allocation7 + $0x578] sm:$0xff]   ;;  %v785_v0 = vrot.slane %v783_v43, 3  ;;  %v826_v61 = vshll.u32 %v7661_v3, 16 }
 0x1e7   : > { %6129 = vmatpush3.bf16.msra.mxu1 %v6745_v42  ;;  %2730 = vmatprep.mubr.bf16.mxu1 %v719_v41  ;;  %v740_v42 = vrot.slane %v738_v27, 2  ;;  %v748_v41 = vrot.slane %v746_v44, 2  ;;  %v809_v27 = vshll.u32 %v7714_v21, 16 }
 0x1e8   : > { %6103 = vmatpush3.bf16.msra.mxu0 %v6747_v36  ;;  %6130 = vmatprep.subr.bf16.mxu1 %v6748_v34  ;;  %v795_v36 = vor.u32 %v794_v23, %v791_v53  ;;  %v803_v34 = vor.u32 %v802_v4, %v799_v10  ;;  %v836_v53 = vrot.slane %v834_v45, 3  ;;  %v6781_v23 = vld [vmem:[#allocation7 + $0x500] sm:$0xff]  }
 0x1e9   : > { %6104 = vmatprep.subr.bf16.mxu0 %v6750_v57  ;;  %v743_v57 = vrot.slane %v741_v9, 3  ;;  %v817_v9 = vshll.u32 %v7688_v24, 16 }
 0x1eb   : > { %6131 = vmatpush3.bf16.msra.mxu1 %v6749_v40  ;;  %v751_v40 = vrot.slane %v749_v15, 3  ;;  %v819_v49 = vrot.slane %v817_v9, 3  ;;  %v6782_v9 = vld [vmem:[#allocation8 + $0x78] sm:$0xff]  }
 0x1ec   : > { %6105 = vmatpush3.bf16.msra.mxu0 %v6751_v46  ;;  %6132 = vmatprep.subr.bf16.mxu1 %v6752_v26  ;;  %v774_v46 = vrot.slane %v772_v31, 2  ;;  %v777_v26 = vrot.slane %v775_v63, 3 }
 0x1ed   : > { %6106 = vmatprep.subr.bf16.mxu0 %v6754_v28  ;;  %v6770_v28 = vld [vmem:[#allocation7 + $0x568] sm:$0xff]  }
 0x1ee   : > { %v778_v8 = vor.u32 %v777_v26, %v774_v46 }
 0x1ef   : > { %6133 = vmatpush3.bf16.msra.mxu1 %v6753_v37  ;;  %v782_v37 = vrot.slane %v780_v13, 2 }
 0x1f0   : > { %6107 = vmatpush3.bf16.msra.mxu0 %v6755_v50  ;;  %6134 = vmatprep.subr.bf16.mxu1 %v6756_v16  ;;  %v804_v50 = vsel %vm594_vm12, %v795_v36, %v803_v34  ;;  %v744_v16 = vor.u32 %v743_v57, %v740_v42 }
 0x1f1   : > { %6108 = vmatprep.subr.bf16.mxu0 %v6758_v39  ;;  %v6771_v39 = vld [vmem:[#allocation7 + $0x528] sm:$0xff]   ;;  %v786_v25 = vor.u32 %v785_v0, %v782_v37 }
 0x1f3   : > { %6135 = vmatpush3.bf16.msra.mxu1 %v6757_v5  ;;  %v6772_v5 = vld [vmem:[#allocation7 + $0x560] sm:$0xff]  }
 0x1f4   : > { %6109 = vmatpush3.bf16.msra.mxu0 %v6759_v22  ;;  %6136 = vmatprep.subr.bf16.mxu1 %v6760_v35  ;;  %v6774_v22 = vld [vmem:[#allocation7 + $0x558] sm:$0xff]  }
 0x1f5   : > { %6110 = vmatprep.subr.bf16.mxu0 %v6762_v20  ;;  %v6775_v35 = vld [vmem:[#allocation7 + $0x518] sm:$0xff]   ;;  %v6778_v20 = vld [vmem:[#allocation7 + $0x548] sm:$0xff]  }
 0x1f7   : > { %6137 = vmatpush3.bf16.msra.mxu1 %v6761_v60  ;;  %v6779_v60 = vld [vmem:[#allocation7 + $0x508] sm:$0xff]  }
 0x1f8   : > { %6111 = vmatpush3.bf16.msra.mxu0 %v6763_v1  ;;  %6138 = vmatprep.subr.bf16.mxu1 %v6764_v58  ;;  %v828_v1 = vrot.slane %v826_v61, 3  ;;  %v833_v58 = vrot.slane %v831_v18, 2 }
 0x1f9   : > { %6152 = vmatprep.subr.bf16.mxu0 %v6766_v11  ;;  %v806_v11 = vshrl.u32 %v7714_v21, 16 }
 0x1fa   : > { %v829_v55 = vor.u32 %v828_v1, %v825_v62  ;;  %v837_v10 = vor.u32 %v836_v53, %v833_v58 }
 0x1fb   : > { %6139 = vmatpush3.bf16.msra.mxu1 %v6765_v7  ;;  %2682 = vmatmul.mubr.bf16.vlgmr.msra.gmra.mxu0 %v7718_v47  ;;  %v752_v47 = vor.u32 %v751_v40, %v748_v41  ;;  %v808_v4 = vrot.slane %v806_v11, 2  ;;  %v811_v7 = vrot.slane %v809_v27, 3 }
 0x1fc   : > { %2689 = vmatprep.mubr.bf16.mxu0 %v770_v29  ;;  %6153 = vmatpush3.bf16.msra.mxu0 %v6767_v12  ;;  %v838_v44 = vsel %vm594_vm12, %v829_v55, %v837_v10  ;;  %v6783_v55 = vld [vmem:[#allocation8 + $0x38] sm:$0xff]  }
 0x1fd   : > { %6154 = vmatprep.subr.bf16.mxu0 %v6768_v56  ;;  %v753_v38 = vsel %vm594_vm12, %v744_v16, %v752_v47  ;;  %v812_v15 = vor.u32 %v811_v7, %v808_v4  ;;  %v6784_v10 = vld [vmem:[#allocation8 + $0xf8] sm:$0xff]   ;;  %6180 = vmatprep.subr.bf16.mxu1 %v6782_v9  ;;  %v6793_v9 = vld [vmem:[#allocation8 + $0xa8] sm:$0xff]  }
 0x1fe   : > { %2731 = vmatmul.mubr.bf16.vlgmr.msra.gmra.mxu1 %v7737_v33  ;;  %v787_v33 = vsel %vm594_vm12, %v778_v8, %v786_v25 }
 0x1ff   : > { %2738 = vmatprep.mubr.bf16.mxu1 %v804_v50  ;;  %6181 = vmatpush3.bf16.msra.mxu1 %v6783_v55  ;;  %v6794_v55 = vld [vmem:[#allocation8 + $0x60] sm:$0xff]  }
 0x200   : > { %6155 = vmatpush3.bf16.msra.mxu0 %v6769_v19 }
 0x201   : > { %6156 = vmatprep.subr.bf16.mxu0 %v6770_v28 }
 0x203   : > { %2690 = vmatmul.mubr.bf16.gmra.mxu0 %v7661_v3  ;;  %v814_v3 = vshrl.u32 %v7688_v24, 16 }
 0x204   : > { %6157 = vmatpush3.bf16.msra.mxu0 %v6771_v39  ;;  %2779 = vmatprep.mubr.bf16.mxu0 %v753_v38 }
 0x205   : > { %6158 = vmatprep.subr.bf16.mxu0 %v6772_v5  ;;  %v816_v30 = vrot.slane %v814_v3, 2 }
 0x206   : > { %2739 = vmatmul.mubr.bf16.gmra.mxu1 %v787_v33 }
 0x207   : > { %v820_v12 = vor.u32 %v819_v49, %v816_v30  ;;  %v6785_v30 = vld [vmem:[#allocation8 + $0xb8] sm:$0xff]   ;;  %v6786_v49 = vld [vmem:[#allocation8 + $0x70] sm:$0xff]  }
 0x208   : > { %6159 = vmatpush3.bf16.msra.mxu0 %v6773_v17  ;;  %6182 = vmatprep.subr.bf16.mxu1 %v6786_v49 }
 0x209   : > { %6160 = vmatprep.subr.bf16.mxu0 %v6774_v22  ;;  %v821_v21 = vsel %vm594_vm12, %v812_v15, %v820_v12  ;;  %v6787_v15 = vld [vmem:[#allocation8 + $0x30] sm:$0xff]  }
 0x20a   : > { %v6789_v12 = vld [vmem:[#allocation8 + $0xb0] sm:$0xff]   ;;  %6183 = vmatpush3.bf16.msra.mxu1 %v6787_v15 }
 0x20c   : > { %6161 = vmatpush3.bf16.msra.mxu0 %v6775_v35 }
 0x20d   : > { %6162 = vmatprep.subr.bf16.mxu0 %v6776_v51 }
 0x210   : > { %6163 = vmatpush3.bf16.msra.mxu0 %v6777_v48 }
 0x211   : > { %6164 = vmatprep.subr.bf16.mxu0 %v6778_v20 }
 0x214   : > { %6165 = vmatpush3.bf16.msra.mxu0 %v6779_v60 }
 0x215   : > { %6166 = vmatprep.subr.bf16.mxu0 %v6780_v59 }
 0x218   : > { %6167 = vmatpush3.bf16.msra.mxu0 %v6781_v23 }
 0x219   : > { %6208 = vmatprep.subr.bf16.mxu0 %v6784_v10  ;;  %v6796_v10 = vld [vmem:[#allocation8 + $0xe0] sm:$0xff]  }
 0x21b   : > { %2780 = vmatmul.mubr.bf16.vlgmr.msra.gmra.mxu0 %v7760_v52 }
 0x21c   : > { %2787 = vmatprep.mubr.bf16.mxu0 %v838_v44  ;;  %v6788_v44 = vld [vmem:[#allocation8 + $0xf0] sm:$0xff]   ;;  %6209 = vmatpush3.bf16.msra.mxu0 %v6785_v30 }
 0x21d   : > { %6210 = vmatprep.subr.bf16.mxu0 %v6788_v44  ;;  %v6795_v44 = vld [vmem:[#allocation8 + $0x20] sm:$0xff]  }
 0x220   : > { %6211 = vmatpush3.bf16.msra.mxu0 %v6789_v12 }
 0x223   : > { %2788 = vmatmul.mubr.bf16.gmra.mxu0 %v821_v21  ;;  %v6790_v21 = vld [vmem:[#allocation8 + $0x68] sm:$0xff]  }
 0x224   : > { %6184 = vmatprep.subr.bf16.mxu1 %v6790_v21  ;;  %v6799_v21 = vld [vmem:[#allocation8 + $0x18] sm:$0xff]  }
 0x225   : > { %6185 = vmatpush3.bf16.msra.mxu1 %v6791_v14 }
 0x226   : > { %6186 = vmatprep.subr.bf16.mxu1 %v6794_v55  ;;  %v6803_v55 = vld [vmem:[#allocation8 + $0x10] sm:$0xff]  }
 0x229   : > { %6187 = vmatpush3.bf16.msra.mxu1 %v6795_v44 }
 0x22a   : > { %6188 = vmatprep.subr.bf16.mxu1 %v6798_v2  ;;  %v6809_v2 = vld [vmem:[#allocation8 + $0x88] sm:$0xff]  }
 0x22d   : > { %6189 = vmatpush3.bf16.msra.mxu1 %v6799_v21 }
 0x23b   : > { %v5888_v31 = vpop.f32.mrf.mxu0 }
 0x23d   : > { %v5889_v63 = vpop.f32.mrf.mxu0 }
 0x23e   : > { %v7832_v24 = vadd.f32 %v5889_v63, %v5888_v31  ;;  %v7840_v52 = vpop.f32.mrf.mxu1  ;;  %v6792_v31 = vld [vmem:[#allocation8 + $0xe8] sm:$0xff]  }
 0x23f   : > { %v7834_v56 = vpop.f32.mrf.mxu0  ;;  %6212 = vmatprep.subr.bf16.mxu0 %v6792_v31  ;;  %v6801_v31 = vld [vmem:[#allocation8 + $0x98] sm:$0xff]  }
 0x240   : > { %v7842_v34 = vpop.f32.mrf.mxu1  ;;  %6213 = vmatpush3.bf16.msra.mxu0 %v6793_v9 }
 0x241   : > { %v7836_v13 = vpop.f32.mrf.mxu0  ;;  %6214 = vmatprep.subr.bf16.mxu0 %v6796_v10  ;;  %v6805_v10 = vld [vmem:[#allocation8 + $0x90] sm:$0xff]  }
 0x242   : > { %v7844_v57 = vpop.f32.mrf.mxu1 }
 0x243   : > { %v5894_v43 = vpop.f32.mrf.mxu0 }
 0x244   : > { %v7846_v29 = vpop.f32.mrf.mxu1  ;;  %6215 = vmatpush3.bf16.msra.mxu0 %v6797_v6 }
 0x245   : > { %v5895_v42 = vpop.f32.mrf.mxu0  ;;  %6216 = vmatprep.subr.bf16.mxu0 %v6800_v54  ;;  %v6807_v54 = vld [vmem:[#allocation8 + $0x8] sm:$0xff]  }
 0x246   : > { %v7838_v36 = vadd.f32 %v5895_v42, %v5894_v43  ;;  %v7850_v40 = vpop.f32.mrf.mxu1 }
 0x247   : > { %v7848_v41 = vpop.f32.mrf.mxu0 }
 0x248   : > { %v7854_v46 = vpop.f32.mrf.mxu1  ;;  %6217 = vmatpush3.bf16.msra.mxu0 %v6801_v31 }
 0x249   : > { %v7852_v19 = vpop.f32.mrf.mxu0 }
 0x24a   : > { %v7858_v28 = vpop.f32.mrf.mxu1 }
 0x24c   : > { %v7862_v0 = vpop.f32.mrf.mxu1 }
 0x25b   : > { %v7856_v26 = vpop.f32.mrf.mxu0 }
 0x25d   : > { %v7860_v37 = vpop.f32.mrf.mxu0 }
 0x25e   : > { %v7866_v16 = vpop.f32.mrf.mxu1 }
 0x25f   : > { %v7864_v50 = vpop.f32.mrf.mxu0 }
 0x260   : > { %v7870_v39 = vpop.f32.mrf.mxu1 }
 0x261   : > { %v7868_v47 = vpop.f32.mrf.mxu0 }
 0x262   : > { %v7874_v25 = vpop.f32.mrf.mxu1 }
 0x263   : > { %v7872_v8 = vpop.f32.mrf.mxu0 }
 0x264   : > { %v7878_v38 = vpop.f32.mrf.mxu1 }
 0x265   : > { %v7876_v5 = vpop.f32.mrf.mxu0 }
 0x266   : > { %v7882_v33 = vpop.f32.mrf.mxu1 }
 0x267   : > { %v7880_v17 = vpop.f32.mrf.mxu0 }
 0x268   : > { %v7886_v35 = vpop.f32.mrf.mxu1 }
 0x269   : > { %v7884_v22 = vpop.f32.mrf.mxu0 }
 0x26a   : > { %v7890_v48 = vpop.f32.mrf.mxu1 }
 0x26c   : > { %v7894_v32 = vpop.f32.mrf.mxu1 }
 0x27b   : > { %v7888_v51 = vpop.f32.mrf.mxu0 }
 0x27d   : > { %v7892_v20 = vpop.f32.mrf.mxu0 }
 0x27e   : > { %v7898_v18 = vpop.f32.mrf.mxu1 }
 0x27f   : > { %v7896_v61 = vpop.f32.mrf.mxu0 }
 0x280   : > { %v7902_v60 = vpop.f32.mrf.mxu1 }
 0x281   : > { %v7900_v45 = vpop.f32.mrf.mxu0 }
 0x282   : > { %v7906_v62 = vpop.f32.mrf.mxu1 }
 0x283   : > { %v7904_v59 = vpop.f32.mrf.mxu0 }
 0x284   : > { %v7910_v58 = vpop.f32.mrf.mxu1 }
 0x285   : > { %v7908_v1 = vpop.f32.mrf.mxu0 }
 0x286   : > { %v7914_v23 = vpop.f32.mrf.mxu1 }
 0x287   : > { %v7912_v53 = vpop.f32.mrf.mxu0 }
 0x288   : > { %v7918_v27 = vpop.f32.mrf.mxu1 }
 0x289   : > { %v7916_v11 = vpop.f32.mrf.mxu0 }
 0x28a   : > { %v7922_v4 = vpop.f32.mrf.mxu1 }
 0x28b   : > { %8560 = vst [vmem:[#allocation26_spill] sm:$0xff] %v7922_v4  ;;  %v6804_v4 = vld [vmem:[#allocation8 + $0xd0] sm:$0xff]  }
 0x28c   : > { %v7926_v63 = vpop.f32.mrf.mxu1  ;;  %6218 = vmatprep.subr.bf16.mxu0 %v6804_v4  ;;  %v6811_v4 = vld [vmem:[#allocation8] sm:$0xff]  }
 0x28d   : > { %8561 = vst [vmem:[#allocation27_spill] sm:$0xff] %v7926_v63  ;;  %v6802_v63 = vld [vmem:[#allocation8 + $0x50] sm:$0xff]   ;;  %6219 = vmatpush3.bf16.msra.mxu0 %v6805_v10  ;;  %v6816_v10 = vld [vmem:[#allocation8 + $0x1f8] sm:$0xff]  }
 0x28e   : > { %6190 = vmatprep.subr.bf16.mxu1 %v6802_v63 }
 0x28f   : > { %6191 = vmatpush3.bf16.msra.mxu1 %v6803_v55  ;;  %v6814_v55 = vld [vmem:[#allocation8 + $0x178] sm:$0xff]  }
 0x29b   : > { %v7920_v3 = vpop.f32.mrf.mxu0 }
 0x29d   : > { %v7924_v7 = vpop.f32.mrf.mxu0 }
 0x29e   : > { %v7930_v42 = vpop.f32.mrf.mxu1 }
 0x29f   : > { %v7928_v43 = vpop.f32.mrf.mxu0 }
 0x2a0   : > { %v7934_v49 = vpop.f32.mrf.mxu1 }
 0x2a1   : > { %v7932_v30 = vpop.f32.mrf.mxu0 }
 0x2a2   : > { %v7938_v12 = vpop.f32.mrf.mxu1 }
 0x2a3   : > { %v7936_v15 = vpop.f32.mrf.mxu0  ;;  %8563 = vst [vmem:[#allocation29_spill] sm:$0xff] %v7938_v12  ;;  %v6808_v12 = vld [vmem:[#allocation8 + $0xc8] sm:$0xff]  }
 0x2a4   : > { %8562 = vst [vmem:[#allocation28_spill] sm:$0xff] %v7936_v15  ;;  %v7942_v9 = vpop.f32.mrf.mxu1  ;;  %v6806_v15 = vld [vmem:[#allocation8 + $0x48] sm:$0xff]   ;;  %6220 = vmatprep.subr.bf16.mxu0 %v6808_v12  ;;  %v5918_v12 = vadd.f32 %v7842_v34, %v7840_v52  ;;  %v5974_v52 = vadd.f32 %v7870_v39, %v7866_v16  ;;  %v5949_v34 = vadd.f32 %v7868_v47, %v7864_v50 }
 0x2a5   : > { %v7940_v14 = vpop.f32.mrf.mxu0  ;;  %8565 = vst [vmem:[#allocation31_spill] sm:$0xff] %v7942_v9  ;;  %6192 = vmatprep.subr.bf16.mxu1 %v6806_v15  ;;  %v6812_v9 = vld [vmem:[#allocation8 + $0xc0] sm:$0xff]   ;;  %6221 = vmatpush3.bf16.msra.mxu0 %v6809_v2  ;;  %v5977_v16 = vadd.f32 %v7878_v38, %v7874_v25  ;;  %v5927_v50 = vadd.f32 %v7862_v0, %v7858_v28 }
 0x2a6   : > { %8564 = vst [vmem:[#allocation30_spill] sm:$0xff] %v7940_v14  ;;  %v7946_v6 = vpop.f32.mrf.mxu1  ;;  %v6810_v14 = vld [vmem:[#allocation8 + $0x40] sm:$0xff]   ;;  %6193 = vmatpush3.bf16.msra.mxu1 %v6807_v54  ;;  %6222 = vmatprep.subr.bf16.mxu0 %v6812_v9  ;;  %v5946_v54 = vadd.f32 %v7860_v37, %v7856_v26  ;;  %v5921_v9 = vadd.f32 %v7846_v29, %v7844_v57 }
 0x2a7   : > { %v7944_v44 = vpop.f32.mrf.mxu0  ;;  %8567 = vst [vmem:[#allocation33_spill] sm:$0xff] %v7946_v6  ;;  %6194 = vmatprep.subr.bf16.mxu1 %v6810_v14  ;;  %v2341_v14 = vadd.f32 %v5918_v12, %v7832_v24  ;;  %v5924_v26 = vadd.f32 %v7854_v46, %v7850_v40  ;;  %v6002_v24 = vadd.f32 %v7892_v20, %v7888_v51 }
 0x2a8   : > { %8566 = vst [vmem:[#allocation32_spill] sm:$0xff] %v7944_v44  ;;  %v7950_v31 = vpop.f32.mrf.mxu1  ;;  %v6813_v44 = vld [vmem:[#allocation8 + $0x80] sm:$0xff]   ;;  %v5952_v57 = vadd.f32 %v7876_v5, %v7872_v8  ;;  %v6030_v47 = vadd.f32 %v7902_v60, %v7898_v18  ;;  %v6005_v51 = vadd.f32 %v7900_v45, %v7896_v61  ;;  %v5899_v8 = vadd.f32 %v7852_v19, %v7848_v41 }
 0x2a9   : > { %v7948_v21 = vpop.f32.mrf.mxu0  ;;  %6223 = vmatpush3.bf16.msra.mxu0 %v6813_v44  ;;  %v5893_v44 = vadd.f32 %v7836_v13, %v7834_v56  ;;  %v2349_v39 = vadd.f32 %v5924_v26, %v7838_v36  ;;  %v5980_v25 = vadd.f32 %v7886_v35, %v7882_v33  ;;  %v5955_v36 = vadd.f32 %v7884_v22, %v7880_v17 }
 0x2aa   : > { %8568 = vst [vmem:[#allocation34_spill] sm:$0xff] %v7948_v21  ;;  %v7954_v6 = vpop.f32.mrf.mxu1  ;;  %6195 = vmatpush3.bf16.msra.mxu1 %v6811_v4  ;;  %6264 = vmatprep.subr.bf16.mxu0 %v6816_v10  ;;  %v2390_v4 = vadd.f32 %v5946_v54, %v2341_v14  ;;  %v6058_v0 = vadd.f32 %v7924_v7, %v7920_v3 }
 0x2ab   : > { %8569 = vst [vmem:[#allocation35_spill] sm:$0xff] %v7954_v6  ;;  %6236 = vmatprep.subr.bf16.mxu1 %v6814_v55  ;;  %v2344_v55 = vadd.f32 %v5921_v9, %v5893_v44  ;;  %v2398_v5 = vadd.f32 %v5952_v57, %v2349_v39  ;;  %v2352_v20 = vadd.f32 %v5927_v50, %v5899_v8  ;;  %v8572_v44 = vld [vmem:[#allocation29_spill] sm:$0xff] }
 0x2ac   : > { %v7960_v2 = vpop.f32.mrf.mxu1  ;;  %v2439_v56 = vadd.f32 %v5974_v52, %v2390_v4  ;;  %v6008_v18 = vadd.f32 %v7908_v1, %v7904_v59  ;;  %v6033_v41 = vadd.f32 %v7910_v58, %v7906_v62  ;;  %v5983_v17 = vadd.f32 %v7894_v32, %v7890_v48  ;;  %v8570_v32 = vld [vmem:[#allocation28_spill] sm:$0xff] }
 0x2ad   : > { %v2393_v13 = vadd.f32 %v5949_v34, %v2344_v55  ;;  %v2447_v19 = vadd.f32 %v5980_v25, %v2398_v5  ;;  %v2401_v33 = vadd.f32 %v5955_v36, %v2352_v20  ;;  %v6086_v3 = vadd.f32 %v7934_v49, %v7930_v42  ;;  %v8571_v54 = vld [vmem:[#allocation30_spill] sm:$0xff] }
 0x2ae   : > { %v2488_v46 = vadd.f32 %v6002_v24, %v2439_v56  ;;  %v6061_v7 = vadd.f32 %v7932_v30, %v7928_v43  ;;  %v6036_v1 = vadd.f32 %v7918_v27, %v7914_v23  ;;  %v6011_v62 = vadd.f32 %v7916_v11, %v7912_v53  ;;  %v8573_v43 = vld [vmem:[#allocation31_spill] sm:$0xff]  ;;  %v8574_v23 = vld [vmem:[#allocation26_spill] sm:$0xff] }
 0x2af   : > { %v2442_v28 = vadd.f32 %v5977_v16, %v2393_v13  ;;  %v2496_v59 = vadd.f32 %v6008_v18, %v2447_v19  ;;  %v2450_v48 = vadd.f32 %v5983_v17, %v2401_v33  ;;  %v6064_v14 = vadd.f32 %v8571_v54, %v8570_v32  ;;  %v8575_v27 = vld [vmem:[#allocation27_spill] sm:$0xff]  ;;  %v8577_v57 = vld [vmem:[#allocation32_spill] sm:$0xff] }
 0x2b0   : > { %v2537_v45 = vadd.f32 %v6030_v47, %v2488_v46  ;;  %v6089_v30 = vadd.f32 %v8573_v43, %v8572_v44  ;;  %v6039_v34 = vadd.f32 %v8575_v27, %v8574_v23 }
 0x2b1   : > { %v2491_v60 = vadd.f32 %v6005_v51, %v2442_v28  ;;  %v2545_v4 = vadd.f32 %v6036_v1, %v2496_v59  ;;  %v2499_v52 = vadd.f32 %v6011_v62, %v2450_v48  ;;  %v8578_v56 = vld [vmem:[#allocation34_spill] sm:$0xff]  ;;  %v5672_v28 = vld [vmem:[%s277_s16] ss:$0 sm:$0xff] }
 0x2b2   : > { %v2586_v35 = vadd.f32 %v6058_v0, %v2537_v45  ;;  %v6067_v13 = vadd.f32 %v8578_v56, %v8577_v57 }
 0x2b3   : > { %v2540_v10 = vadd.f32 %v6033_v41, %v2491_v60  ;;  %v2548_v46 = vadd.f32 %v6039_v34, %v2499_v52 }
 0x2b4   : > { %v2635_v42 = vadd.f32 %v6086_v3, %v2586_v35 }
 0x2b5   : > { %v2589_v49 = vadd.f32 %v6061_v7, %v2540_v10 }
 0x2b7   : > { %v2638_v50 = vadd.f32 %v6089_v30, %v2589_v49 }
 0x2bb   : > { %v7952_v63 = vpop.f32.mrf.mxu0 }
 0x2bd   : > { %v6113_v15 = vpop.f32.mrf.mxu0 }
 0x2be   : > { %v6140_v6 = vpop.f32.mrf.mxu1  ;;  %v6114_v12 = vadd.f32 %v6113_v15, %v7952_v63  ;;  %v2594_v63 = vadd.f32 %v6064_v14, %v2545_v4  ;;  %v8576_v15 = vld [vmem:[#allocation33_spill] sm:$0xff] }
 0x2bf   : > { %v6115_v21 = vpop.f32.mrf.mxu0  ;;  %v6092_v24 = vadd.f32 %v7950_v31, %v8576_v15 }
 0x2c0   : > { %v6141_v29 = vpop.f32.mrf.mxu1  ;;  %v2684_v11 = vadd.f32 %v6114_v12, %v2635_v42 }
 0x2c1   : > { %v6116_v37 = vpop.f32.mrf.mxu0  ;;  %v6142_v26 = vadd.f32 %v6141_v29, %v6140_v6  ;;  %v2643_v6 = vadd.f32 %v6092_v24, %v2594_v63 }
 0x2c2   : > { %v6143_v38 = vpop.f32.mrf.mxu1  ;;  %v6117_v55 = vadd.f32 %v6116_v37, %v6115_v21  ;;  %v2597_v21 = vadd.f32 %v6067_v13, %v2548_v46  ;;  %v8579_v37 = vld [vmem:[#allocation35_spill] sm:$0xff] }
 0x2c3   : > { %v6118_v40 = vpop.f32.mrf.mxu0  ;;  %v2733_v8 = vadd.f32 %v6142_v26, %v2684_v11  ;;  %v6095_v29 = vadd.f32 %v7960_v2, %v8579_v37 }
 0x2c4   : > { %v6144_v22 = vpop.f32.mrf.mxu1  ;;  %v2687_v5 = vadd.f32 %v6117_v55, %v2638_v50 }
 0x2c5   : > { %v6119_v61 = vpop.f32.mrf.mxu0  ;;  %v6145_v25 = vadd.f32 %v6144_v22, %v6143_v38  ;;  %v2646_v33 = vadd.f32 %v6095_v29, %v2597_v21 }
 0x2c6   : > { %v6146_v9 = vpop.f32.mrf.mxu1  ;;  %v6120_v47 = vadd.f32 %v6119_v61, %v6118_v40 }
 0x2c7   : > { %v6121_v58 = vpop.f32.mrf.mxu0  ;;  %v2736_v40 = vadd.f32 %v6145_v25, %v2687_v5 }
 0x2c8   : > { %v6147_v16 = vpop.f32.mrf.mxu1  ;;  %v2692_v18 = vadd.f32 %v6120_v47, %v2643_v6 }
 0x2c9   : > { %v6122_v53 = vpop.f32.mrf.mxu0  ;;  %v6148_v45 = vadd.f32 %v6147_v16, %v6146_v9 }
 0x2ca   : > { %v6149_v31 = vpop.f32.mrf.mxu1  ;;  %v6123_v60 = vadd.f32 %v6122_v53, %v6121_v58 }
 0x2cb   : > { %v2741_v3 = vadd.f32 %v6148_v45, %v2692_v18 }
 0x2cc   : > { %v6150_v38 = vpop.f32.mrf.mxu1  ;;  %v2695_v7 = vadd.f32 %v6123_v60, %v2646_v33 }
 0x2cd   : > { %v6151_v59 = vadd.f32 %v6150_v38, %v6149_v31 }
 0x2cf   : > { %v2744_v32 = vadd.f32 %v6151_v59, %v2695_v7 }
 0x2db   : > { %v6168_v39 = vpop.f32.mrf.mxu0 }
 0x2dd   : > { %v6169_v51 = vpop.f32.mrf.mxu0 }
 0x2de   : > { %v6170_v36 = vadd.f32 %v6169_v51, %v6168_v39 }
 0x2df   : > { %v6171_v0 = vpop.f32.mrf.mxu0 }
 0x2e0   : > { %v2782_v20 = vadd.f32 %v6170_v36, %v2733_v8 }
 0x2e1   : > { %v6172_v41 = vpop.f32.mrf.mxu0 }
 0x2e2   : > { %v2803_v61 = vmul.f32 %v5672_v28, %v2782_v20  ;;  %v6173_v19 = vadd.f32 %v6172_v41, %v6171_v0  ;;  %v6822_v41 = vld [vmem:[#allocation8 + $0x168] sm:$0xff]  }
 0x2e3   : > { %v6174_v17 = vpop.f32.mrf.mxu0 }
 0x2e4   : > { %v5673_v22 = vmul.f32 -1.442695, %v2803_v61  ;;  %v2785_v35 = vadd.f32 %v6173_v19, %v2736_v40 }
 0x2e5   : > { %v6175_v2 = vpop.f32.mrf.mxu0 }
 0x2e6   : > { %6998 = vpow2.f32 %v5673_v22  ;;  %v2804_v1 = vmul.f32 %v5672_v28, %v2785_v35  ;;  %v6176_v62 = vadd.f32 %v6175_v2, %v6174_v17  ;;  %v6821_v17 = vld [vmem:[#allocation8 + $0x1b0] sm:$0xff]  }
 0x2e7   : > { %v6177_v10 = vpop.f32.mrf.mxu0 }
 0x2e8   : > { %v5674_v12 = vmul.f32 -1.442695, %v2804_v1  ;;  %v2790_v48 = vadd.f32 %v6176_v62, %v2741_v3 }
 0x2e9   : > { %v6178_v58 = vpop.f32.mrf.mxu0 }
 0x2ea   : > { %7000 = vpow2.f32 %v5674_v12  ;;  %v2805_v54 = vmul.f32 %v5672_v28, %v2790_v48  ;;  %v6179_v14 = vadd.f32 %v6178_v58, %v6177_v10 }
 0x2ec   : > { %v5675_v9 = vmul.f32 -1.442695, %v2805_v54  ;;  %v2793_v42 = vadd.f32 %v6179_v14, %v2744_v32 }
 0x2ee   : > { %7002 = vpow2.f32 %v5675_v9  ;;  %v2806_v49 = vmul.f32 %v5672_v28, %v2793_v42  ;;  %v6819_v28 = vld [vmem:[#allocation8 + $0x130] sm:$0xff]  }
 0x2f0   : > { %v5676_v44 = vmul.f32 -1.442695, %v2806_v49 }
 0x2f2   : > { %7004 = vpow2.f32 %v5676_v44 }
 0x2f3   : > { %v6999_v43 = vpop.eup %6998 }
 0x2f4   : > { %v2819_v30 = vadd.f32 1.0, %v6999_v43 }
 0x2f6   : > { %7006 = vrcp.f32 %v2819_v30 }
 0x2f7   : > { %v7001_v4 = vpop.eup %7000 }
 0x2f8   : > { %v2820_v52 = vadd.f32 1.0, %v7001_v4 }
 0x2fa   : > { %7008 = vrcp.f32 %v2820_v52 }
 0x2fb   : > { %v7003_v23 = vpop.eup %7002 }
 0x2fc   : > { %v2821_v27 = vadd.f32 1.0, %v7003_v23 }
 0x2fe   : > { %7010 = vrcp.f32 %v2821_v27 }
 0x2ff   : > { %v7005_v34 = vpop.eup %7004 }
 0x300   : > { %v2822_v53 = vadd.f32 1.0, %v7005_v34 }
 0x302   : > { %7012 = vrcp.f32 %v2822_v53 }
 0x303   : > { %v7007_v11 = vpop.eup %7006 }
 0x304   : > { %v2831_v26 = vmul.f32 %v7007_v11, %v2803_v61 }
 0x306   : > { %v2835_v15 = vmul.f32 1.6778524, %v2831_v26 }
 0x307   : > { %v7009_v55 = vpop.eup %7008 }
 0x308   : > { %v2832_v63 = vmul.f32 %v7009_v55, %v2804_v1 }
 0x30a   : > { %v2836_v24 = vmul.f32 1.6778524, %v2832_v63 }
 0x30b   : > { %v7011_v56 = vpop.eup %7010 }
 0x30c   : > { %v2839_v57 = vpack.c.bf16 %v2836_v24, %v2835_v15  ;;  %v2833_v51 = vmul.f32 %v7011_v56, %v2805_v54 }
 0x30e   : > { %v2842_v13 = vshrl.u32 %v2839_v57, 16  ;;  %v2851_v16 = vshll.u32 %v2839_v57, 16  ;;  %v2837_v20 = vmul.f32 1.6778524, %v2833_v51  ;;  %v6818_v51 = vld [vmem:[#allocation8 + $0x170] sm:$0xff]  }
 0x30f   : > { %v7013_v39 = vpop.eup %7012 }
 0x310   : > { %v2844_v50 = vrot.slane %v2842_v13, 2  ;;  %v2853_v46 = vrot.slane %v2851_v16, 2  ;;  %v2863_v47 = vrot.slane %v2842_v13, 5  ;;  %v2864_v8 = vrot.slane %v2851_v16, 6 }
 0x311   : > { %v2834_v36 = vmul.f32 %v7013_v39, %v2806_v49  ;;  %v2861_v6 = vrot.slane %v2842_v13, 6  ;;  %v2871_v37 = vrot.slane %v2851_v16, 5  ;;  %v2875_v31 = vrot.slane %v2842_v13, 3 }
 0x312   : > { %v2887_v25 = vsel %vm7500_vm1, %v2844_v50, %v2853_v46  ;;  %v2865_v21 = vor.u32 %v2864_v8, %v2863_v47  ;;  %v2877_v45 = vrot.slane %v2851_v16, 3  ;;  %v2881_v61 = vrot.slane %v2842_v13, 1 }
 0x313   : > { %v2891_v29 = vsel %vm461_vm9, %v2887_v25, %v2842_v13  ;;  %v2838_v18 = vmul.f32 1.6778524, %v2834_v36  ;;  %v2883_v7 = vrot.slane %v2851_v16, 1  ;;  %v6815_v13 = vld [vmem:[#allocation8 + $0x138] sm:$0xff]  }
 0x314   : > { %v2897_v0 = vsel %vm7506_vm3, %v2891_v29, %v2851_v16  ;;  %v2909_v40 = vsel %vm7514_vm4, %v2865_v21, %v2871_v37 }
 0x315   : > { %v2901_v60 = vsel %vm475_vm10, %v2897_v0, %v2861_v6  ;;  %v2913_v33 = vsel %vm489_vm13, %v2909_v40, %v2875_v31  ;;  %v2840_v38 = vpack.c.bf16 %v2838_v18, %v2837_v20  ;;  %v6820_v0 = vld [vmem:[#allocation8 + $0x1f0] sm:$0xff]  }
 0x316   : > { %v8033_v19 = vsel %vm7514_vm4, %v2901_v60, %v2865_v21  ;;  %v2919_v22 = vsel %vm7523_vm6, %v2913_v33, %v2877_v45  ;;  %v6817_v21 = vld [vmem:[#allocation8 + $0x1b8] sm:$0xff]  }
 0x317   : > { %v8039_v35 = vshrl.u32 %v8033_v19, 16  ;;  %v8042_v3 = vshll.u32 %v8033_v19, 16  ;;  %v2923_v2 = vsel %vm505_vm14, %v2919_v22, %v2881_v61  ;;  %v2846_v59 = vshrl.u32 %v2840_v38, 16 }
 0x318   : > { %v2854_v1 = vshll.u32 %v2840_v38, 16  ;;  %v8048_v32 = vsel %vm7532_vm7, %v2923_v2, %v2883_v7  ;;  %v2961_v6 = vrot.slane %v8033_v19, 1 }
 0x319   : > { %v2936_v62 = vrot.slane %v8042_v3, 1  ;;  %v2848_v10 = vrot.slane %v2846_v59, 2  ;;  %v2866_v48 = vrot.slane %v2846_v59, 5  ;;  %v2862_v54 = vrot.slane %v2846_v59, 6 }
 0x31a   : > { %v2856_v12 = vrot.slane %v2854_v1, 2  ;;  %v2867_v14 = vrot.slane %v2854_v1, 6  ;;  %v2969_v9 = vrot.slane %v8039_v35, 1  ;;  %v2970_v42 = vrot.slane %v8042_v3, 2 }
 0x31b   : > { %v2872_v49 = vrot.slane %v2854_v1, 5  ;;  %v2876_v44 = vrot.slane %v2846_v59, 3  ;;  %v2937_v30 = vor.u32 %v2936_v62, %v8039_v35  ;;  %v8057_v23 = vshll.u32 %v8048_v32, 16  ;;  %v6823_v62 = vld [vmem:[#allocation8 + $0x128] sm:$0xff]  }
 0x31c   : > { %v2888_v43 = vsel %vm7500_vm1, %v2848_v10, %v2856_v12  ;;  %v2868_v4 = vor.u32 %v2867_v14, %v2866_v48  ;;  %v8060_v27 = vshrl.u32 %v8048_v32, 16  ;;  %v2878_v34 = vrot.slane %v2854_v1, 3  ;;  %v6824_v14 = vld [vmem:[#allocation8 + $0x1e8] sm:$0xff]  }
 0x31d   : > { %v2895_v52 = vsel %vm461_vm9, %v2888_v43, %v2846_v59  ;;  %v2882_v53 = vrot.slane %v2846_v59, 1  ;;  %v2884_v11 = vrot.slane %v2854_v1, 1  ;;  %v2941_v15 = vrot.slane %v8057_v23, 1 }
 0x31e   : > { %v2898_v26 = vsel %vm7506_vm3, %v2895_v52, %v2854_v1  ;;  %v2910_v63 = vsel %vm7514_vm4, %v2868_v4, %v2872_v49  ;;  %v2974_v24 = vrot.slane %v8060_v27, 1  ;;  %v2975_v16 = vrot.slane %v8057_v23, 2  ;;  %v6827_v52 = vld [vmem:[#allocation8 + $0x120] sm:$0xff]  }
 0x31f   : > { %v2905_v55 = vsel %vm475_vm10, %v2898_v26, %v2862_v54  ;;  %v2917_v56 = vsel %vm489_vm13, %v2910_v63, %v2876_v44  ;;  %v8076_v39 = vrot.slane %v8048_v32, 1  ;;  %v8081_v46 = vsel %vm524_vm5, %v2937_v30, %v2941_v15  ;;  %v6830_v26 = vld [vmem:[#allocation8 + $0x158] sm:$0xff]  }
 0x320   : > { %v8071_v57 = vsel %vm7514_vm4, %v2905_v55, %v2868_v4  ;;  %v2920_v50 = vsel %vm7523_vm6, %v2917_v56, %v2878_v34  ;;  %v8084_v47 = vor.u32 %v8060_v27, %v2941_v15  ;;  %4691 = vmatprep.mubr.bf16.mxu1 %v8081_v46  ;;  %v2971_v25 = vor.u32 %v2970_v42, %v2969_v9  ;;  %v6826_v42 = vld [vmem:[#allocation8 + $0x160] sm:$0xff]   ;;  %v6825_v4 = vld [vmem:[#allocation8 + $0x1a8] sm:$0xff]  }
 0x321   : > { %v8087_v8 = vshrl.u32 %v8071_v57, 16  ;;  %v2927_v5 = vsel %vm505_vm14, %v2920_v50, %v2882_v53  ;;  %v8091_v36 = vor.u32 %v2975_v16, %v2974_v24  ;;  %4692 = vmatmul.mubr.bf16.vlgmr.msra.gmra.mxu1 %v8033_v19  ;;  %v8100_v29 = vshll.u32 %v8071_v57, 16  ;;  %v6828_v34 = vld [vmem:[#allocation8 + $0x1e0] sm:$0xff]   ;;  %v6832_v16 = vld [vmem:[#allocation8 + $0x1d8] sm:$0xff]   ;;  %v6834_v50 = vld [vmem:[#allocation8 + $0x150] sm:$0xff]  }
 0x322   : > { %v8097_v37 = vsel %vm7532_vm7, %v2927_v5, %v2884_v11  ;;  %6237 = vmatpush3.bf16.msra.mxu1 %v6815_v13  ;;  %vm8585_vm9 = vcmask 1046528   ;;  %v2997_v2 = vrot.slane %v8039_v35, 2  ;;  %v2998_v59 = vrot.slane %v8042_v3, 3  ;;  %v6829_v24 = vld [vmem:[#allocation8 + $0x1a0] sm:$0xff]   ;;  %v6831_v13 = vld [vmem:[#allocation8 + $0x118] sm:$0xff]  }
 0x323   : > { %v8104_v31 = vsel %vm564_vm8, %v2971_v25, %v8091_v36  ;;  %v8107_v20 = vshll.u32 %v8097_v37, 16  ;;  %v8112_v18 = vsel %vm8585_vm9, %v2961_v6, %v8076_v39  ;;  %6238 = vmatprep.subr.bf16.mxu1 %v6818_v51  ;;  %v2948_v45 = vrot.slane %v8100_v29, 1  ;;  %vm8586_vm10 = vmmov %vm8585_vm9  ;;  %v6833_v25 = vld [vmem:[#allocation8 + $0x198] sm:$0xff]  }
 0x324   : > { %4740 = vmatprep.mubr.bf16.mxu0 %v8104_v31  ;;  %v8116_v60 = vshrl.u32 %v8097_v37, 16  ;;  %v2978_v40 = vrot.slane %v8087_v8, 1  ;;  %v2979_v33 = vrot.slane %v8100_v29, 2  ;;  %v3000_v10 = vrot.slane %v8060_v27, 2 }
 0x325   : > { %4741 = vmatmul.mubr.bf16.vlgmr.msra.gmra.mxu0 %v8112_v18  ;;  %v2953_v61 = vrot.slane %v8107_v20, 1  ;;  %v2984_v38 = vrot.slane %v8107_v20, 2  ;;  %v2949_v22 = vor.u32 %v2948_v45, %v8087_v8  ;;  %v3001_v12 = vrot.slane %v8057_v23, 3  ;;  %v6837_v45 = vld [vmem:[#allocation8 + $0x190] sm:$0xff]  }
 0x326   : > { %6265 = vmatpush3.bf16.msra.mxu0 %v6817_v21  ;;  %v2983_v7 = vrot.slane %v8116_v60, 1  ;;  %6239 = vmatpush3.bf16.msra.mxu1 %v6819_v28  ;;  %v2980_v58 = vor.u32 %v2979_v33, %v2978_v40  ;;  %v8138_v9 = vrot.slane %v8097_v37, 1  ;;  %v2999_v43 = vor.u32 %v2998_v59, %v2997_v2  ;;  %v6835_v21 = vld [vmem:[#allocation8 + $0x110] sm:$0xff]   ;;  %v6840_v40 = vld [vmem:[#allocation8 + $0x1c8] sm:$0xff]   ;;  %v6842_v33 = vld [vmem:[#allocation8 + $0x140] sm:$0xff]  }
 0x327   : > { %6266 = vmatprep.subr.bf16.mxu0 %v6820_v0  ;;  %v8128_v1 = vor.u32 %v8116_v60, %v2953_v61  ;;  %v8133_v48 = vsel %vm524_vm5, %v2949_v22, %v2953_v61  ;;  %6240 = vmatprep.subr.bf16.mxu1 %v6822_v41  ;;  %v8141_v49 = vor.u32 %v3001_v12, %v3000_v10  ;;  %v2964_v30 = vrot.slane %v8071_v57, 1  ;;  %v6836_v28 = vld [vmem:[#allocation8 + $0x1d0] sm:$0xff]   ;;  %v6838_v0 = vld [vmem:[#allocation8 + $0x148] sm:$0xff]   ;;  %v6844_v10 = vld [vmem:[#allocation8 + $0x1c0] sm:$0xff]  }
 0x328   : > { %v8135_v54 = vor.u32 %v2984_v38, %v2983_v7  ;;  %4699 = vmatprep.mubr.bf16.mxu1 %v8133_v48  ;;  %v3021_v55 = vrot.slane %v8039_v35, 3  ;;  %v3022_v63 = vrot.slane %v8042_v3, 4  ;;  %v3024_v15 = vrot.slane %v8060_v27, 3  ;;  %v6839_v41 = vld [vmem:[#allocation8 + $0x108] sm:$0xff]  }
 0x329   : > { %4700 = vmatmul.mubr.bf16.gmra.mxu1 %v8071_v57  ;;  %v8152_v53 = vsel %vm594_vm12, %v2999_v43, %v8141_v49  ;;  %v8156_v11 = vsel %vm8586_vm10, %v2964_v30, %v8138_v9  ;;  %v3025_v56 = vrot.slane %v8057_v23, 4  ;;  %v3007_v38 = vrot.slane %v8116_v60, 2  ;;  %v6841_v7 = vld [vmem:[#allocation8 + $0x188] sm:$0xff]  }
 0x32a   : > { %6267 = vmatpush3.bf16.msra.mxu0 %v6821_v17  ;;  %v8146_v44 = vsel %vm564_vm8, %v2980_v58, %v8135_v54  ;;  %6241 = vmatpush3.bf16.msra.mxu1 %v6823_v62  ;;  %v3023_v51 = vor.u32 %v3022_v63, %v3021_v55  ;;  %v3089_v61 = vshrl.u32 %v8156_v11, 16  ;;  %v3008_v17 = vrot.slane %v8107_v20, 3  ;;  %v6843_v62 = vld [vmem:[#allocation8 + $0x100] sm:$0xff]  }
 0x32b   : > { %4748 = vmatprep.mubr.bf16.mxu0 %v8146_v44  ;;  %6268 = vmatprep.subr.bf16.mxu0 %v6824_v14  ;;  %v3026_v5 = vor.u32 %v3025_v56, %v3024_v15  ;;  %v8169_v22 = vrot.slane %v8097_v37, 2  ;;  %v2989_v2 = vrot.slane %v8033_v19, 2  ;;  %v3092_v59 = vshll.u32 %v8156_v11, 16  ;;  %v6845_v15 = vld [vmem:[#allocation8 + $0x180] sm:$0xff]  }
 0x32c   : > { %6242 = vmatprep.subr.bf16.mxu1 %v6826_v42  ;;  %4789 = vmatprep.mubr.bf16.mxu1 %v8152_v53  ;;  %v3004_v12 = vrot.slane %v8087_v8, 2  ;;  %v3005_v58 = vrot.slane %v8100_v29, 3  ;;  %v2992_v14 = vrot.slane %v8071_v57, 2  ;;  %v8176_v42 = vrot.slane %v3089_v61, 2 }
 0x32d   : > { %4749 = vmatmul.mubr.bf16.gmra.mxu0 %v8156_v11  ;;  %v3027_v6 = vsel %vm520_vm0, %v3023_v51, %v3026_v5  ;;  %v3097_v43 = vshrl.u32 %v8138_v9, 16  ;;  %v3100_v30 = vshll.u32 %v8138_v9, 16  ;;  %v3032_v55 = vrot.slane %v8107_v20, 4  ;;  %v6847_v51 = vld [vmem:[#allocation8 + $0x238] sm:$0xff]  }
 0x32e   : > { %6269 = vmatpush3.bf16.msra.mxu0 %v6825_v4  ;;  %6243 = vmatpush3.bf16.msra.mxu1 %v6827_v52  ;;  %v8181_v4 = vrot.slane %v8048_v32, 2  ;;  %v6846_v52 = vld [vmem:[#allocation8 + $0x278] sm:$0xff]   ;;  %v8189_v63 = vsel %vm585_vm11, %v2992_v14, %v8169_v22  ;;  %v3041_v9 = vrot.slane %v8097_v37, 4  ;;  %v3064_v56 = vrot.slane %v8071_v57, 5  ;;  %v6852_v14 = vld [vmem:[#allocation8 + $0x2f0] sm:$0xff]  }
 0x32f   : > { %6270 = vmatprep.subr.bf16.mxu0 %v6828_v34  ;;  %6244 = vmatprep.subr.bf16.mxu1 %v6830_v26  ;;  %v8183_v34 = vor.u32 %v3008_v17, %v3007_v38  ;;  %v3031_v26 = vrot.slane %v8116_v60, 3  ;;  %v3028_v5 = vrot.slane %v8087_v8, 3  ;;  %v3013_v61 = vrot.slane %v8033_v19, 3  ;;  %v6849_v17 = vld [vmem:[#allocation8 + $0x2b8] sm:$0xff]  }
 0x330   : > { %4838 = vmatprep.mubr.bf16.mxu0 %v3027_v6  ;;  %v8199_v6 = vsel %vm585_vm11, %v2989_v2, %v8181_v4  ;;  %v3123_v38 = vshrl.u32 %v8189_v63, 16  ;;  %v3048_v2 = vrot.slane %v8060_v27, 4  ;;  %v3046_v27 = vrot.slane %v8042_v3, 5 }
 0x332   : > { %6271 = vmatpush3.bf16.msra.mxu0 %v6829_v24  ;;  %6245 = vmatpush3.bf16.msra.mxu1 %v6831_v13  ;;  %v3040_v24 = vrot.slane %v8071_v57, 4  ;;  %v3065_v13 = vrot.slane %v8097_v37, 5 }
 0x333   : > { %6272 = vmatprep.subr.bf16.mxu0 %v6832_v16  ;;  %6246 = vmatprep.subr.bf16.mxu1 %v6834_v50  ;;  %v3094_v16 = vrot.slane %v3092_v59, 3  ;;  %v3006_v50 = vor.u32 %v3005_v58, %v3004_v12  ;;  %v3049_v59 = vrot.slane %v8057_v23, 5  ;;  %v6851_v58 = vld [vmem:[#allocation8 + $0x230] sm:$0xff]  }
 0x336   : > { %6273 = vmatpush3.bf16.msra.mxu0 %v6833_v25  ;;  %6247 = vmatpush3.bf16.msra.mxu1 %v6835_v21  ;;  %v3029_v25 = vrot.slane %v8100_v29, 4  ;;  %v3014_v21 = vrot.slane %v8048_v32, 3 }
 0x337   : > { %6274 = vmatprep.subr.bf16.mxu0 %v6836_v28  ;;  %6248 = vmatprep.subr.bf16.mxu1 %v6838_v0  ;;  %v6848_v28 = vld [vmem:[#allocation8 + $0x2f8] sm:$0xff]   ;;  %v6850_v0 = vld [vmem:[#allocation8 + $0x270] sm:$0xff]  }
 0x338   : > { %v3030_v12 = vor.u32 %v3029_v25, %v3028_v5  ;;  %v6858_v5 = vld [vmem:[#allocation8 + $0x260] sm:$0xff]   ;;  %v3016_v25 = vrot.slane %v8071_v57, 3 }
 0x33a   : > { %6275 = vmatpush3.bf16.msra.mxu0 %v6837_v45  ;;  %6249 = vmatpush3.bf16.msra.mxu1 %v6839_v41  ;;  %v8203_v45 = vsel %vm505_vm14, %v3040_v24, %v3041_v9  ;;  %v8206_v41 = vsel %vm489_vm13, %v3064_v56, %v3065_v13  ;;  %v6853_v24 = vld [vmem:[#allocation8 + $0x2b0] sm:$0xff]   ;;  %v3125_v9 = vrot.slane %v3123_v38, 2  ;;  %v3134_v56 = vshll.u32 %v8169_v22, 16  ;;  %v6860_v38 = vld [vmem:[#allocation8 + $0x2e0] sm:$0xff]  }
 0x33b   : > { %6276 = vmatprep.subr.bf16.mxu0 %v6840_v40  ;;  %6250 = vmatprep.subr.bf16.mxu1 %v6842_v33  ;;  %v8210_v40 = vsel %vm594_vm12, %v3006_v50, %v8183_v34  ;;  %v3033_v33 = vor.u32 %v3032_v55, %v3031_v26  ;;  %v3015_v26 = vsel %vm519_vm2, %v3013_v61, %v3014_v21  ;;  %v6854_v55 = vld [vmem:[#allocation8 + $0x268] sm:$0xff]   ;;  %v3017_v50 = vrot.slane %v8097_v37, 3  ;;  %v6862_v37 = vld [vmem:[#allocation8 + $0x258] sm:$0xff]  }
 0x33c   : > { %v3050_v13 = vor.u32 %v3049_v59, %v3048_v2  ;;  %v3136_v61 = vrot.slane %v3134_v56, 3  ;;  %v6861_v2 = vld [vmem:[#allocation8 + $0x2a0] sm:$0xff]   ;;  %v3052_v56 = vrot.slane %v8087_v8, 4 }
 0x33d   : > { %v3034_v23 = vsel %vm520_vm0, %v3030_v12, %v3033_v33  ;;  %v6859_v33 = vld [vmem:[#allocation8 + $0x220] sm:$0xff]   ;;  %v6866_v12 = vld [vmem:[#allocation8 + $0x250] sm:$0xff]  }
 0x33e   : > { %6277 = vmatpush3.bf16.msra.mxu0 %v6841_v7  ;;  %6251 = vmatpush3.bf16.msra.mxu1 %v6843_v62  ;;  %v3126_v7 = vshll.u32 %v8189_v63, 16  ;;  %v3099_v62 = vrot.slane %v3097_v43, 2 }
 0x33f   : > { %6278 = vmatprep.subr.bf16.mxu0 %v6844_v10  ;;  %6292 = vmatprep.subr.bf16.mxu1 %v6846_v52  ;;  %v3095_v10 = vor.u32 %v3094_v16, %v8176_v42  ;;  %v3102_v52 = vrot.slane %v3100_v30, 3  ;;  %v3131_v42 = vshrl.u32 %v8169_v22, 16  ;;  %v6855_v16 = vld [vmem:[#allocation8 + $0x228] sm:$0xff]  }
 0x340   : > { %v3128_v30 = vrot.slane %v3126_v7, 3 }
 0x341   : > { %4790 = vmatmul.mubr.bf16.vlgmr.msra.gmra.mxu1 %v8199_v6  ;;  %v3103_v43 = vor.u32 %v3102_v52, %v3099_v62  ;;  %v6863_v62 = vld [vmem:[#allocation8 + $0x218] sm:$0xff]   ;;  %v6868_v52 = vld [vmem:[#allocation8 + $0x2d0] sm:$0xff]  }
 0x342   : > { %6279 = vmatpush3.bf16.msra.mxu0 %v6845_v15  ;;  %4797 = vmatprep.mubr.bf16.mxu1 %v8210_v40  ;;  %v3045_v15 = vrot.slane %v8039_v35, 4  ;;  %v3129_v21 = vor.u32 %v3128_v30, %v3125_v9  ;;  %v6876_v9 = vld [vmem:[#allocation8 + $0x2c0] sm:$0xff]   ;;  %v6878_v30 = vld [vmem:[#allocation8 + $0x378] sm:$0xff]  }
 0x343   : > { %6293 = vmatpush3.bf16.msra.mxu1 %v6847_v51  ;;  %6320 = vmatprep.subr.bf16.mxu0 %v6848_v28  ;;  %v8227_v35 = vsel %vm594_vm12, %v3095_v10, %v3103_v43  ;;  %v6856_v51 = vld [vmem:[#allocation8 + $0x2e8] sm:$0xff]   ;;  %v6864_v10 = vld [vmem:[#allocation8 + $0x2d8] sm:$0xff]   ;;  %v3056_v43 = vrot.slane %v8107_v20, 5 }
 0x344   : > { %6294 = vmatprep.subr.bf16.mxu1 %v6850_v0  ;;  %v3047_v3 = vor.u32 %v3046_v27, %v3045_v15  ;;  %v6857_v28 = vld [vmem:[#allocation8 + $0x2a8] sm:$0xff]   ;;  %v3133_v0 = vrot.slane %v3131_v42, 2  ;;  %v6874_v27 = vld [vmem:[#allocation8 + $0x240] sm:$0xff]   ;;  %v3055_v42 = vrot.slane %v8116_v60, 4  ;;  %v3037_v60 = vrot.slane %v8033_v19, 4  ;;  %v6879_v20 = vld [vmem:[#allocation8 + $0x338] sm:$0xff]  }
 0x345   : > { %4839 = vmatmul.mubr.bf16.vlgmr.msra.gmra.mxu0 %v3015_v26  ;;  %v6870_v26 = vld [vmem:[#allocation8 + $0x248] sm:$0xff]  }
 0x346   : > { %4846 = vmatprep.mubr.bf16.mxu0 %v3034_v23  ;;  %6321 = vmatpush3.bf16.msra.mxu0 %v6849_v17  ;;  %v3051_v22 = vsel %vm506_vm15, %v3047_v3, %v3050_v13  ;;  %v3018_v17 = vsel %vm519_vm2, %v3016_v25, %v3017_v50  ;;  %v3137_v7 = vor.u32 %v3136_v61, %v3133_v0  ;;  %v6872_v15 = vld [vmem:[#allocation8 + $0x2c8] sm:$0xff]   ;;  %v3053_v13 = vrot.slane %v8100_v29, 5  ;;  %v6877_v3 = vld [vmem:[#allocation8 + $0x280] sm:$0xff]   ;;  %v6880_v25 = vld [vmem:[#allocation8 + $0x3f8] sm:$0xff]  }
 0x347   : > { %6295 = vmatpush3.bf16.msra.mxu1 %v6851_v58  ;;  %6322 = vmatprep.subr.bf16.mxu0 %v6852_v14  ;;  %v6865_v58 = vld [vmem:[#allocation8 + $0x298] sm:$0xff]   ;;  %v6867_v14 = vld [vmem:[#allocation8 + $0x210] sm:$0xff]   ;;  %v6873_v23 = vld [vmem:[#allocation8 + $0x288] sm:$0xff]   ;;  %v3057_v50 = vor.u32 %v3056_v43, %v3055_v42 }
 0x348   : > { %6296 = vmatprep.subr.bf16.mxu1 %v6854_v55  ;;  %v8236_v59 = vsel %vm594_vm12, %v3129_v21, %v3137_v7  ;;  %v6871_v55 = vld [vmem:[#allocation8 + $0x208] sm:$0xff]   ;;  %v6882_v21 = vld [vmem:[#allocation8 + $0x370] sm:$0xff]   ;;  %v6890_v7 = vld [vmem:[#allocation8 + $0x360] sm:$0xff]  }
 0x349   : > { %4798 = vmatmul.mubr.bf16.gmra.mxu1 %v8189_v63  ;;  %v6883_v0 = vld [vmem:[#allocation8 + $0x330] sm:$0xff]   ;;  %v6908_v42 = vld [vmem:[#allocation8 + $0x3c0] sm:$0xff]   ;;  %v6910_v43 = vld [vmem:[#allocation8 + $0x478] sm:$0xff]  }
 0x34a   : > { %6323 = vmatpush3.bf16.msra.mxu0 %v6853_v24  ;;  %4887 = vmatprep.mubr.bf16.mxu1 %v3051_v22  ;;  %v6875_v24 = vld [vmem:[#allocation8 + $0x200] sm:$0xff]   ;;  %v3061_v22 = vrot.slane %v8033_v19, 5  ;;  %v6884_v61 = vld [vmem:[#allocation8 + $0x3f0] sm:$0xff]  }
 0x34b   : > { %6297 = vmatpush3.bf16.msra.mxu1 %v6855_v16  ;;  %6324 = vmatprep.subr.bf16.mxu0 %v6856_v51  ;;  %v3038_v16 = vrot.slane %v8048_v32, 4  ;;  %v3054_v51 = vor.u32 %v3053_v13, %v3052_v56  ;;  %v3080_v56 = vshrl.u32 %v8128_v1, 16  ;;  %v3083_v13 = vshll.u32 %v8128_v1, 16  ;;  %v6913_v1 = vld [vmem:[#allocation8 + $0x4b8] sm:$0xff]  }
 0x34c   : > { %6298 = vmatprep.subr.bf16.mxu1 %v6858_v5  ;;  %v3062_v5 = vrot.slane %v8048_v32, 5  ;;  %v6886_v32 = vld [vmem:[#allocation8 + $0x368] sm:$0xff]  }
 0x34d   : > { %4847 = vmatmul.mubr.bf16.gmra.mxu0 %v3018_v17  ;;  %v3039_v8 = vsel %vm505_vm14, %v3037_v60, %v3038_v16  ;;  %v3058_v29 = vsel %vm506_vm15, %v3054_v51, %v3057_v50  ;;  %v6887_v17 = vld [vmem:[#allocation8 + $0x328] sm:$0xff]   ;;  %v6911_v16 = vld [vmem:[#allocation8 + $0x438] sm:$0xff]   ;;  %v6914_v50 = vld [vmem:[#allocation8 + $0x470] sm:$0xff]   ;;  %v3106_v60 = vshrl.u32 %v8146_v44, 16  ;;  %v3114_v51 = vshrl.u32 %v8135_v54, 16 }
 0x34e   : > { %6325 = vmatpush3.bf16.msra.mxu0 %v6857_v28  ;;  %4936 = vmatprep.mubr.bf16.mxu0 %v8071_v57  ;;  %v6869_v57 = vld [vmem:[#allocation8 + $0x290] sm:$0xff]   ;;  %v6881_v28 = vld [vmem:[#allocation8 + $0x3b8] sm:$0xff]  }
 0x34f   : > { %6299 = vmatpush3.bf16.msra.mxu1 %v6859_v33  ;;  %6326 = vmatprep.subr.bf16.mxu0 %v6860_v38  ;;  %v3063_v33 = vsel %vm489_vm13, %v3061_v22, %v3062_v5  ;;  %v6885_v38 = vld [vmem:[#allocation8 + $0x3b0] sm:$0xff]   ;;  %v3117_v5 = vshll.u32 %v8135_v54, 16  ;;  %v3116_v54 = vrot.slane %v3114_v51, 2 }
 0x350   : > { %6300 = vmatprep.subr.bf16.mxu1 %v6862_v37  ;;  %v6888_v37 = vld [vmem:[#allocation8 + $0x3e8] sm:$0xff]   ;;  %v6915_v22 = vld [vmem:[#allocation8 + $0x430] sm:$0xff]  }
 0x352   : > { %6327 = vmatpush3.bf16.msra.mxu0 %v6861_v2  ;;  %v6889_v2 = vld [vmem:[#allocation8 + $0x3a8] sm:$0xff]  }
 0x353   : > { %6301 = vmatpush3.bf16.msra.mxu1 %v6863_v62  ;;  %6328 = vmatprep.subr.bf16.mxu0 %v6864_v10  ;;  %v6891_v62 = vld [vmem:[#allocation8 + $0x320] sm:$0xff]  }
 0x354   : > { %6302 = vmatprep.subr.bf16.mxu1 %v6866_v12  ;;  %v6892_v10 = vld [vmem:[#allocation8 + $0x3e0] sm:$0xff]  }
 0x355   : > { %v6893_v12 = vld [vmem:[#allocation8 + $0x3a0] sm:$0xff]  }
 0x356   : > { %6329 = vmatpush3.bf16.msra.mxu0 %v6865_v58  ;;  %v6895_v58 = vld [vmem:[#allocation8 + $0x318] sm:$0xff]  }
 0x357   : > { %6303 = vmatpush3.bf16.msra.mxu1 %v6867_v14  ;;  %6330 = vmatprep.subr.bf16.mxu0 %v6868_v52  ;;  %v6896_v14 = vld [vmem:[#allocation8 + $0x3d8] sm:$0xff]  }
 0x358   : > { %6304 = vmatprep.subr.bf16.mxu1 %v6870_v26  ;;  %v6897_v52 = vld [vmem:[#allocation8 + $0x398] sm:$0xff]   ;;  %v6900_v26 = vld [vmem:[#allocation8 + $0x3d0] sm:$0xff]  }
 0x35a   : > { %6331 = vmatpush3.bf16.msra.mxu0 %v6869_v57  ;;  %v6902_v57 = vld [vmem:[#allocation8 + $0x348] sm:$0xff]  }
 0x35b   : > { %6305 = vmatpush3.bf16.msra.mxu1 %v6871_v55  ;;  %6332 = vmatprep.subr.bf16.mxu0 %v6872_v15  ;;  %v6904_v55 = vld [vmem:[#allocation8 + $0x3c8] sm:$0xff]   ;;  %v6906_v15 = vld [vmem:[#allocation8 + $0x340] sm:$0xff]  }
 0x35c   : > { %6306 = vmatprep.subr.bf16.mxu1 %v6874_v27  ;;  %v6905_v27 = vld [vmem:[#allocation8 + $0x388] sm:$0xff]  }
 0x35e   : > { %6333 = vmatpush3.bf16.msra.mxu0 %v6873_v23  ;;  %v6907_v23 = vld [vmem:[#allocation8 + $0x300] sm:$0xff]  }
 0x35f   : > { %6307 = vmatpush3.bf16.msra.mxu1 %v6875_v24  ;;  %6334 = vmatprep.subr.bf16.mxu0 %v6876_v9  ;;  %v3072_v24 = vshrl.u32 %v8133_v48, 16  ;;  %v3075_v9 = vshll.u32 %v8133_v48, 16 }
 0x360   : > { %6348 = vmatprep.subr.bf16.mxu1 %v6878_v30  ;;  %v6909_v30 = vld [vmem:[#allocation8 + $0x380] sm:$0xff]  }
 0x362   : > { %6335 = vmatpush3.bf16.msra.mxu0 %v6877_v3  ;;  %4888 = vmatmul.mubr.bf16.vlgmr.msra.gmra.mxu1 %v3039_v8  ;;  %v6912_v3 = vld [vmem:[#allocation8 + $0x4f8] sm:$0xff]   ;;  %v3082_v8 = vrot.slane %v3080_v56, 2  ;;  %v3191_v56 = vshrl.u32 %v8104_v31, 16 }
 0x363   : > { %4895 = vmatprep.mubr.bf16.mxu1 %v3058_v29  ;;  %6349 = vmatpush3.bf16.msra.mxu1 %v6879_v20  ;;  %v3109_v20 = vshll.u32 %v8146_v44, 16  ;;  %v3085_v29 = vrot.slane %v3083_v13, 3  ;;  %v3194_v13 = vshll.u32 %v8104_v31, 16 }
 0x364   : > { %6376 = vmatprep.subr.bf16.mxu0 %v6880_v25  ;;  %6350 = vmatprep.subr.bf16.mxu1 %v6882_v21  ;;  %v3074_v25 = vrot.slane %v3072_v24, 2  ;;  %v3077_v21 = vrot.slane %v3075_v9, 3  ;;  %v3168_v24 = vshll.u32 %v8084_v47, 16  ;;  %v6935_v9 = vld [vmem:[#allocation8 + $0x408] sm:$0xff]  }
 0x365   : > { %4937 = vmatmul.mubr.bf16.vlgmr.msra.gmra.mxu0 %v3063_v33  ;;  %v3111_v33 = vrot.slane %v3109_v20, 3  ;;  %v6937_v20 = vld [vmem:[#allocation8 + $0x488] sm:$0xff]  }
 0x366   : > { %4944 = vmatprep.mubr.bf16.mxu0 %v8033_v19  ;;  %6377 = vmatpush3.bf16.msra.mxu0 %v6881_v28  ;;  %v6894_v19 = vld [vmem:[#allocation8 + $0x358] sm:$0xff]   ;;  %v6916_v28 = vld [vmem:[#allocation8 + $0x4f0] sm:$0xff]  }
 0x367   : > { %6351 = vmatpush3.bf16.msra.mxu1 %v6883_v0  ;;  %6378 = vmatprep.subr.bf16.mxu0 %v6884_v61  ;;  %v6918_v0 = vld [vmem:[#allocation8 + $0x468] sm:$0xff]   ;;  %v3108_v61 = vrot.slane %v3106_v60, 2 }
 0x368   : > { %6352 = vmatprep.subr.bf16.mxu1 %v6886_v32  ;;  %v3119_v32 = vrot.slane %v3117_v5, 3  ;;  %v6939_v5 = vld [vmem:[#allocation8 + $0x400] sm:$0xff]  }
 0x36a   : > { %6379 = vmatpush3.bf16.msra.mxu0 %v6885_v38  ;;  %4896 = vmatmul.mubr.bf16.gmra.mxu1 %v8203_v45  ;;  %v6898_v45 = vld [vmem:[#allocation8 + $0x350] sm:$0xff]   ;;  %v3078_v38 = vor.u32 %v3077_v21, %v3074_v25  ;;  %v6940_v25 = vld [vmem:[#allocation8 + $0x4c0] sm:$0xff]   ;;  %v3193_v21 = vrot.slane %v3191_v56, 2  ;;  %v8588_v56 = vld [vmem:[#allocation18_spill] sm:$0xff] }
 0x36b   : > { %6353 = vmatpush3.bf16.msra.mxu1 %v6887_v17  ;;  %4985 = vmatprep.mubr.bf16.mxu1 %v8156_v11  ;;  %v6899_v11 = vld [vmem:[#allocation8 + $0x310] sm:$0xff]   ;;  %v3086_v17 = vor.u32 %v3085_v29, %v3082_v8  ;;  %v3140_v8 = vshrl.u32 %v8210_v40, 16  ;;  %v3143_v29 = vshll.u32 %v8210_v40, 16 }
 0x36c   : > { %6380 = vmatprep.subr.bf16.mxu0 %v6888_v37  ;;  %6354 = vmatprep.subr.bf16.mxu1 %v6890_v7  ;;  %v6919_v37 = vld [vmem:[#allocation8 + $0x428] sm:$0xff]  }
 0x36d   : > { %4945 = vmatmul.mubr.bf16.gmra.mxu0 %v8206_v41  ;;  %v6901_v41 = vld [vmem:[#allocation8 + $0x390] sm:$0xff]   ;;  %v6920_v7 = vld [vmem:[#allocation8 + $0x4e8] sm:$0xff]  }
 0x36e   : > { %6381 = vmatpush3.bf16.msra.mxu0 %v6889_v2  ;;  %5034 = vmatprep.mubr.bf16.mxu0 %v8189_v63  ;;  %v6903_v63 = vld [vmem:[#allocation8 + $0x308] sm:$0xff]   ;;  %v6922_v2 = vld [vmem:[#allocation8 + $0x460] sm:$0xff]  }
 0x36f   : > { %6355 = vmatpush3.bf16.msra.mxu1 %v6891_v62  ;;  %6382 = vmatprep.subr.bf16.mxu0 %v6892_v10  ;;  %v3112_v62 = vor.u32 %v3111_v33, %v3108_v61  ;;  %v3120_v10 = vor.u32 %v3119_v32, %v3116_v54  ;;  %v3148_v33 = vshrl.u32 %v8183_v34, 16  ;;  %v3151_v54 = vshll.u32 %v8183_v34, 16  ;;  %v6943_v32 = vld [vmem:[#allocation8 + $0x538] sm:$0xff]  }
 0x370   : > { %6356 = vmatprep.subr.bf16.mxu1 %v6894_v19  ;;  %v6921_v19 = vld [vmem:[#allocation8 + $0x4a8] sm:$0xff]  }
 0x372   : > { %6383 = vmatpush3.bf16.msra.mxu0 %v6893_v12  ;;  %v6923_v12 = vld [vmem:[#allocation8 + $0x420] sm:$0xff]  }
 0x373   : > { %6357 = vmatpush3.bf16.msra.mxu1 %v6895_v58  ;;  %6384 = vmatprep.subr.bf16.mxu0 %v6896_v14  ;;  %v6924_v58 = vld [vmem:[#allocation8 + $0x4e0] sm:$0xff]   ;;  %v6926_v14 = vld [vmem:[#allocation8 + $0x458] sm:$0xff]  }
 0x374   : > { %6358 = vmatprep.subr.bf16.mxu1 %v6898_v45  ;;  %v3121_v45 = vsel %vm594_vm12, %v3112_v62, %v3120_v10  ;;  %v3142_v62 = vrot.slane %v3140_v8, 2 }
 0x376   : > { %6385 = vmatpush3.bf16.msra.mxu0 %v6897_v52  ;;  %v6925_v52 = vld [vmem:[#allocation8 + $0x4a0] sm:$0xff]  }
 0x377   : > { %6359 = vmatpush3.bf16.msra.mxu1 %v6899_v11  ;;  %6386 = vmatprep.subr.bf16.mxu0 %v6900_v26  ;;  %v6927_v11 = vld [vmem:[#allocation8 + $0x418] sm:$0xff]  }
 0x378   : > { %6360 = vmatprep.subr.bf16.mxu1 %v6902_v57  ;;  %v6928_v26 = vld [vmem:[#allocation8 + $0x4d8] sm:$0xff]   ;;  %v6930_v57 = vld [vmem:[#allocation8 + $0x450] sm:$0xff]  }
 0x37a   : > { %6387 = vmatpush3.bf16.msra.mxu0 %v6901_v41  ;;  %v6929_v41 = vld [vmem:[#allocation8 + $0x498] sm:$0xff]  }
 0x37b   : > { %6361 = vmatpush3.bf16.msra.mxu1 %v6903_v63  ;;  %6388 = vmatprep.subr.bf16.mxu0 %v6904_v55  ;;  %v6931_v63 = vld [vmem:[#allocation8 + $0x410] sm:$0xff]  }
 0x37c   : > { %6362 = vmatprep.subr.bf16.mxu1 %v6906_v15  ;;  %v6932_v55 = vld [vmem:[#allocation8 + $0x4d0] sm:$0xff]   ;;  %v6934_v15 = vld [vmem:[#allocation8 + $0x448] sm:$0xff]  }
 0x37e   : > { %6389 = vmatpush3.bf16.msra.mxu0 %v6905_v27  ;;  %v3157_v27 = vshrl.u32 %v8081_v46, 16 }
 0x37f   : > { %6363 = vmatpush3.bf16.msra.mxu1 %v6907_v23  ;;  %6390 = vmatprep.subr.bf16.mxu0 %v6908_v42  ;;  %v3160_v23 = vshll.u32 %v8081_v46, 16  ;;  %v6933_v42 = vld [vmem:[#allocation8 + $0x490] sm:$0xff]  }
 0x380   : > { %6404 = vmatprep.subr.bf16.mxu1 %v6910_v43  ;;  %v3165_v43 = vshrl.u32 %v8084_v47, 16  ;;  %v3170_v47 = vrot.slane %v3168_v24, 3 }
 0x381   : > { %v3162_v60 = vrot.slane %v3160_v23, 3  ;;  %v6951_v23 = vld [vmem:[#allocation8 + $0x560] sm:$0xff]  }
 0x382   : > { %6391 = vmatpush3.bf16.msra.mxu0 %v6909_v30  ;;  %4986 = vmatmul.mubr.bf16.vlgmr.msra.gmra.mxu1 %v8133_v48  ;;  %v6917_v48 = vld [vmem:[#allocation8 + $0x4b0] sm:$0xff]   ;;  %v6936_v30 = vld [vmem:[#allocation8 + $0x4c8] sm:$0xff]   ;;  %v3167_v51 = vrot.slane %v3165_v43, 2  ;;  %v6953_v43 = vld [vmem:[#allocation10 + $0x20] sm:$0xff]  }
 0x383   : > { %4993 = vmatprep.mubr.bf16.mxu1 %v8112_v18  ;;  %6405 = vmatpush3.bf16.msra.mxu1 %v6911_v16  ;;  %v6938_v16 = vld [vmem:[#allocation8 + $0x440] sm:$0xff]  }
 0x384   : > { %6432 = vmatprep.subr.bf16.mxu0 %v6912_v3  ;;  %6406 = vmatprep.subr.bf16.mxu1 %v6914_v50  ;;  %v3199_v3 = vshrl.u32 %v8091_v36, 16  ;;  %v3159_v50 = vrot.slane %v3157_v27, 2  ;;  %v3171_v61 = vor.u32 %v3170_v47, %v3167_v51  ;;  %v6950_v27 = vld [vmem:[#allocation10 + $0x28] sm:$0xff]   ;;  %v3225_v51 = vshrl.u32 %v8152_v53, 16 }
 0x385   : > { %5035 = vmatmul.mubr.bf16.vlgmr.msra.gmra.mxu0 %v8146_v44  ;;  %v3087_v44 = vsel %vm594_vm12, %v3078_v38, %v3086_v17  ;;  %v6945_v38 = vld [vmem:[#allocation8 + $0x570] sm:$0xff]   ;;  %v3174_v17 = vshrl.u32 %v8112_v18, 16  ;;  %v3228_v47 = vshll.u32 %v8152_v53, 16 }
 0x386   : > { %5042 = vmatprep.mubr.bf16.mxu0 %v8199_v6  ;;  %6433 = vmatpush3.bf16.msra.mxu0 %v6913_v1  ;;  %v3196_v1 = vrot.slane %v3194_v13, 3  ;;  %v3227_v8 = vrot.slane %v3225_v51, 2 }
 0x387   : > { %6407 = vmatpush3.bf16.msra.mxu1 %v6915_v22  ;;  %6434 = vmatprep.subr.bf16.mxu0 %v6916_v28  ;;  %v3201_v22 = vrot.slane %v3199_v3, 2  ;;  %v6941_v28 = vld [vmem:[#allocation8 + $0x480] sm:$0xff]   ;;  %v6956_v3 = vld [vmem:[#allocation10 + $0x18] sm:$0xff]  }
 0x388   : > { %6408 = vmatprep.subr.bf16.mxu1 %v6918_v0  ;;  %v3163_v0 = vor.u32 %v3162_v60, %v3159_v50  ;;  %v3197_v10 = vor.u32 %v3196_v1, %v3193_v21  ;;  %v6958_v50 = vld [vmem:[#allocation8 + $0x510] sm:$0xff]   ;;  %v6961_v21 = vld [vmem:[#allocation8 + $0x508] sm:$0xff]  }
 0x389   : > { %v6959_v60 = vld [vmem:[#allocation10 + $0x10] sm:$0xff]   ;;  %v6962_v1 = vld [vmem:[#allocation10 + $0x8] sm:$0xff]  }
 0x38a   : > { %6435 = vmatpush3.bf16.msra.mxu0 %v6917_v48  ;;  %4994 = vmatmul.mubr.bf16.gmra.mxu1 %v8081_v46  ;;  %v3202_v46 = vshll.u32 %v8091_v36, 16  ;;  %v6944_v48 = vld [vmem:[#allocation10 + $0x38] sm:$0xff]   ;;  %v3172_v34 = vsel %vm594_vm12, %v3163_v0, %v3171_v61  ;;  %v3208_v0 = vshrl.u32 %v8199_v6, 16  ;;  %v3216_v61 = vshrl.u32 %v8181_v4, 16 }
 0x38b   : > { %6409 = vmatpush3.bf16.msra.mxu1 %v6919_v37  ;;  %5083 = vmatprep.mubr.bf16.mxu1 %v3087_v44  ;;  %v3177_v37 = vshll.u32 %v8112_v18, 16  ;;  %v6948_v18 = vld [vmem:[#allocation8 + $0x568] sm:$0xff]  }
 0x38c   : > { %6436 = vmatprep.subr.bf16.mxu0 %v6920_v7  ;;  %6410 = vmatprep.subr.bf16.mxu1 %v6922_v2  ;;  %v3204_v36 = vrot.slane %v3202_v46, 3  ;;  %v3182_v7 = vshrl.u32 %v8076_v39, 16  ;;  %v3185_v2 = vshll.u32 %v8076_v39, 16  ;;  %v6957_v46 = vld [vmem:[#allocation8 + $0x550] sm:$0xff]  }
 0x38d   : > { %5043 = vmatmul.mubr.bf16.gmra.mxu0 %v8104_v31  ;;  %v6942_v31 = vld [vmem:[#allocation8 + $0x578] sm:$0xff]   ;;  %v3179_v39 = vrot.slane %v3177_v37, 3 }
 0x38e   : > { %6437 = vmatpush3.bf16.msra.mxu0 %v6921_v19  ;;  %5132 = vmatprep.mubr.bf16.mxu0 %v3121_v45  ;;  %v3205_v44 = vor.u32 %v3204_v36, %v3201_v22  ;;  %v3145_v19 = vrot.slane %v3143_v29, 3  ;;  %v6947_v45 = vld [vmem:[#allocation10 + $0x30] sm:$0xff]   ;;  %v3230_v29 = vrot.slane %v3228_v47, 3 }
 0x38f   : > { %6411 = vmatpush3.bf16.msra.mxu1 %v6923_v12  ;;  %6438 = vmatprep.subr.bf16.mxu0 %v6924_v58  ;;  %v3150_v12 = vrot.slane %v3148_v33, 2  ;;  %v3153_v58 = vrot.slane %v3151_v54, 3  ;;  %v3219_v33 = vshll.u32 %v8181_v4, 16 }
 0x390   : > { %6412 = vmatprep.subr.bf16.mxu1 %v6926_v14  ;;  %v6946_v14 = vld [vmem:[#allocation8 + $0x530] sm:$0xff]   ;;  %v3231_v54 = vor.u32 %v3230_v29, %v3227_v8 }
 0x391   : > { %v3221_v37 = vrot.slane %v3219_v33, 3 }
 0x392   : > { %6439 = vmatpush3.bf16.msra.mxu0 %v6925_v52  ;;  %v3176_v52 = vrot.slane %v3174_v17, 2  ;;  %v3218_v17 = vrot.slane %v3216_v61, 2 }
 0x393   : > { %6413 = vmatpush3.bf16.msra.mxu1 %v6927_v11  ;;  %6440 = vmatprep.subr.bf16.mxu0 %v6928_v26  ;;  %v3184_v11 = vrot.slane %v3182_v7, 2  ;;  %v3187_v26 = vrot.slane %v3185_v2, 3  ;;  %v8591_v2 = vld [vmem:[#allocation17_spill] sm:$0xff] }
 0x394   : > { %6414 = vmatprep.subr.bf16.mxu1 %v6930_v57  ;;  %v3206_v57 = vsel %vm594_vm12, %v3197_v10, %v3205_v44  ;;  %v3222_v10 = vor.u32 %v3221_v37, %v3218_v17 }
 0x396   : > { %6441 = vmatpush3.bf16.msra.mxu0 %v6929_v41  ;;  %v3154_v41 = vor.u32 %v3153_v58, %v3150_v12 }
 0x397   : > { %6415 = vmatpush3.bf16.msra.mxu1 %v6931_v63  ;;  %6442 = vmatprep.subr.bf16.mxu0 %v6932_v55  ;;  %v6949_v63 = vld [vmem:[#allocation8 + $0x528] sm:$0xff]   ;;  %v3180_v55 = vor.u32 %v3179_v39, %v3176_v52 }
 0x398   : > { %6416 = vmatprep.subr.bf16.mxu1 %v6934_v15  ;;  %v3188_v15 = vor.u32 %v3187_v26, %v3184_v11 }
 0x39a   : > { %6443 = vmatpush3.bf16.msra.mxu0 %v6933_v42  ;;  %v3189_v24 = vsel %vm594_vm12, %v3180_v55, %v3188_v15 }
 0x39b   : > { %6417 = vmatpush3.bf16.msra.mxu1 %v6935_v9  ;;  %6444 = vmatprep.subr.bf16.mxu0 %v6936_v30  ;;  %v6954_v9 = vld [vmem:[#allocation8 + $0x558] sm:$0xff]  }
 0x39c   : > { %6418 = vmatprep.subr.bf16.mxu1 %v6938_v16  ;;  %v8587_v30 = vld [vmem:[#allocation20_spill] sm:$0xff] }
 0x39d   : > { %v8589_v13 = vpack.c.bf16 %v8587_v30, %v8588_v56  ;;  %v6955_v16 = vld [vmem:[#allocation8 + $0x518] sm:$0xff]  }
 0x39e   : > { %6445 = vmatpush3.bf16.msra.mxu0 %v6937_v20  ;;  %v6960_v20 = vld [vmem:[#allocation8 + $0x548] sm:$0xff]  }
 0x39f   : > { %6419 = vmatpush3.bf16.msra.mxu1 %v6939_v5  ;;  %6446 = vmatprep.subr.bf16.mxu0 %v6940_v25  ;;  %v3233_v5 = vshrl.u32 %v8141_v49, 16  ;;  %v3236_v25 = vshll.u32 %v8141_v49, 16  ;;  %v3211_v49 = vshll.u32 %v8199_v6, 16  ;;  %v8590_v6 = vld [vmem:[#allocation19_spill] sm:$0xff] }
 0x3a0   : > { %6460 = vmatprep.subr.bf16.mxu1 %v6942_v31  ;;  %v6963_v31 = vld [vmem:[#allocation8 + $0x540] sm:$0xff]  }
 0x3a1   : > { %v3235_v22 = vrot.slane %v3233_v5, 2  ;;  %v3238_v36 = vrot.slane %v3236_v25, 3 }
 0x3a2   : > { %6447 = vmatpush3.bf16.msra.mxu0 %v6941_v28  ;;  %5084 = vmatmul.mubr.bf16.vlgmr.msra.gmra.mxu1 %v8210_v40  ;;  %v3146_v40 = vor.u32 %v3145_v19, %v3142_v62  ;;  %v6964_v28 = vld [vmem:[#allocation8 + $0x500] sm:$0xff]   ;;  %v8592_v62 = vpack.c.bf16 %v8590_v6, %v8591_v2 }
 0x3a3   : > { %5091 = vmatprep.mubr.bf16.mxu1 %v3172_v34  ;;  %6461 = vmatpush3.bf16.msra.mxu1 %v6943_v32  ;;  %v3239_v32 = vor.u32 %v3238_v36, %v3235_v22 }
 0x3a4   : > { %6498 = vmatprep.subr.bf16.mxu0 %v6944_v48  ;;  %6462 = vmatprep.subr.bf16.mxu1 %v6945_v38  ;;  %v3155_v42 = vsel %vm594_vm12, %v3146_v40, %v3154_v41  ;;  %v3213_v38 = vrot.slane %v3211_v49, 3 }
 0x3a5   : > { %5133 = vmatmul.mubr.bf16.vlgmr.msra.gmra.mxu0 %v8227_v35  ;;  %v6952_v35 = vld [vmem:[#allocation8 + $0x520] sm:$0xff]   ;;  %v3240_v7 = vsel %vm594_vm12, %v3231_v54, %v3239_v32 }
 0x3a6   : > { %5140 = vmatprep.mubr.bf16.mxu0 %v3206_v57  ;;  %6499 = vmatpush3.bf16.msra.mxu0 %v6944_v48  ;;  %v3210_v48 = vrot.slane %v3208_v0, 2 }
 0x3a7   : > { %6463 = vmatpush3.bf16.msra.mxu1 %v6946_v14  ;;  %6500 = vmatprep.subr.bf16.mxu0 %v6947_v45 }
 0x3a8   : > { %6464 = vmatprep.subr.bf16.mxu1 %v6948_v18  ;;  %v3214_v4 = vor.u32 %v3213_v38, %v3210_v48 }
 0x3aa   : > { %6501 = vmatpush3.bf16.msra.mxu0 %v6947_v45  ;;  %5092 = vmatmul.mubr.bf16.gmra.mxu1 %v8152_v53  ;;  %v6965_v53 = vld [vmem:[#allocation10] sm:$0xff]   ;;  %v3223_v44 = vsel %vm594_vm12, %v3214_v4, %v3222_v10 }
 0x3ab   : > { %6465 = vmatpush3.bf16.msra.mxu1 %v6949_v63  ;;  %5181 = vmatprep.mubr.bf16.mxu1 %v3155_v42 }
 0x3ac   : > { %6502 = vmatprep.subr.bf16.mxu0 %v6950_v27  ;;  %6466 = vmatprep.subr.bf16.mxu1 %v6951_v23 }
 0x3ad   : > { %5141 = vmatmul.mubr.bf16.gmra.mxu0 %v3189_v24 }
 0x3ae   : > { %6503 = vmatpush3.bf16.msra.mxu0 %v6950_v27  ;;  %6514 = vmatprep.mubr.bf16.mxu0 %v8589_v13 }
 0x3af   : > { %6467 = vmatpush3.bf16.msra.mxu1 %v6952_v35  ;;  %6504 = vmatprep.subr.bf16.mxu0 %v6953_v43 }
 0x3b0   : > { %6468 = vmatprep.subr.bf16.mxu1 %v6954_v9 }
 0x3b2   : > { %6505 = vmatpush3.bf16.msra.mxu0 %v6953_v43 }
 0x3b3   : > { %6469 = vmatpush3.bf16.msra.mxu1 %v6955_v16  ;;  %6506 = vmatprep.subr.bf16.mxu0 %v6956_v3 }
 0x3b4   : > { %6470 = vmatprep.subr.bf16.mxu1 %v6957_v46 }
 0x3b6   : > { %6507 = vmatpush3.bf16.msra.mxu0 %v6956_v3 }
 0x3b7   : > { %6471 = vmatpush3.bf16.msra.mxu1 %v6958_v50  ;;  %6508 = vmatprep.subr.bf16.mxu0 %v6959_v60 }
 0x3b8   : > { %6472 = vmatprep.subr.bf16.mxu1 %v6960_v20 }
 0x3ba   : > { %6509 = vmatpush3.bf16.msra.mxu0 %v6959_v60 }
 0x3bb   : > { %6473 = vmatpush3.bf16.msra.mxu1 %v6961_v21  ;;  %6510 = vmatprep.subr.bf16.mxu0 %v6962_v1 }
 0x3bc   : > { %6474 = vmatprep.subr.bf16.mxu1 %v6963_v31 }
 0x3be   : > { %6511 = vmatpush3.bf16.msra.mxu0 %v6962_v1 }
 0x3bf   : > { %6475 = vmatpush3.bf16.msra.mxu1 %v6964_v28  ;;  %6512 = vmatprep.subr.bf16.mxu0 %v6965_v53 }
 0x3c2   : > { %6513 = vmatpush3.bf16.msra.mxu0 %v6965_v53  ;;  %5182 = vmatmul.mubr.bf16.vlgmr.msra.gmra.mxu1 %v8236_v59 }
 0x3c3   : > { %5189 = vmatprep.mubr.bf16.mxu1 %v3240_v7 }
 0x3c5   : > { %6515 = vmatmul.mubr.bf16.vlgmr.msra.gmra.mxu0 %v8592_v62 }
 0x3ca   : > { %5190 = vmatmul.mubr.bf16.gmra.mxu1 %v3223_v44 }
 0x3e1   : > { %v8310_v19 = vpop.f32.mrf.mxu1 }
 0x3e3   : > { %v8314_v12 = vpop.f32.mrf.mxu1 }
 0x3e5   : > { %v8312_v34 = vpop.f32.mrf.mxu0  ;;  %v8318_v59 = vpop.f32.mrf.mxu1 }
 0x3e7   : > { %v8316_v58 = vpop.f32.mrf.mxu0  ;;  %v8322_v45 = vpop.f32.mrf.mxu1 }
 0x3e9   : > { %v8320_v14 = vpop.f32.mrf.mxu0  ;;  %v8326_v52 = vpop.f32.mrf.mxu1 }
 0x3eb   : > { %v8324_v18 = vpop.f32.mrf.mxu0  ;;  %v8330_v11 = vpop.f32.mrf.mxu1 }
 0x3ed   : > { %v8328_v39 = vpop.f32.mrf.mxu0  ;;  %v8334_v57 = vpop.f32.mrf.mxu1 }
 0x3ef   : > { %v8332_v26 = vpop.f32.mrf.mxu0  ;;  %v8338_v41 = vpop.f32.mrf.mxu1 }
 0x3f1   : > { %v8336_v40 = vpop.f32.mrf.mxu0 }
 0x3f3   : > { %v8340_v55 = vpop.f32.mrf.mxu0 }
 0x401   : > { %v6252_v63 = vpop.f32.mrf.mxu1 }
 0x403   : > { %v6253_v27 = vpop.f32.mrf.mxu1 }
 0x405   : > { %v6280_v15 = vpop.f32.mrf.mxu0  ;;  %v6255_v42 = vpop.f32.mrf.mxu1 }
 0x407   : > { %v6281_v23 = vpop.f32.mrf.mxu0  ;;  %v6256_v43 = vpop.f32.mrf.mxu1 }
 0x409   : > { %v8342_v35 = vpop.f32.mrf.mxu0  ;;  %v6258_v9 = vpop.f32.mrf.mxu1 }
 0x40b   : > { %v8344_v24 = vpop.f32.mrf.mxu0  ;;  %v6259_v56 = vpop.f32.mrf.mxu1 }
 0x40d   : > { %v8346_v30 = vpop.f32.mrf.mxu0  ;;  %v8350_v16 = vpop.f32.mrf.mxu1 }
 0x40f   : > { %v8348_v13 = vpop.f32.mrf.mxu0  ;;  %v8354_v46 = vpop.f32.mrf.mxu1 }
 0x411   : > { %v8352_v3 = vpop.f32.mrf.mxu0 }
 0x413   : > { %v8356_v60 = vpop.f32.mrf.mxu0 }
 0x422   : > { %v6308_v50 = vpop.f32.mrf.mxu1 }
 0x424   : > { %v6309_v51 = vpop.f32.mrf.mxu1 }
 0x425   : > { %v6336_v20 = vpop.f32.mrf.mxu0 }
 0x426   : > { %v6311_v5 = vpop.f32.mrf.mxu1 }
 0x427   : > { %v6337_v47 = vpop.f32.mrf.mxu0 }
 0x428   : > { %v6312_v21 = vpop.f32.mrf.mxu1 }
 0x429   : > { %v8358_v25 = vpop.f32.mrf.mxu0 }
 0x42a   : > { %v8362_v31 = vpop.f32.mrf.mxu1 }
 0x42b   : > { %v8360_v1 = vpop.f32.mrf.mxu0 }
 0x42c   : > { %v6315_v29 = vpop.f32.mrf.mxu1 }
 0x42d   : > { %v8364_v8 = vpop.f32.mrf.mxu0 }
 0x42e   : > { %v8368_v36 = vpop.f32.mrf.mxu1 }
 0x42f   : > { %v8366_v22 = vpop.f32.mrf.mxu0  ;;  %8593 = vst [vmem:[#allocation28_spill] sm:$0xff] %v8368_v36 }
 0x430   : > { %v8372_v53 = vpop.f32.mrf.mxu1 }
 0x431   : > { %v8370_v28 = vpop.f32.mrf.mxu0  ;;  %8595 = vst [vmem:[#allocation29_spill] sm:$0xff] %v8372_v53  ;;  %v6282_v53 = vadd.f32 %v6281_v23, %v6280_v15  ;;  %v6235_v15 = vadd.f32 %v8340_v55, %v8336_v40  ;;  %v6316_v40 = vadd.f32 %v6315_v29, %v8362_v31  ;;  %v6344_v31 = vadd.f32 %v8366_v22, %v8364_v8 }
 0x432   : > { %8594 = vst [vmem:[#allocation30_spill] sm:$0xff] %v8370_v28 }
 0x433   : > { %v8374_v49 = vpop.f32.mrf.mxu0 }
 0x434   : > { %8596 = vst [vmem:[#allocation31_spill] sm:$0xff] %v8374_v49 }
 0x436   : > { %v8608_v29 = vld [vmem:[#allocation28_spill] sm:$0xff] }
 0x43b   : > { %v8615_v8 = vld [vmem:[#allocation31_spill] sm:$0xff] }
 0x442   : > { %v6364_v0 = vpop.f32.mrf.mxu1 }
 0x444   : > { %v6365_v33 = vpop.f32.mrf.mxu1 }
 0x445   : > { %v8376_v61 = vpop.f32.mrf.mxu0 }
 0x446   : > { %v6367_v32 = vpop.f32.mrf.mxu1 }
 0x447   : > { %v6393_v54 = vpop.f32.mrf.mxu0 }
 0x448   : > { %v6368_v38 = vpop.f32.mrf.mxu1 }
 0x449   : > { %v8378_v48 = vpop.f32.mrf.mxu0 }
 0x44a   : > { %8597 = vst [vmem:[#allocation26_spill] sm:$0xff] %v8378_v48  ;;  %v8382_v37 = vpop.f32.mrf.mxu1  ;;  %v6226_v48 = vadd.f32 %v8316_v58, %v8312_v34  ;;  %v6232_v34 = vadd.f32 %v8332_v26, %v8328_v39  ;;  %v6338_v39 = vadd.f32 %v6337_v47, %v6336_v20  ;;  %v6313_v26 = vadd.f32 %v6312_v21, %v6311_v5 }
 0x44b   : > { %v8380_v17 = vpop.f32.mrf.mxu0  ;;  %8599 = vst [vmem:[#allocation33_spill] sm:$0xff] %v8382_v37  ;;  %v6341_v47 = vadd.f32 %v8360_v1, %v8358_v25 }
 0x44c   : > { %8598 = vst [vmem:[#allocation27_spill] sm:$0xff] %v8380_v17  ;;  %v8386_v6 = vpop.f32.mrf.mxu1 }
 0x44d   : > { %v8384_v7 = vpop.f32.mrf.mxu0  ;;  %8601 = vst [vmem:[#allocation34_spill] sm:$0xff] %v8386_v6  ;;  %v6254_v6 = vadd.f32 %v6253_v27, %v6252_v63  ;;  %v6204_v63 = vadd.f32 %v8330_v11, %v8326_v52  ;;  %v6260_v27 = vadd.f32 %v6259_v56, %v6258_v9  ;;  %v6288_v52 = vadd.f32 %v8348_v13, %v8346_v30 }
 0x44e   : > { %8600 = vst [vmem:[#allocation32_spill] sm:$0xff] %v8384_v7  ;;  %v8390_v62 = vpop.f32.mrf.mxu1  ;;  %v6198_v7 = vadd.f32 %v8314_v12, %v8310_v19  ;;  %v6310_v12 = vadd.f32 %v6309_v51, %v6308_v50  ;;  %v6263_v11 = vadd.f32 %v8354_v46, %v8350_v16  ;;  %v6291_v30 = vadd.f32 %v8356_v60, %v8352_v3 }
 0x44f   : > { %v8388_v2 = vpop.f32.mrf.mxu0  ;;  %8603 = vst [vmem:[#allocation21_spill] sm:$0xff] %v8390_v62  ;;  %v6394_v16 = vadd.f32 %v6393_v54, %v8376_v61  ;;  %v6369_v46 = vadd.f32 %v6368_v38, %v6367_v32 }
 0x450   : > { %8602 = vst [vmem:[#allocation35_spill] sm:$0xff] %v8388_v2  ;;  %v8394_v10 = vpop.f32.mrf.mxu1  ;;  %v4743_v62 = vadd.f32 %v6226_v48, %v6198_v7 }
 0x451   : > { %v8392_v4 = vpop.f32.mrf.mxu0  ;;  %8605 = vst [vmem:[#allocation23_spill] sm:$0xff] %v8394_v10  ;;  %v6201_v10 = vadd.f32 %v8322_v45, %v8318_v59  ;;  %v6285_v59 = vadd.f32 %v8344_v24, %v8342_v35  ;;  %v6366_v24 = vadd.f32 %v6365_v33, %v6364_v0 }
 0x452   : > { %8604 = vst [vmem:[#allocation22_spill] sm:$0xff] %v8392_v4  ;;  %v6229_v4 = vadd.f32 %v8324_v18, %v8320_v14  ;;  %v4751_v18 = vadd.f32 %v6232_v34, %v6204_v63  ;;  %v8610_v33 = vld [vmem:[#allocation33_spill] sm:$0xff] }
 0x453   : > { %v8396_v49 = vpop.f32.mrf.mxu0  ;;  %v8613_v61 = vld [vmem:[#allocation27_spill] sm:$0xff] }
 0x454   : > { %8606 = vst [vmem:[#allocation24_spill] sm:$0xff] %v8396_v49  ;;  %v4792_v49 = vadd.f32 %v6254_v6, %v4743_v62  ;;  %v4746_v19 = vadd.f32 %v6229_v4, %v6201_v10  ;;  %v4800_v50 = vadd.f32 %v6260_v27, %v4751_v18  ;;  %v8611_v7 = vld [vmem:[#allocation34_spill] sm:$0xff] }
 0x455   : > { %v6372_v6 = vadd.f32 %v8611_v7, %v8610_v33  ;;  %v8612_v62 = vld [vmem:[#allocation26_spill] sm:$0xff]  ;;  %v8617_v27 = vld [vmem:[#allocation32_spill] sm:$0xff] }
 0x456   : > { %v4841_v48 = vadd.f32 %v6282_v53, %v4792_v49  ;;  %v6397_v54 = vadd.f32 %v8613_v61, %v8612_v62  ;;  %v8614_v10 = vld [vmem:[#allocation30_spill] sm:$0xff] }
 0x457   : > { %v6347_v22 = vadd.f32 %v8615_v8, %v8614_v10 }
 0x458   : > { %v8620_v18 = vld [vmem:[#allocation23_spill] sm:$0xff] }
 0x462   : > { %v6420_v44 = vpop.f32.mrf.mxu1 }
 0x464   : > { %v6421_v17 = vpop.f32.mrf.mxu1 }
 0x465   : > { %v8398_v28 = vpop.f32.mrf.mxu0  ;;  %v6422_v25 = vadd.f32 %v6421_v17, %v6420_v44 }
 0x466   : > { %8607 = vst [vmem:[#allocation25_spill] sm:$0xff] %v8398_v28  ;;  %v6423_v37 = vpop.f32.mrf.mxu1  ;;  %v6257_v28 = vadd.f32 %v6256_v43, %v6255_v42  ;;  %v4890_v42 = vadd.f32 %v6310_v12, %v4841_v48  ;;  %v6207_v43 = vadd.f32 %v8338_v41, %v8334_v57  ;;  %v4849_v57 = vadd.f32 %v6288_v52, %v4800_v50  ;;  %v8618_v48 = vld [vmem:[#allocation35_spill] sm:$0xff] }
 0x467   : > { %v6449_v2 = vpop.f32.mrf.mxu0 }
 0x468   : > { %v6424_v58 = vpop.f32.mrf.mxu1  ;;  %v4795_v14 = vadd.f32 %v6257_v28, %v4746_v19  ;;  %v4754_v56 = vadd.f32 %v6235_v15, %v6207_v43  ;;  %v4939_v51 = vadd.f32 %v6338_v39, %v4890_v42  ;;  %v4898_v21 = vadd.f32 %v6316_v40, %v4849_v57  ;;  %v8609_v28 = vld [vmem:[#allocation29_spill] sm:$0xff]  ;;  %v8621_v40 = vld [vmem:[#allocation22_spill] sm:$0xff] }
 0x469   : > { %v8408_v36 = vpop.f32.mrf.mxu0  ;;  %v6319_v53 = vadd.f32 %v8609_v28, %v8608_v29  ;;  %v6425_v17 = vadd.f32 %v6424_v58, %v6423_v37 }
 0x46a   : > { %v6426_v23 = vpop.f32.mrf.mxu1  ;;  %v4844_v35 = vadd.f32 %v6285_v59, %v4795_v14  ;;  %v4803_v41 = vadd.f32 %v6263_v11, %v4754_v56  ;;  %v4988_v13 = vadd.f32 %v6366_v24, %v4939_v51  ;;  %v4947_v38 = vadd.f32 %v6344_v31, %v4898_v21  ;;  %v8619_v59 = vld [vmem:[#allocation21_spill] sm:$0xff]  ;;  %v8622_v51 = vld [vmem:[#allocation24_spill] sm:$0xff] }
 0x46b   : > { %v6452_v45 = vpop.f32.mrf.mxu0  ;;  %v6400_v14 = vadd.f32 %v8618_v48, %v8617_v27  ;;  %v6375_v15 = vadd.f32 %v8620_v18, %v8619_v59 }
 0x46c   : > { %v6427_v55 = vpop.f32.mrf.mxu1  ;;  %v4893_v20 = vadd.f32 %v6313_v26, %v4844_v35  ;;  %v4852_v1 = vadd.f32 %v6291_v30, %v4803_v41  ;;  %v5037_v3 = vadd.f32 %v6394_v16, %v4988_v13  ;;  %v4996_v44 = vadd.f32 %v6372_v6, %v4947_v38 }
 0x46d   : > { %v6454_v9 = vpop.f32.mrf.mxu0  ;;  %v8616_v12 = vld [vmem:[#allocation25_spill] sm:$0xff]  ;;  %v6428_v50 = vadd.f32 %v6427_v55, %v6426_v23  ;;  %v6453_v24 = vadd.f32 %v6452_v45, %v8408_v36 }
 0x46e   : > { %v6429_v0 = vpop.f32.mrf.mxu1  ;;  %v4942_v49 = vadd.f32 %v6341_v47, %v4893_v20  ;;  %v4901_v4 = vadd.f32 %v6319_v53, %v4852_v1  ;;  %v5086_v19 = vadd.f32 %v6422_v25, %v5037_v3  ;;  %v6450_v63 = vadd.f32 %v6449_v2, %v8616_v12 }
 0x46f   : > { %v6455_v5 = vpop.f32.mrf.mxu0  ;;  %v5045_v37 = vadd.f32 %v6400_v14, %v4996_v44  ;;  %v6403_v20 = vadd.f32 %v8622_v51, %v8621_v40 }
 0x470   : > { %v4991_v60 = vadd.f32 %v6369_v46, %v4942_v49  ;;  %v6430_v34 = vpop.f32.mrf.mxu1  ;;  %v4950_v43 = vadd.f32 %v6347_v22, %v4901_v4  ;;  %v5135_v11 = vadd.f32 %v6450_v63, %v5086_v19  ;;  %v6456_v13 = vadd.f32 %v6455_v5, %v6454_v9 }
 0x471   : > { %v6457_v32 = vpop.f32.mrf.mxu0  ;;  %v5094_v30 = vadd.f32 %v6428_v50, %v5045_v37  ;;  %v6431_v16 = vadd.f32 %v6430_v34, %v6429_v0 }
 0x472   : > { %v5040_v39 = vadd.f32 %v6397_v54, %v4991_v60  ;;  %v4999_v58 = vadd.f32 %v6375_v15, %v4950_v43 }
 0x473   : > { %v6458_v26 = vpop.f32.mrf.mxu0  ;;  %v5143_v25 = vadd.f32 %v6456_v13, %v5094_v30 }
 0x474   : > { %v5089_v35 = vadd.f32 %v6425_v17, %v5040_v39  ;;  %v5048_v36 = vadd.f32 %v6403_v20, %v4999_v58  ;;  %v6459_v33 = vadd.f32 %v6458_v26, %v6457_v32 }
 0x476   : > { %v5138_v23 = vadd.f32 %v6453_v24, %v5089_v35  ;;  %v5097_v1 = vadd.f32 %v6431_v16, %v5048_v36 }
 0x478   : > { %v5146_v54 = vadd.f32 %v6459_v33, %v5097_v1 }
 0x482   : > { %v6476_v42 = vpop.f32.mrf.mxu1 }
 0x484   : > { %v6477_v52 = vpop.f32.mrf.mxu1 }
 0x485   : > { %v6478_v56 = vadd.f32 %v6477_v52, %v6476_v42  ;;  %v6516_v2 = vpop.f32.mrf.mxu0 }
 0x486   : > { %v6479_v47 = vpop.f32.mrf.mxu1  ;;  %v5315_v4 = vmul.f32 0.7, %v6516_v2 }
 0x487   : > { %v5184_v57 = vadd.f32 %v6478_v56, %v5135_v11  ;;  %v5298_v41 = vpop.f32.mrf.mxu0 }
 0x488   : > { %v6480_v46 = vpop.f32.mrf.mxu1  ;;  %v5313_v21 = vmul.f32 0.7, %v5298_v41 }
 0x489   : > { %v5317_v55 = vmul.f32 0.3, %v5184_v57  ;;  %v6481_v31 = vadd.f32 %v6480_v46, %v6479_v47  ;;  %v6517_v29 = vpop.f32.mrf.mxu0 }
 0x48a   : > { %v6482_v45 = vpop.f32.mrf.mxu1  ;;  %v5316_v12 = vmul.f32 0.7, %v6517_v29 }
 0x48b   : > { %v5321_v28 = vadd.f32 %v5317_v55, %v5313_v21  ;;  %v5187_v53 = vadd.f32 %v6481_v31, %v5138_v23  ;;  %v5301_v49 = vpop.f32.mrf.mxu0 }
 0x48c   : > { %v6483_v7 = vpop.f32.mrf.mxu1  ;;  %v5314_v9 = vmul.f32 0.7, %v5301_v49 }
 0x48d   : > { %v5325_v6 = vmul.f32 1.3130643, %v5321_v28  ;;  %v5318_v3 = vmul.f32 0.3, %v5187_v53  ;;  %v6484_v5 = vadd.f32 %v6483_v7, %v6482_v45 }
 0x48e   : > { %v6485_v0 = vpop.f32.mrf.mxu1 }
 0x48f   : > { %v5861_v60 = vclamps-f32 %v5325_v6, 256.0  ;;  %v5322_v62 = vadd.f32 %v5318_v3, %v5314_v9  ;;  %v5192_v61 = vadd.f32 %v6484_v5, %v5143_v25 }
 0x490   : > { %v6486_v38 = vpop.f32.mrf.mxu1 }
 0x491   : > { %5337 = vst [vmem:[%s319_s24] sm:$0xff] %v5861_v60  ;;  %v5326_v10 = vmul.f32 1.3130643, %v5322_v62  ;;  %v5319_v8 = vmul.f32 0.3, %v5192_v61  ;;  %v6487_v22 = vadd.f32 %v6486_v38, %v6485_v0 }
 0x493   : > { %v5862_v32 = vclamps-f32 %v5326_v10, 256.0  ;;  %v5323_v34 = vadd.f32 %v5319_v8, %v5315_v4  ;;  %v5195_v19 = vadd.f32 %v6487_v22, %v5146_v54 }
 0x495   : > { %5338 = vst [vmem:[%s319_s24 + $0x8] sm:$0xff] %v5862_v32  ;;  %v5327_v63 = vmul.f32 1.3130643, %v5323_v34  ;;  %v5320_v17 = vmul.f32 0.3, %v5195_v19 }
 0x497   : > { %v5863_v44 = vclamps-f32 %v5327_v63, 256.0  ;;  %v5324_v27 = vadd.f32 %v5320_v17, %v5316_v12 }
 0x499   : > { %5339 = vst [vmem:[%s319_s24 + $0x10] sm:$0xff] %v5863_v44  ;;  %v5328_v48 = vmul.f32 1.3130643, %v5324_v27 }
 0x49b   : > { %v5864_v14 = vclamps-f32 %v5328_v48, 256.0 }
 0x49d   : > { %5340 = vst [vmem:[%s319_s24 + $0x18] sm:$0xff] %v5864_v14 }
 0x49e   : > { %7165 = shalt.err (!%p7162_p13)
}
 0x49f   : > { %s7166_s10 = scalar_lea.hbm %s8456_s23, 512  ;;  %s7170_s13 = scalar_lea.hbm %s8504_s5, 1024 }
 0x4a0   : > { %p7167_p4 = scmp.ne.s32.totalorder %s8456_s23, %s7166_s10  ;;  %p7171_p1 = scmp.lt.s32.totalorder %s8456_s23, %s8504_s5 }
 0x4a1   : > { %p7172_p6 = scmp.lt.s32.totalorder %s7170_s13, %s7166_s10 }
 0x4a2   : > { %p7168_p8 = pnand %p7167_p4, %p8623_p5 }
 0x4a3   : > { %p7173_p12 = por %p7172_p6, %p7171_p1 }
 0x4a4   : > { %p7169_p11 = pneg %p7168_p8 }
 0x4a6   : > { %p7174_p0 = pnand %p7173_p12, %p7169_p11 }
 0x4a8   : > { %7177 = shalt.err (!%p7174_p0)
}
 0x4a9   : > { %s7240_s16 = smov 128   ;;  %s7241_s24 = smov 8  }
 0x4aa   : > { %6534 = dma.vmem_to_hbm [thread:$0]  (%p8623_p5), %s8451_s12, 512, %s8456_s23, %s5342_s30, %s7240_s16, %s7240_s16, %s7241_s24  }
 0x4ab PF: > { %s5370_s27 = sand.u32 1, %s7216_s18   ;;  %p8624_p3 = scmp.ne.s32.totalorder %s8527_s25, 0 }
 0x4ac   : > { %p8625_p7 = scmp.ge.s32.totalorder %s7228_s21, 2  ;;  %s5371_s15 = scalar_lea.sflag [#allocation4], %s5370_s27 }
 0x4ae   : > { %p6554_p9 = pnand %p8625_p7, %p8624_p3 }
 0x4b0   : > { %p6555_p2 = pneg %p6554_p9 }
 0x4b2   : > { %7211 = dma.done.wait (%p6555_p2), %s5371_s15, 512  }
 0x4b3   : > { %7213 = vsyncadd (%p6555_p2), %s5371_s15, 4294966784  ;;  %p22_p10 = scmp.ge.s32.totalorder %s7352_s28, 4   ;;  %s8626_s18 = smov %s7220_s19 }
 0x4b4   : > { %s8627_s19 = smov %s7224_s20  ;;  %s8628_s20 = smov %s7362_s6 }
 0x4b5   : > { %s8629_s21 = smov %s7352_s28  ;;  %24 = sbr.rel (!%p22_p10) target bundleno = 11 (0xb), region = 110 }
 0x4ba   :  { %5376 = vsyncpa [#allocation3], 1 }
 0x4bb   :  { %5378 = vsyncpa [#allocation3 + $0x1], 1 }
 0x4bc   :  { %5379 = vsyncpa [#allocation6], 1 }
 0x4bd   :  { %5381 = vsyncpa [#allocation6 + $0x1], 1 }
 0x4be   :  { %5382 = vsyncpa [#allocation9], 1 }
 0x4bf   :  { %5383 = vsyncpa [#allocation4], 1 }
 0x4c0   :  { %5385 = vsyncpa [#allocation4 + $0x1], 1 }

</bundles_post_ra>
